<compile_context>
chip_gen: v6e
topology: v6e:2x2x1
jax: 0.10.0
libtpu: 0.0.40
codegen_flags: <defaults>
</compile_context>

<pallas_src>
import functools
import math

import jax
import jax.numpy as jnp
from jax.experimental import pallas as pl
from jax.experimental.pallas import tpu as pltpu  # noqa: F401  (TPU backend assumed)


# --------------------------------------------------------------------------
# Kernel factories (everything specialized on static shapes/counts)
# --------------------------------------------------------------------------

def _make_gcn_layer_kernel(B, N, MEM, num_sub, head_dim):
    """Fused GraphConvLayer: all sublayers + trailing Linear, all batches in one block."""

    def kernel(adj_ref, x_ref, wx_ref, wg_ref, b2_ref, linx_ref, ling_ref,
               linb_ref, out_ref):
        adj = adj_ref[...]                                  # (B, N, N)
        x3 = x_ref[...]                                     # (B, N, MEM)
        x2 = x3.reshape(B * N, MEM)

        # denom = adj.sum(2) + 1 ; divide -> multiply by reciprocal (EUP slot)
        denom_inv = pl.reciprocal(
            jnp.sum(adj, axis=-1, keepdims=True) + 1.0, approx=True)       # (B, N, 1)
        denom_inv2 = denom_inv.reshape(B * N, 1)

        # output Linear accumulator: x-contribution + bias (added exactly once)
        acc = jnp.dot(x2, linx_ref[...],
                      preferred_element_type=jnp.float32) + linb_ref[...]

        # S_0 = A @ x + x   (shared by every sublayer's first weight block)
        s0 = (jnp.einsum('bij,bjd->bid', adj, x3,
                         preferred_element_type=jnp.float32) + x3).reshape(B * N, MEM)
        s_list = []                                         # S_{j+1} = A @ g_j + g_j
        for l in range(num_sub):
            # AxW = W_l(Ax) + W_l(outputs) = (Ax + outputs) @ W_l^T + 2*b_l, block-decomposed
            y = jnp.dot(s0, wx_ref[l],
                        preferred_element_type=jnp.float32) + b2_ref[l]
            for j in range(l):
                gi = l * (l - 1) // 2 + j
                y = y + jnp.dot(s_list[j], wg_ref[gi],
                                preferred_element_type=jnp.float32)
            g2 = jnp.maximum(y * denom_inv2, 0.0)           # relu(AxW / denom), (B*N, hd)
            # contribution of g_l to the trailing Linear
            acc = acc + jnp.dot(g2, ling_ref[l], preferred_element_type=jnp.float32)
            if l + 1 < num_sub:
                g3 = g2.reshape(B, N, head_dim)
                s_list.append(
                    (jnp.einsum('bij,bjd->bid', adj, g3,
                                preferred_element_type=jnp.float32) + g3
                     ).reshape(B * N, head_dim))

        out_ref[...] = acc.reshape(B, N, MEM)

    return kernel


def _make_attn_multi_gcn_kernel(B, N, MEM, heads, num_sub, head_dim, dk):
    """Fused MultiHeadAttention + MultiGraphConvLayer; attention maps stay in VMEM."""
    scale = 1.0 / math.sqrt(dk)
    n_tri = num_sub * (num_sub - 1) // 2                    # g-blocks per head

    def kernel(x_ref, mask_ref, wq_ref, bq_ref, wk_ref, bk_ref,
               wx_ref, wg_ref, b2_ref, linx_ref, ling_ref, linb_ref, out_ref):
        x3 = x_ref[...]                                     # (B, N, MEM)
        x2 = x3.reshape(B * N, MEM)
        # mask_ref: (B, 1, N) float (1 = keep, 0 = masked); broadcast once, hoisted
        km = jnp.broadcast_to(mask_ref[...], (B, N, N))

        acc = jnp.dot(x2, linx_ref[...],
                      preferred_element_type=jnp.float32) + linb_ref[...]

        for h in range(heads):
            # ---- attention head h: softmax(masked(Q K^T / sqrt(dk))) ----
            qh = jnp.dot(x2, wq_ref[h], preferred_element_type=jnp.float32) + bq_ref[h]
            kh = jnp.dot(x2, wk_ref[h], preferred_element_type=jnp.float32) + bk_ref[h]
            scores = jnp.einsum('bnd,bmd->bnm',
                                qh.reshape(B, N, dk), kh.reshape(B, N, dk),
                                preferred_element_type=jnp.float32) * scale
            scores = jnp.where(km == 0.0, -1000000000.0, scores)   # masked_fill(mask==0, -1e9)
            scores = scores - jnp.max(scores, axis=-1, keepdims=True)
            e = jnp.exp(scores)
            attn = e * pl.reciprocal(jnp.sum(e, axis=-1, keepdims=True), approx=True)

            # ---- DCGCN sublayer chain on this head's attention adjacency ----
            denom_inv2 = pl.reciprocal(
                jnp.sum(attn, axis=-1, keepdims=True) + 1.0,
                approx=True).reshape(B * N, 1)
            s0 = (jnp.einsum('bij,bjd->bid', attn, x3,
                             preferred_element_type=jnp.float32) + x3).reshape(B * N, MEM)
            s_list = []
            for l in range(num_sub):
                wl = h * num_sub + l
                y = jnp.dot(s0, wx_ref[wl],
                            preferred_element_type=jnp.float32) + b2_ref[wl]
                for j in range(l):
                    gi = h * n_tri + l * (l - 1) // 2 + j
                    y = y + jnp.dot(s_list[j], wg_ref[gi],
                                    preferred_element_type=jnp.float32)
                g2 = jnp.maximum(y * denom_inv2, 0.0)
                acc = acc + jnp.dot(g2, ling_ref[wl],
                                    preferred_element_type=jnp.float32)
                if l + 1 < num_sub:
                    g3 = g2.reshape(B, N, head_dim)
                    s_list.append(
                        (jnp.einsum('bij,bjd->bid', attn, g3,
                                    preferred_element_type=jnp.float32) + g3
                         ).reshape(B * N, head_dim))

        out_ref[...] = acc.reshape(B, N, MEM)

    return kernel


def _make_aggregate_kernel(B, N, MEM, n_layers):
    """Fused aggregate_W Linear over concat(layer_list) without materializing the concat."""

    def kernel(*refs):
        # refs = (layer_0, ..., layer_{L-1}, wt_stack, bias, out_ref)
        wt_ref = refs[n_layers]
        b_ref = refs[n_layers + 1]
        out_ref = refs[-1]
        acc = jnp.dot(refs[0][...].reshape(B * N, MEM), wt_ref[0],
                      preferred_element_type=jnp.float32) + b_ref[...]
        for i in range(1, n_layers):
            acc = acc + jnp.dot(refs[i][...].reshape(B * N, MEM), wt_ref[i],
                                preferred_element_type=jnp.float32)
        out_ref[...] = acc.reshape(B, N, MEM)

    return kernel


# --------------------------------------------------------------------------
# Layer wrappers (one pallas_call each, no grid, whole-array blocks)
# --------------------------------------------------------------------------

def gcn_layer_forward(adj, x, lp):
    B, N, MEM = x.shape
    num_sub, _, head_dim = lp["wx"].shape
    kernel = _make_gcn_layer_kernel(B, N, MEM, num_sub, head_dim)
    return pl.pallas_call(
        kernel, out_shape=jax.ShapeDtypeStruct((B, N, MEM), jnp.float32),
    )(adj, x, lp["wx"], lp["wg"], lp["b2"], lp["linx"], lp["ling"], lp["linb"])


def attn_multi_gcn_forward(x, mask_f, ap, lp):
    B, N, MEM = x.shape
    heads, _, dk = ap["wq"].shape
    head_dim = lp["wx"].shape[2]
    num_sub = lp["wx"].shape[0] // heads
    kernel = _make_attn_multi_gcn_kernel(B, N, MEM, heads, num_sub, head_dim, dk)
    return pl.pallas_call(
        kernel, out_shape=jax.ShapeDtypeStruct((B, N, MEM), jnp.float32),
    )(x, mask_f, ap["wq"], ap["bq"], ap["wk"], ap["bk"],
      lp["wx"], lp["wg"], lp["b2"], lp["linx"], lp["ling"], lp["linb"])


def aggregate_forward(layer_outs, wt_stack, bias):
    B, N, MEM = layer_outs[0].shape
    n_layers = len(layer_outs)
    kernel = _make_aggregate_kernel(B, N, MEM, n_layers)
    return pl.pallas_call(
        kernel, out_shape=jax.ShapeDtypeStruct((B, N, MEM), jnp.float32),
    )(*layer_outs, wt_stack, bias)


def aggcn_forward(packed, adj, inputs, word_sample_mask):
    # in_drop == identity (eval)
    mask_f = (word_sample_mask != 0).astype(jnp.float32)[:, None, :]   # (B, 1, N)
    outputs = inputs
    layer_list = []
    for i, lp in enumerate(packed["layers"]):
        if i < 2:
            outputs = gcn_layer_forward(adj, outputs, lp)
        else:
            outputs = attn_multi_gcn_forward(outputs, mask_f, packed["attn"], lp)
        layer_list.append(outputs)
    dcgcn_output = aggregate_forward(layer_list, packed["agg_wt"], packed["agg_b"])
    mask = ((adj.sum(2) + adj.sum(1)) == 0)[..., None]                 # (B, N, 1) bool
    return dcgcn_output, mask


# --------------------------------------------------------------------------
# Parameter init (same shapes as the PyTorch module) + block packing
# --------------------------------------------------------------------------

def init_linear(key, din, dout, scale=0.1):
    kw, kb = jax.random.split(key)
    wt = scale * jax.random.normal(kw, (din, dout), jnp.float32)   # stored as W^T (in, out)
    b = scale * jax.random.normal(kb, (dout,), jnp.float32)
    return wt, b


def init_raw_params(key, mem_dim, sub_first, sub_second, heads, num_layers):
    counter = [0]

    def nk():
        counter[0] += 1
        return jax.random.fold_in(key, counter[0])

    layers = []
    for i in range(num_layers):
        for sub in (sub_first, sub_second):
            head_dim = mem_dim // sub
            if i == 0:
                subl = [init_linear(nk(), mem_dim + head_dim * l, head_dim) for l in range(sub)]
                lw, lb = init_linear(nk(), mem_dim, mem_dim)
                layers.append({"type": "gcn", "sub": subl, "lin_wt": lw, "lin_b": lb})
            else:
                subl = [
                    [init_linear(nk(), mem_dim + head_dim * l, head_dim) for l in range(sub)]
                    for _ in range(heads)
                ]
                lw, lb = init_linear(nk(), mem_dim * heads, mem_dim)
                layers.append({"type": "multi", "sub": subl, "lin_wt": lw, "lin_b": lb})
    agg_wt, agg_b = init_linear(nk(), len(layers) * mem_dim, mem_dim)
    wq_t, bq = init_linear(nk(), mem_dim, mem_dim)
    wk_t, bk = init_linear(nk(), mem_dim, mem_dim)
    return {"layers": layers, "agg_wt": agg_wt, "agg_b": agg_b,
            "attn": {"wq_t": wq_t, "bq": bq, "wk_t": wk_t, "bk": bk}}


def _pack_sublayer_blocks(sublayers, mem, head_dim):
    """Split each sublayer's W^T (mem + head_dim*l, head_dim) into dense blocks; 2*b biases."""
    wx = [wt[:mem, :] for wt, _ in sublayers]
    b2 = [2.0 * b.reshape(1, -1) for _, b in sublayers]
    wg = []
    for l, (wt, _) in enumerate(sublayers):
        for j in range(l):
            wg.append(wt[mem + j * head_dim: mem + (j + 1) * head_dim, :])
    return wx, wg, b2


def pack_params(raw, mem_dim, heads):
    layers = []
    for lp in raw["layers"]:
        lin_wt, lin_b = lp["lin_wt"], lp["lin_b"]
        if lp["type"] == "gcn":
            sub = lp["sub"]
            num_sub = len(sub)
            head_dim = mem_dim // num_sub
            wx, wg, b2 = _pack_sublayer_blocks(sub, mem_dim, head_dim)
            ling = [lin_wt[l * head_dim:(l + 1) * head_dim, :] for l in range(num_sub)]
            linx = lin_wt
        else:
            num_sub = len(lp["sub"][0])
            head_dim = mem_dim // num_sub
            wx, wg, b2, ling = [], [], [], []
            for h in range(heads):
                wxh, wgh, b2h = _pack_sublayer_blocks(lp["sub"][h], mem_dim, head_dim)
                wx += wxh
                wg += wgh
                b2 += b2h
                ling += [lin_wt[h * mem_dim + l * head_dim:
                                h * mem_dim + (l + 1) * head_dim, :]
                         for l in range(num_sub)]
            linx = sum(lin_wt[h * mem_dim:(h + 1) * mem_dim, :] for h in range(heads))
        if not wg:  # num_sub == 1: dummy block, never indexed in-kernel
            wg = [jnp.zeros((head_dim, head_dim), jnp.float32)]
        layers.append({"wx": jnp.stack(wx), "wg": jnp.stack(wg), "b2": jnp.stack(b2),
                       "linx": jnp.asarray(linx), "ling": jnp.stack(ling),
                       "linb": lin_b.reshape(1, -1)})

    dk = mem_dim // heads
    ap = raw["attn"]
    attn = {
        "wq": jnp.stack([ap["wq_t"][:, h * dk:(h + 1) * dk] for h in range(heads)]),
        "bq": jnp.stack([ap["bq"][h * dk:(h + 1) * dk].reshape(1, dk) for h in range(heads)]),
        "wk": jnp.stack([ap["wk_t"][:, h * dk:(h + 1) * dk] for h in range(heads)]),
        "bk": jnp.stack([ap["bk"][h * dk:(h + 1) * dk].reshape(1, dk) for h in range(heads)]),
    }
    n_layers = len(raw["layers"])
    agg_wt = jnp.stack([raw["agg_wt"][i * mem_dim:(i + 1) * mem_dim, :]
                        for i in range(n_layers)])
    return {"layers": layers, "attn": attn,
            "agg_wt": agg_wt, "agg_b": raw["agg_b"].reshape(1, -1)}


# --------------------------------------------------------------------------

if __name__ == "__main__":
    # opt = {hidden_dim: 24, num_layers: 2, heads: 3, sublayer_first: 2, sublayer_second: 4}
    B, N, MEM = 2, 8, 24
    HEADS, SUB1, SUB2, NUM_LAYERS = 3, 2, 4, 2

    key = jax.random.PRNGKey(0)
    k_adj, k_in, k_par = jax.random.split(key, 3)

    adj = (jax.random.uniform(k_adj, (B, N, N)) < 0.3).astype(jnp.float32)
    inputs = jax.random.normal(k_in, (B, N, MEM), jnp.float32)
    word_sample_mask = jnp.array(
        [[1, 1, 1, 1, 1, 1, 0, 0],
         [1, 1, 1, 1, 1, 1, 1, 1]], dtype=jnp.int32)

    raw_params = init_raw_params(k_par, MEM, SUB1, SUB2, HEADS, NUM_LAYERS)
    packed = pack_params(raw_params, MEM, HEADS)          # weight split/stack done once

    fwd = jax.jit(aggcn_forward)
    dcgcn_output, out_mask = fwd(packed, adj, inputs, word_sample_mask)
    jax.block_until_ready(dcgcn_output)
    jax.block_until_ready(out_mask)

    assert dcgcn_output.shape == (B, N, MEM)
    assert out_mask.shape == (B, N, 1)
    print("KERNEL_OK")
</pallas_src>

<mosaic_0001>
module attributes {stable_mosaic.version = 11 : i64} {
  func.func @kernel(%arg0: memref<2x8x8xf32, #tpu.memory_space<vmem>>, %arg1: memref<2x8x24xf32, #tpu.memory_space<vmem>>, %arg2: memref<2x24x12xf32, #tpu.memory_space<vmem>>, %arg3: memref<1x12x12xf32, #tpu.memory_space<vmem>>, %arg4: memref<2x1x12xf32, #tpu.memory_space<vmem>>, %arg5: memref<24x24xf32, #tpu.memory_space<vmem>>, %arg6: memref<2x12x24xf32, #tpu.memory_space<vmem>>, %arg7: memref<1x24xf32, #tpu.memory_space<vmem>>, %arg8: memref<2x8x24xf32, #tpu.memory_space<vmem>>) attributes {dimension_semantics = [], scalar_prefetch = 0 : i64, scratch_operands = 0 : i64, tpu.core_type = #tpu.core_type<tc>} {
    %c0 = arith.constant 0 : index
    %c0_0 = arith.constant 0 : index
    %c0_1 = arith.constant 0 : index
    %0 = vector.load %arg0[%c0, %c0_0, %c0_1] : memref<2x8x8xf32, #tpu.memory_space<vmem>>, vector<2x8x8xf32>
    %c0_2 = arith.constant 0 : index
    %c0_3 = arith.constant 0 : index
    %c0_4 = arith.constant 0 : index
    %1 = vector.load %arg1[%c0_2, %c0_3, %c0_4] : memref<2x8x24xf32, #tpu.memory_space<vmem>>, vector<2x8x24xf32>
    %2 = vector.shape_cast %1 : vector<2x8x24xf32> to vector<16x24xf32>
    %cst = arith.constant dense<0.000000e+00> : vector<2x8xf32>
    %3 = vector.multi_reduction <add>, %0, %cst [2] : vector<2x8x8xf32> to vector<2x8xf32>
    %4 = vector.shape_cast %3 : vector<2x8xf32> to vector<2x8x1xf32>
    %cst_5 = arith.constant 1.000000e+00 : f32
    %5 = vector.broadcast %cst_5 : f32 to vector<2x8x1xf32>
    %6 = arith.addf %4, %5 : vector<2x8x1xf32>
    %7 = tpu.reciprocal %6 {approx = true} : vector<2x8x1xf32> -> vector<2x8x1xf32>
    %8 = vector.shape_cast %7 : vector<2x8x1xf32> to vector<16x1xf32>
    %c0_6 = arith.constant 0 : index
    %c0_7 = arith.constant 0 : index
    %9 = vector.load %arg5[%c0_6, %c0_7] : memref<24x24xf32, #tpu.memory_space<vmem>>, vector<24x24xf32>
    %cst_8 = arith.constant dense<0.000000e+00> : vector<16x24xf32>
    %10 = tpu.matmul %2, %9, %cst_8 {dimension_numbers = #tpu.dot_dimension_numbers<[1], [0], [0], [1], [0, 0, 1, 1], [], []>} : vector<16x24xf32>, vector<24x24xf32>, vector<16x24xf32> -> vector<16x24xf32>
    %c0_9 = arith.constant 0 : index
    %c0_10 = arith.constant 0 : index
    %11 = vector.load %arg7[%c0_9, %c0_10] : memref<1x24xf32, #tpu.memory_space<vmem>>, vector<1x24xf32>
    %12 = vector.broadcast %11 : vector<1x24xf32> to vector<16x24xf32>
    %13 = arith.addf %10, %12 : vector<16x24xf32>
    "tpu.trace_start"() <{level = 10 : i32, message = "bij,bjd->bid"}> : () -> ()
    %cst_11 = arith.constant dense<0.000000e+00> : vector<2x8x24xf32>
    %14 = tpu.matmul %0, %1, %cst_11 {dimension_numbers = #tpu.dot_dimension_numbers<[2], [1], [1], [2], [0, 0, 0, 1, 1, 2], [0], [0]>} : vector<2x8x8xf32>, vector<2x8x24xf32>, vector<2x8x24xf32> -> vector<2x8x24xf32>
    "tpu.trace_stop"() : () -> ()
    %15 = arith.addf %14, %1 : vector<2x8x24xf32>
    %16 = vector.shape_cast %15 : vector<2x8x24xf32> to vector<16x24xf32>
    %c0_12 = arith.constant 0 : index
    %c0_13 = arith.constant 0 : index
    %c0_14 = arith.constant 0 : index
    %17 = vector.load %arg2[%c0_12, %c0_13, %c0_14] : memref<2x24x12xf32, #tpu.memory_space<vmem>>, vector<1x24x12xf32>
    %18 = vector.shape_cast %17 : vector<1x24x12xf32> to vector<24x12xf32>
    %cst_15 = arith.constant dense<0.000000e+00> : vector<16x12xf32>
    %19 = tpu.matmul %16, %18, %cst_15 {dimension_numbers = #tpu.dot_dimension_numbers<[1], [0], [0], [1], [0, 0, 1, 1], [], []>} : vector<16x24xf32>, vector<24x12xf32>, vector<16x12xf32> -> vector<16x12xf32>
    %c0_16 = arith.constant 0 : index
    %c0_17 = arith.constant 0 : index
    %c0_18 = arith.constant 0 : index
    %20 = vector.load %arg4[%c0_16, %c0_17, %c0_18] : memref<2x1x12xf32, #tpu.memory_space<vmem>>, vector<1x1x12xf32>
    %21 = vector.shape_cast %20 : vector<1x1x12xf32> to vector<1x12xf32>
    %22 = vector.broadcast %21 : vector<1x12xf32> to vector<16x12xf32>
    %23 = arith.addf %19, %22 : vector<16x12xf32>
    %24 = vector.broadcast %8 : vector<16x1xf32> to vector<16x12xf32>
    %25 = arith.mulf %23, %24 : vector<16x12xf32>
    %cst_19 = arith.constant 0.000000e+00 : f32
    %26 = vector.broadcast %cst_19 : f32 to vector<16x12xf32>
    %27 = arith.maximumf %25, %26 : vector<16x12xf32>
    %c0_20 = arith.constant 0 : index
    %c0_21 = arith.constant 0 : index
    %c0_22 = arith.constant 0 : index
    %28 = vector.load %arg6[%c0_20, %c0_21, %c0_22] : memref<2x12x24xf32, #tpu.memory_space<vmem>>, vector<1x12x24xf32>
    %29 = vector.shape_cast %28 : vector<1x12x24xf32> to vector<12x24xf32>
    %cst_23 = arith.constant dense<0.000000e+00> : vector<16x24xf32>
    %30 = tpu.matmul %27, %29, %cst_23 {dimension_numbers = #tpu.dot_dimension_numbers<[1], [0], [0], [1], [0, 0, 1, 1], [], []>} : vector<16x12xf32>, vector<12x24xf32>, vector<16x24xf32> -> vector<16x24xf32>
    %31 = arith.addf %13, %30 : vector<16x24xf32>
    %32 = vector.shape_cast %27 : vector<16x12xf32> to vector<2x8x12xf32>
    "tpu.trace_start"() <{level = 10 : i32, message = "bij,bjd->bid"}> : () -> ()
    %cst_24 = arith.constant dense<0.000000e+00> : vector<2x8x12xf32>
    %33 = tpu.matmul %0, %32, %cst_24 {dimension_numbers = #tpu.dot_dimension_numbers<[2], [1], [1], [2], [0, 0, 0, 1, 1, 2], [0], [0]>} : vector<2x8x8xf32>, vector<2x8x12xf32>, vector<2x8x12xf32> -> vector<2x8x12xf32>
    "tpu.trace_stop"() : () -> ()
    %34 = arith.addf %33, %32 : vector<2x8x12xf32>
    %35 = vector.shape_cast %34 : vector<2x8x12xf32> to vector<16x12xf32>
    %c1 = arith.constant 1 : index
    %c0_25 = arith.constant 0 : index
    %c0_26 = arith.constant 0 : index
    %36 = vector.load %arg2[%c1, %c0_25, %c0_26] : memref<2x24x12xf32, #tpu.memory_space<vmem>>, vector<1x24x12xf32>
    %37 = vector.shape_cast %36 : vector<1x24x12xf32> to vector<24x12xf32>
    %cst_27 = arith.constant dense<0.000000e+00> : vector<16x12xf32>
    %38 = tpu.matmul %16, %37, %cst_27 {dimension_numbers = #tpu.dot_dimension_numbers<[1], [0], [0], [1], [0, 0, 1, 1], [], []>} : vector<16x24xf32>, vector<24x12xf32>, vector<16x12xf32> -> vector<16x12xf32>
    %c1_28 = arith.constant 1 : index
    %c0_29 = arith.constant 0 : index
    %c0_30 = arith.constant 0 : index
    %39 = vector.load %arg4[%c1_28, %c0_29, %c0_30] : memref<2x1x12xf32, #tpu.memory_space<vmem>>, vector<1x1x12xf32>
    %40 = vector.shape_cast %39 : vector<1x1x12xf32> to vector<1x12xf32>
    %41 = vector.broadcast %40 : vector<1x12xf32> to vector<16x12xf32>
    %42 = arith.addf %38, %41 : vector<16x12xf32>
    %c0_31 = arith.constant 0 : index
    %c0_32 = arith.constant 0 : index
    %c0_33 = arith.constant 0 : index
    %43 = vector.load %arg3[%c0_31, %c0_32, %c0_33] : memref<1x12x12xf32, #tpu.memory_space<vmem>>, vector<1x12x12xf32>
    %44 = vector.shape_cast %43 : vector<1x12x12xf32> to vector<12x12xf32>
    %cst_34 = arith.constant dense<0.000000e+00> : vector<16x12xf32>
    %45 = tpu.matmul %35, %44, %cst_34 {dimension_numbers = #tpu.dot_dimension_numbers<[1], [0], [0], [1], [0, 0, 1, 1], [], []>} : vector<16x12xf32>, vector<12x12xf32>, vector<16x12xf32> -> vector<16x12xf32>
    %46 = arith.addf %42, %45 : vector<16x12xf32>
    %47 = vector.broadcast %8 : vector<16x1xf32> to vector<16x12xf32>
    %48 = arith.mulf %46, %47 : vector<16x12xf32>
    %cst_35 = arith.constant 0.000000e+00 : f32
    %49 = vector.broadcast %cst_35 : f32 to vector<16x12xf32>
    %50 = arith.maximumf %48, %49 : vector<16x12xf32>
    %c1_36 = arith.constant 1 : index
    %c0_37 = arith.constant 0 : index
    %c0_38 = arith.constant 0 : index
    %51 = vector.load %arg6[%c1_36, %c0_37, %c0_38] : memref<2x12x24xf32, #tpu.memory_space<vmem>>, vector<1x12x24xf32>
    %52 = vector.shape_cast %51 : vector<1x12x24xf32> to vector<12x24xf32>
    %cst_39 = arith.constant dense<0.000000e+00> : vector<16x24xf32>
    %53 = tpu.matmul %50, %52, %cst_39 {dimension_numbers = #tpu.dot_dimension_numbers<[1], [0], [0], [1], [0, 0, 1, 1], [], []>} : vector<16x12xf32>, vector<12x24xf32>, vector<16x24xf32> -> vector<16x24xf32>
    %54 = arith.addf %31, %53 : vector<16x24xf32>
    %55 = vector.shape_cast %54 : vector<16x24xf32> to vector<2x8x24xf32>
    %c0_40 = arith.constant 0 : index
    %c0_41 = arith.constant 0 : index
    %c0_42 = arith.constant 0 : index
    %56 = vector.load %arg8[%c0_40, %c0_41, %c0_42] : memref<2x8x24xf32, #tpu.memory_space<vmem>>, vector<2x8x24xf32>
    tpu.vector_store %arg8[%c0_40, %c0_41, %c0_42], %55 {strides = array<i32>} : memref<2x8x24xf32, #tpu.memory_space<vmem>>, vector<2x8x24xf32>,
    return
  }
}

module attributes {stable_mosaic.version = 11 : i64} {
  func.func @kernel(%arg0: memref<2x8x8xf32, #tpu.memory_space<vmem>>, %arg1: memref<2x8x24xf32, #tpu.memory_space<vmem>>, %arg2: memref<4x24x6xf32, #tpu.memory_space<vmem>>, %arg3: memref<6x6x6xf32, #tpu.memory_space<vmem>>, %arg4: memref<4x1x6xf32, #tpu.memory_space<vmem>>, %arg5: memref<24x24xf32, #tpu.memory_space<vmem>>, %arg6: memref<4x6x24xf32, #tpu.memory_space<vmem>>, %arg7: memref<1x24xf32, #tpu.memory_space<vmem>>, %arg8: memref<2x8x24xf32, #tpu.memory_space<vmem>>) attributes {dimension_semantics = [], scalar_prefetch = 0 : i64, scratch_operands = 0 : i64, tpu.core_type = #tpu.core_type<tc>} {
    %c0 = arith.constant 0 : index
    %c0_0 = arith.constant 0 : index
    %c0_1 = arith.constant 0 : index
    %0 = vector.load %arg0[%c0, %c0_0, %c0_1] : memref<2x8x8xf32, #tpu.memory_space<vmem>>, vector<2x8x8xf32>
    %c0_2 = arith.constant 0 : index
    %c0_3 = arith.constant 0 : index
    %c0_4 = arith.constant 0 : index
    %1 = vector.load %arg1[%c0_2, %c0_3, %c0_4] : memref<2x8x24xf32, #tpu.memory_space<vmem>>, vector<2x8x24xf32>
    %2 = vector.shape_cast %1 : vector<2x8x24xf32> to vector<16x24xf32>
    %cst = arith.constant dense<0.000000e+00> : vector<2x8xf32>
    %3 = vector.multi_reduction <add>, %0, %cst [2] : vector<2x8x8xf32> to vector<2x8xf32>
    %4 = vector.shape_cast %3 : vector<2x8xf32> to vector<2x8x1xf32>
    %cst_5 = arith.constant 1.000000e+00 : f32
    %5 = vector.broadcast %cst_5 : f32 to vector<2x8x1xf32>
    %6 = arith.addf %4, %5 : vector<2x8x1xf32>
    %7 = tpu.reciprocal %6 {approx = true} : vector<2x8x1xf32> -> vector<2x8x1xf32>
    %8 = vector.shape_cast %7 : vector<2x8x1xf32> to vector<16x1xf32>
    %c0_6 = arith.constant 0 : index
    %c0_7 = arith.constant 0 : index
    %9 = vector.load %arg5[%c0_6, %c0_7] : memref<24x24xf32, #tpu.memory_space<vmem>>, vector<24x24xf32>
    %cst_8 = arith.constant dense<0.000000e+00> : vector<16x24xf32>
    %10 = tpu.matmul %2, %9, %cst_8 {dimension_numbers = #tpu.dot_dimension_numbers<[1], [0], [0], [1], [0, 0, 1, 1], [], []>} : vector<16x24xf32>, vector<24x24xf32>, vector<16x24xf32> -> vector<16x24xf32>
    %c0_9 = arith.constant 0 : index
    %c0_10 = arith.constant 0 : index
    %11 = vector.load %arg7[%c0_9, %c0_10] : memref<1x24xf32, #tpu.memory_space<vmem>>, vector<1x24xf32>
    %12 = vector.broadcast %11 : vector<1x24xf32> to vector<16x24xf32>
    %13 = arith.addf %10, %12 : vector<16x24xf32>
    "tpu.trace_start"() <{level = 10 : i32, message = "bij,bjd->bid"}> : () -> ()
    %cst_11 = arith.constant dense<0.000000e+00> : vector<2x8x24xf32>
    %14 = tpu.matmul %0, %1, %cst_11 {dimension_numbers = #tpu.dot_dimension_numbers<[2], [1], [1], [2], [0, 0, 0, 1, 1, 2], [0], [0]>} : vector<2x8x8xf32>, vector<2x8x24xf32>, vector<2x8x24xf32> -> vector<2x8x24xf32>
    "tpu.trace_stop"() : () -> ()
    %15 = arith.addf %14, %1 : vector<2x8x24xf32>
    %16 = vector.shape_cast %15 : vector<2x8x24xf32> to vector<16x24xf32>
    %c0_12 = arith.constant 0 : index
    %c0_13 = arith.constant 0 : index
    %c0_14 = arith.constant 0 : index
    %17 = vector.load %arg2[%c0_12, %c0_13, %c0_14] : memref<4x24x6xf32, #tpu.memory_space<vmem>>, vector<1x24x6xf32>
    %18 = vector.shape_cast %17 : vector<1x24x6xf32> to vector<24x6xf32>
    %cst_15 = arith.constant dense<0.000000e+00> : vector<16x6xf32>
    %19 = tpu.matmul %16, %18, %cst_15 {dimension_numbers = #tpu.dot_dimension_numbers<[1], [0], [0], [1], [0, 0, 1, 1], [], []>} : vector<16x24xf32>, vector<24x6xf32>, vector<16x6xf32> -> vector<16x6xf32>
    %c0_16 = arith.constant 0 : index
    %c0_17 = arith.constant 0 : index
    %c0_18 = arith.constant 0 : index
    %20 = vector.load %arg4[%c0_16, %c0_17, %c0_18] : memref<4x1x6xf32, #tpu.memory_space<vmem>>, vector<1x1x6xf32>
    %21 = vector.shape_cast %20 : vector<1x1x6xf32> to vector<1x6xf32>
    %22 = vector.broadcast %21 : vector<1x6xf32> to vector<16x6xf32>
    %23 = arith.addf %19, %22 : vector<16x6xf32>
    %24 = vector.broadcast %8 : vector<16x1xf32> to vector<16x6xf32>
    %25 = arith.mulf %23, %24 : vector<16x6xf32>
    %cst_19 = arith.constant 0.000000e+00 : f32
    %26 = vector.broadcast %cst_19 : f32 to vector<16x6xf32>
    %27 = arith.maximumf %25, %26 : vector<16x6xf32>
    %c0_20 = arith.constant 0 : index
    %c0_21 = arith.constant 0 : index
    %c0_22 = arith.constant 0 : index
    %28 = vector.load %arg6[%c0_20, %c0_21, %c0_22] : memref<4x6x24xf32, #tpu.memory_space<vmem>>, vector<1x6x24xf32>
    %29 = vector.shape_cast %28 : vector<1x6x24xf32> to vector<6x24xf32>
    %cst_23 = arith.constant dense<0.000000e+00> : vector<16x24xf32>
    %30 = tpu.matmul %27, %29, %cst_23 {dimension_numbers = #tpu.dot_dimension_numbers<[1], [0], [0], [1], [0, 0, 1, 1], [], []>} : vector<16x6xf32>, vector<6x24xf32>, vector<16x24xf32> -> vector<16x24xf32>
    %31 = arith.addf %13, %30 : vector<16x24xf32>
    %32 = vector.shape_cast %27 : vector<16x6xf32> to vector<2x8x6xf32>
    "tpu.trace_start"() <{level = 10 : i32, message = "bij,bjd->bid"}> : () -> ()
    %cst_24 = arith.constant dense<0.000000e+00> : vector<2x8x6xf32>
    %33 = tpu.matmul %0, %32, %cst_24 {dimension_numbers = #tpu.dot_dimension_numbers<[2], [1], [1], [2], [0, 0, 0, 1, 1, 2], [0], [0]>} : vector<2x8x8xf32>, vector<2x8x6xf32>, vector<2x8x6xf32> -> vector<2x8x6xf32>
    "tpu.trace_stop"() : () -> ()
    %34 = arith.addf %33, %32 : vector<2x8x6xf32>
    %35 = vector.shape_cast %34 : vector<2x8x6xf32> to vector<16x6xf32>
    %c1 = arith.constant 1 : index
    %c0_25 = arith.constant 0 : index
    %c0_26 = arith.constant 0 : index
    %36 = vector.load %arg2[%c1, %c0_25, %c0_26] : memref<4x24x6xf32, #tpu.memory_space<vmem>>, vector<1x24x6xf32>
    %37 = vector.shape_cast %36 : vector<1x24x6xf32> to vector<24x6xf32>
    %cst_27 = arith.constant dense<0.000000e+00> : vector<16x6xf32>
    %38 = tpu.matmul %16, %37, %cst_27 {dimension_numbers = #tpu.dot_dimension_numbers<[1], [0], [0], [1], [0, 0, 1, 1], [], []>} : vector<16x24xf32>, vector<24x6xf32>, vector<16x6xf32> -> vector<16x6xf32>
    %c1_28 = arith.constant 1 : index
    %c0_29 = arith.constant 0 : index
    %c0_30 = arith.constant 0 : index
    %39 = vector.load %arg4[%c1_28, %c0_29, %c0_30] : memref<4x1x6xf32, #tpu.memory_space<vmem>>, vector<1x1x6xf32>
    %40 = vector.shape_cast %39 : vector<1x1x6xf32> to vector<1x6xf32>
    %41 = vector.broadcast %40 : vector<1x6xf32> to vector<16x6xf32>
    %42 = arith.addf %38, %41 : vector<16x6xf32>
    %c0_31 = arith.constant 0 : index
    %c0_32 = arith.constant 0 : index
    %c0_33 = arith.constant 0 : index
    %43 = vector.load %arg3[%c0_31, %c0_32, %c0_33] : memref<6x6x6xf32, #tpu.memory_space<vmem>>, vector<1x6x6xf32>
    %44 = vector.shape_cast %43 : vector<1x6x6xf32> to vector<6x6xf32>
    %cst_34 = arith.constant dense<0.000000e+00> : vector<16x6xf32>
    %45 = tpu.matmul %35, %44, %cst_34 {dimension_numbers = #tpu.dot_dimension_numbers<[1], [0], [0], [1], [0, 0, 1, 1], [], []>} : vector<16x6xf32>, vector<6x6xf32>, vector<16x6xf32> -> vector<16x6xf32>
    %46 = arith.addf %42, %45 : vector<16x6xf32>
    %47 = vector.broadcast %8 : vector<16x1xf32> to vector<16x6xf32>
    %48 = arith.mulf %46, %47 : vector<16x6xf32>
    %cst_35 = arith.constant 0.000000e+00 : f32
    %49 = vector.broadcast %cst_35 : f32 to vector<16x6xf32>
    %50 = arith.maximumf %48, %49 : vector<16x6xf32>
    %c1_36 = arith.constant 1 : index
    %c0_37 = arith.constant 0 : index
    %c0_38 = arith.constant 0 : index
    %51 = vector.load %arg6[%c1_36, %c0_37, %c0_38] : memref<4x6x24xf32, #tpu.memory_space<vmem>>, vector<1x6x24xf32>
    %52 = vector.shape_cast %51 : vector<1x6x24xf32> to vector<6x24xf32>
    %cst_39 = arith.constant dense<0.000000e+00> : vector<16x24xf32>
    %53 = tpu.matmul %50, %52, %cst_39 {dimension_numbers = #tpu.dot_dimension_numbers<[1], [0], [0], [1], [0, 0, 1, 1], [], []>} : vector<16x6xf32>, vector<6x24xf32>, vector<16x24xf32> -> vector<16x24xf32>
    %54 = arith.addf %31, %53 : vector<16x24xf32>
    %55 = vector.shape_cast %50 : vector<16x6xf32> to vector<2x8x6xf32>
    "tpu.trace_start"() <{level = 10 : i32, message = "bij,bjd->bid"}> : () -> ()
    %cst_40 = arith.constant dense<0.000000e+00> : vector<2x8x6xf32>
    %56 = tpu.matmul %0, %55, %cst_40 {dimension_numbers = #tpu.dot_dimension_numbers<[2], [1], [1], [2], [0, 0, 0, 1, 1, 2], [0], [0]>} : vector<2x8x8xf32>, vector<2x8x6xf32>, vector<2x8x6xf32> -> vector<2x8x6xf32>
    "tpu.trace_stop"() : () -> ()
    %57 = arith.addf %56, %55 : vector<2x8x6xf32>
    %58 = vector.shape_cast %57 : vector<2x8x6xf32> to vector<16x6xf32>
    %c2 = arith.constant 2 : index
    %c0_41 = arith.constant 0 : index
    %c0_42 = arith.constant 0 : index
    %59 = vector.load %arg2[%c2, %c0_41, %c0_42] : memref<4x24x6xf32, #tpu.memory_space<vmem>>, vector<1x24x6xf32>
    %60 = vector.shape_cast %59 : vector<1x24x6xf32> to vector<24x6xf32>
    %cst_43 = arith.constant dense<0.000000e+00> : vector<16x6xf32>
    %61 = tpu.matmul %16, %60, %cst_43 {dimension_numbers = #tpu.dot_dimension_numbers<[1], [0], [0], [1], [0, 0, 1, 1], [], []>} : vector<16x24xf32>, vector<24x6xf32>, vector<16x6xf32> -> vector<16x6xf32>
    %c2_44 = arith.constant 2 : index
    %c0_45 = arith.constant 0 : index
    %c0_46 = arith.constant 0 : index
    %62 = vector.load %arg4[%c2_44, %c0_45, %c0_46] : memref<4x1x6xf32, #tpu.memory_space<vmem>>, vector<1x1x6xf32>
    %63 = vector.shape_cast %62 : vector<1x1x6xf32> to vector<1x6xf32>
    %64 = vector.broadcast %63 : vector<1x6xf32> to vector<16x6xf32>
    %65 = arith.addf %61, %64 : vector<16x6xf32>
    %c1_47 = arith.constant 1 : index
    %c0_48 = arith.constant 0 : index
    %c0_49 = arith.constant 0 : index
    %66 = vector.load %arg3[%c1_47, %c0_48, %c0_49] : memref<6x6x6xf32, #tpu.memory_space<vmem>>, vector<1x6x6xf32>
    %67 = vector.shape_cast %66 : vector<1x6x6xf32> to vector<6x6xf32>
    %cst_50 = arith.constant dense<0.000000e+00> : vector<16x6xf32>
    %68 = tpu.matmul %35, %67, %cst_50 {dimension_numbers = #tpu.dot_dimension_numbers<[1], [0], [0], [1], [0, 0, 1, 1], [], []>} : vector<16x6xf32>, vector<6x6xf32>, vector<16x6xf32> -> vector<16x6xf32>
    %69 = arith.addf %65, %68 : vector<16x6xf32>
    %c2_51 = arith.constant 2 : index
    %c0_52 = arith.constant 0 : index
    %c0_53 = arith.constant 0 : index
    %70 = vector.load %arg3[%c2_51, %c0_52, %c0_53] : memref<6x6x6xf32, #tpu.memory_space<vmem>>, vector<1x6x6xf32>
    %71 = vector.shape_cast %70 : vector<1x6x6xf32> to vector<6x6xf32>
    %cst_54 = arith.constant dense<0.000000e+00> : vector<16x6xf32>
    %72 = tpu.matmul %58, %71, %cst_54 {dimension_numbers = #tpu.dot_dimension_numbers<[1], [0], [0], [1], [0, 0, 1, 1], [], []>} : vector<16x6xf32>, vector<6x6xf32>, vector<16x6xf32> -> vector<16x6xf32>
    %73 = arith.addf %69, %72 : vector<16x6xf32>
    %74 = vector.broadcast %8 : vector<16x1xf32> to vector<16x6xf32>
    %75 = arith.mulf %73, %74 : vector<16x6xf32>
    %cst_55 = arith.constant 0.000000e+00 : f32
    %76 = vector.broadcast %cst_55 : f32 to vector<16x6xf32>
    %77 = arith.maximumf %75, %76 : vector<16x6xf32>
    %c2_56 = arith.constant 2 : index
    %c0_57 = arith.constant 0 : index
    %c0_58 = arith.constant 0 : index
    %78 = vector.load %arg6[%c2_56, %c0_57, %c0_58] : memref<4x6x24xf32, #tpu.memory_space<vmem>>, vector<1x6x24xf32>
    %79 = vector.shape_cast %78 : vector<1x6x24xf32> to vector<6x24xf32>
    %cst_59 = arith.constant dense<0.000000e+00> : vector<16x24xf32>
    %80 = tpu.matmul %77, %79, %cst_59 {dimension_numbers = #tpu.dot_dimension_numbers<[1], [0], [0], [1], [0, 0, 1, 1], [], []>} : vector<16x6xf32>, vector<6x24xf32>, vector<16x24xf32> -> vector<16x24xf32>
    %81 = arith.addf %54, %80 : vector<16x24xf32>
    %82 = vector.shape_cast %77 : vector<16x6xf32> to vector<2x8x6xf32>
    "tpu.trace_start"() <{level = 10 : i32, message = "bij,bjd->bid"}> : () -> ()
    %cst_60 = arith.constant dense<0.000000e+00> : vector<2x8x6xf32>
    %83 = tpu.matmul %0, %82, %cst_60 {dimension_numbers = #tpu.dot_dimension_numbers<[2], [1], [1], [2], [0, 0, 0, 1, 1, 2], [0], [0]>} : vector<2x8x8xf32>, vector<2x8x6xf32>, vector<2x8x6xf32> -> vector<2x8x6xf32>
    "tpu.trace_stop"() : () -> ()
    %84 = arith.addf %83, %82 : vector<2x8x6xf32>
    %85 = vector.shape_cast %84 : vector<2x8x6xf32> to vector<16x6xf32>
    %c3 = arith.constant 3 : index
    %c0_61 = arith.constant 0 : index
    %c0_62 = arith.constant 0 : index
    %86 = vector.load %arg2[%c3, %c0_61, %c0_62] : memref<4x24x6xf32, #tpu.memory_space<vmem>>, vector<1x24x6xf32>
    %87 = vector.shape_cast %86 : vector<1x24x6xf32> to vector<24x6xf32>
    %cst_63 = arith.constant dense<0.000000e+00> : vector<16x6xf32>
    %88 = tpu.matmul %16, %87, %cst_63 {dimension_numbers = #tpu.dot_dimension_numbers<[1], [0], [0], [1], [0, 0, 1, 1], [], []>} : vector<16x24xf32>, vector<24x6xf32>, vector<16x6xf32> -> vector<16x6xf32>
    %c3_64 = arith.constant 3 : index
    %c0_65 = arith.constant 0 : index
    %c0_66 = arith.constant 0 : index
    %89 = vector.load %arg4[%c3_64, %c0_65, %c0_66] : memref<4x1x6xf32, #tpu.memory_space<vmem>>, vector<1x1x6xf32>
    %90 = vector.shape_cast %89 : vector<1x1x6xf32> to vector<1x6xf32>
    %91 = vector.broadcast %90 : vector<1x6xf32> to vector<16x6xf32>
    %92 = arith.addf %88, %91 : vector<16x6xf32>
    %c3_67 = arith.constant 3 : index
    %c0_68 = arith.constant 0 : index
    %c0_69 = arith.constant 0 : index
    %93 = vector.load %arg3[%c3_67, %c0_68, %c0_69] : memref<6x6x6xf32, #tpu.memory_space<vmem>>, vector<1x6x6xf32>
    %94 = vector.shape_cast %93 : vector<1x6x6xf32> to vector<6x6xf32>
    %cst_70 = arith.constant dense<0.000000e+00> : vector<16x6xf32>
    %95 = tpu.matmul %35, %94, %cst_70 {dimension_numbers = #tpu.dot_dimension_numbers<[1], [0], [0], [1], [0, 0, 1, 1], [], []>} : vector<16x6xf32>, vector<6x6xf32>, vector<16x6xf32> -> vector<16x6xf32>
    %96 = arith.addf %92, %95 : vector<16x6xf32>
    %c4 = arith.constant 4 : index
    %c0_71 = arith.constant 0 : index
    %c0_72 = arith.constant 0 : index
    %97 = vector.load %arg3[%c4, %c0_71, %c0_72] : memref<6x6x6xf32, #tpu.memory_space<vmem>>, vector<1x6x6xf32>
    %98 = vector.shape_cast %97 : vector<1x6x6xf32> to vector<6x6xf32>
    %cst_73 = arith.constant dense<0.000000e+00> : vector<16x6xf32>
    %99 = tpu.matmul %58, %98, %cst_73 {dimension_numbers = #tpu.dot_dimension_numbers<[1], [0], [0], [1], [0, 0, 1, 1], [], []>} : vector<16x6xf32>, vector<6x6xf32>, vector<16x6xf32> -> vector<16x6xf32>
    %100 = arith.addf %96, %99 : vector<16x6xf32>
    %c5 = arith.constant 5 : index
    %c0_74 = arith.constant 0 : index
    %c0_75 = arith.constant 0 : index
    %101 = vector.load %arg3[%c5, %c0_74, %c0_75] : memref<6x6x6xf32, #tpu.memory_space<vmem>>, vector<1x6x6xf32>
    %102 = vector.shape_cast %101 : vector<1x6x6xf32> to vector<6x6xf32>
    %cst_76 = arith.constant dense<0.000000e+00> : vector<16x6xf32>
    %103 = tpu.matmul %85, %102, %cst_76 {dimension_numbers = #tpu.dot_dimension_numbers<[1], [0], [0], [1], [0, 0, 1, 1], [], []>} : vector<16x6xf32>, vector<6x6xf32>, vector<16x6xf32> -> vector<16x6xf32>
    %104 = arith.addf %100, %103 : vector<16x6xf32>
    %105 = vector.broadcast %8 : vector<16x1xf32> to vector<16x6xf32>
    %106 = arith.mulf %104, %105 : vector<16x6xf32>
    %cst_77 = arith.constant 0.000000e+00 : f32
    %107 = vector.broadcast %cst_77 : f32 to vector<16x6xf32>
    %108 = arith.maximumf %106, %107 : vector<16x6xf32>
    %c3_78 = arith.constant 3 : index
    %c0_79 = arith.constant 0 : index
    %c0_80 = arith.constant 0 : index
    %109 = vector.load %arg6[%c3_78, %c0_79, %c0_80] : memref<4x6x24xf32, #tpu.memory_space<vmem>>, vector<1x6x24xf32>
    %110 = vector.shape_cast %109 : vector<1x6x24xf32> to vector<6x24xf32>
    %cst_81 = arith.constant dense<0.000000e+00> : vector<16x24xf32>
    %111 = tpu.matmul %108, %110, %cst_81 {dimension_numbers = #tpu.dot_dimension_numbers<[1], [0], [0], [1], [0, 0, 1, 1], [], []>} : vector<16x6xf32>, vector<6x24xf32>, vector<16x24xf32> -> vector<16x24xf32>
    %112 = arith.addf %81, %111 : vector<16x24xf32>
    %113 = vector.shape_cast %112 : vector<16x24xf32> to vector<2x8x24xf32>
    %c0_82 = arith.constant 0 : index
    %c0_83 = arith.constant 0 : index
    %c0_84 = arith.constant 0 : index
    %114 = vector.load %arg8[%c0_82, %c0_83, %c0_84] : memref<2x8x24xf32, #tpu.memory_space<vmem>>, vector<2x8x24xf32>
    tpu.vector_store %arg8[%c0_82, %c0_83, %c0_84], %113 {strides = array<i32>} : memref<2x8x24xf32, #tpu.memory_space<vmem>>, vector<2x8x24xf32>,
    return
  }
}

module attributes {stable_mosaic.version = 11 : i64} {
  func.func @kernel(%arg0: memref<2x8x24xf32, #tpu.memory_space<vmem>>, %arg1: memref<2x1x8xf32, #tpu.memory_space<vmem>>, %arg2: memref<3x24x8xf32, #tpu.memory_space<vmem>>, %arg3: memref<3x1x8xf32, #tpu.memory_space<vmem>>, %arg4: memref<3x24x8xf32, #tpu.memory_space<vmem>>, %arg5: memref<3x1x8xf32, #tpu.memory_space<vmem>>, %arg6: memref<6x24x12xf32, #tpu.memory_space<vmem>>, %arg7: memref<3x12x12xf32, #tpu.memory_space<vmem>>, %arg8: memref<6x1x12xf32, #tpu.memory_space<vmem>>, %arg9: memref<24x24xf32, #tpu.memory_space<vmem>>, %arg10: memref<6x12x24xf32, #tpu.memory_space<vmem>>, %arg11: memref<1x24xf32, #tpu.memory_space<vmem>>, %arg12: memref<2x8x24xf32, #tpu.memory_space<vmem>>) attributes {dimension_semantics = [], scalar_prefetch = 0 : i64, scratch_operands = 0 : i64, tpu.core_type = #tpu.core_type<tc>} {
    %c0 = arith.constant 0 : index
    %c0_0 = arith.constant 0 : index
    %c0_1 = arith.constant 0 : index
    %0 = vector.load %arg0[%c0, %c0_0, %c0_1] : memref<2x8x24xf32, #tpu.memory_space<vmem>>, vector<2x8x24xf32>
    %1 = vector.shape_cast %0 : vector<2x8x24xf32> to vector<16x24xf32>
    %c0_2 = arith.constant 0 : index
    %c0_3 = arith.constant 0 : index
    %c0_4 = arith.constant 0 : index
    %2 = vector.load %arg1[%c0_2, %c0_3, %c0_4] : memref<2x1x8xf32, #tpu.memory_space<vmem>>, vector<2x1x8xf32>
    %3 = vector.shape_cast %2 : vector<2x1x8xf32> to vector<2x1x8xf32>
    %4 = vector.broadcast %3 : vector<2x1x8xf32> to vector<2x8x8xf32>
    %c0_5 = arith.constant 0 : index
    %c0_6 = arith.constant 0 : index
    %5 = vector.load %arg9[%c0_5, %c0_6] : memref<24x24xf32, #tpu.memory_space<vmem>>, vector<24x24xf32>
    %cst = arith.constant dense<0.000000e+00> : vector<16x24xf32>
    %6 = tpu.matmul %1, %5, %cst {dimension_numbers = #tpu.dot_dimension_numbers<[1], [0], [0], [1], [0, 0, 1, 1], [], []>} : vector<16x24xf32>, vector<24x24xf32>, vector<16x24xf32> -> vector<16x24xf32>
    %c0_7 = arith.constant 0 : index
    %c0_8 = arith.constant 0 : index
    %7 = vector.load %arg11[%c0_7, %c0_8] : memref<1x24xf32, #tpu.memory_space<vmem>>, vector<1x24xf32>
    %8 = vector.broadcast %7 : vector<1x24xf32> to vector<16x24xf32>
    %9 = arith.addf %6, %8 : vector<16x24xf32>
    %c0_9 = arith.constant 0 : index
    %c0_10 = arith.constant 0 : index
    %c0_11 = arith.constant 0 : index
    %10 = vector.load %arg2[%c0_9, %c0_10, %c0_11] : memref<3x24x8xf32, #tpu.memory_space<vmem>>, vector<1x24x8xf32>
    %11 = vector.shape_cast %10 : vector<1x24x8xf32> to vector<24x8xf32>
    %cst_12 = arith.constant dense<0.000000e+00> : vector<16x8xf32>
    %12 = tpu.matmul %1, %11, %cst_12 {dimension_numbers = #tpu.dot_dimension_numbers<[1], [0], [0], [1], [0, 0, 1, 1], [], []>} : vector<16x24xf32>, vector<24x8xf32>, vector<16x8xf32> -> vector<16x8xf32>
    %c0_13 = arith.constant 0 : index
    %c0_14 = arith.constant 0 : index
    %c0_15 = arith.constant 0 : index
    %13 = vector.load %arg3[%c0_13, %c0_14, %c0_15] : memref<3x1x8xf32, #tpu.memory_space<vmem>>, vector<1x1x8xf32>
    %14 = vector.shape_cast %13 : vector<1x1x8xf32> to vector<1x8xf32>
    %15 = vector.broadcast %14 : vector<1x8xf32> to vector<16x8xf32>
    %16 = arith.addf %12, %15 : vector<16x8xf32>
    %c0_16 = arith.constant 0 : index
    %c0_17 = arith.constant 0 : index
    %c0_18 = arith.constant 0 : index
    %17 = vector.load %arg4[%c0_16, %c0_17, %c0_18] : memref<3x24x8xf32, #tpu.memory_space<vmem>>, vector<1x24x8xf32>
    %18 = vector.shape_cast %17 : vector<1x24x8xf32> to vector<24x8xf32>
    %cst_19 = arith.constant dense<0.000000e+00> : vector<16x8xf32>
    %19 = tpu.matmul %1, %18, %cst_19 {dimension_numbers = #tpu.dot_dimension_numbers<[1], [0], [0], [1], [0, 0, 1, 1], [], []>} : vector<16x24xf32>, vector<24x8xf32>, vector<16x8xf32> -> vector<16x8xf32>
    %c0_20 = arith.constant 0 : index
    %c0_21 = arith.constant 0 : index
    %c0_22 = arith.constant 0 : index
    %20 = vector.load %arg5[%c0_20, %c0_21, %c0_22] : memref<3x1x8xf32, #tpu.memory_space<vmem>>, vector<1x1x8xf32>
    %21 = vector.shape_cast %20 : vector<1x1x8xf32> to vector<1x8xf32>
    %22 = vector.broadcast %21 : vector<1x8xf32> to vector<16x8xf32>
    %23 = arith.addf %19, %22 : vector<16x8xf32>
    %24 = vector.shape_cast %16 : vector<16x8xf32> to vector<2x8x8xf32>
    %25 = vector.shape_cast %23 : vector<16x8xf32> to vector<2x8x8xf32>
    "tpu.trace_start"() <{level = 10 : i32, message = "bnd,bmd->bnm"}> : () -> ()
    %cst_23 = arith.constant dense<0.000000e+00> : vector<2x8x8xf32>
    %26 = tpu.matmul %24, %25, %cst_23 {dimension_numbers = #tpu.dot_dimension_numbers<[2], [2], [1], [1], [0, 0, 0, 1, 1, 1], [0], [0]>} : vector<2x8x8xf32>, vector<2x8x8xf32>, vector<2x8x8xf32> -> vector<2x8x8xf32>
    "tpu.trace_stop"() : () -> ()
    %cst_24 = arith.constant 0.353553385 : f32
    %27 = vector.broadcast %cst_24 : f32 to vector<2x8x8xf32>
    %28 = arith.mulf %26, %27 : vector<2x8x8xf32>
    %cst_25 = arith.constant 0.000000e+00 : f32
    %29 = vector.broadcast %cst_25 : f32 to vector<2x8x8xf32>
    %30 = arith.cmpf oeq, %4, %29 : vector<2x8x8xf32>
    %cst_26 = arith.constant -1.000000e+09 : f32
    %31 = vector.broadcast %cst_26 : f32 to vector<2x8x8xf32>
    %32 = arith.select %30, %31, %28 : vector<2x8x8xi1>, vector<2x8x8xf32>
    %cst_27 = arith.constant dense<0xFF800000> : vector<2x8xf32>
    %33 = vector.multi_reduction <maximumf>, %32, %cst_27 [2] : vector<2x8x8xf32> to vector<2x8xf32>
    %34 = vector.shape_cast %33 : vector<2x8xf32> to vector<2x8x1xf32>
    %35 = vector.broadcast %34 : vector<2x8x1xf32> to vector<2x8x8xf32>
    %36 = arith.subf %32, %35 : vector<2x8x8xf32>
    %37 = math.exp %36 : vector<2x8x8xf32>
    %cst_28 = arith.constant dense<0.000000e+00> : vector<2x8xf32>
    %38 = vector.multi_reduction <add>, %37, %cst_28 [2] : vector<2x8x8xf32> to vector<2x8xf32>
    %39 = vector.shape_cast %38 : vector<2x8xf32> to vector<2x8x1xf32>
    %40 = tpu.reciprocal %39 {approx = true} : vector<2x8x1xf32> -> vector<2x8x1xf32>
    %41 = vector.broadcast %40 : vector<2x8x1xf32> to vector<2x8x8xf32>
    %42 = arith.mulf %37, %41 : vector<2x8x8xf32>
    %cst_29 = arith.constant dense<0.000000e+00> : vector<2x8xf32>
    %43 = vector.multi_reduction <add>, %42, %cst_29 [2] : vector<2x8x8xf32> to vector<2x8xf32>
    %44 = vector.shape_cast %43 : vector<2x8xf32> to vector<2x8x1xf32>
    %cst_30 = arith.constant 1.000000e+00 : f32
    %45 = vector.broadcast %cst_30 : f32 to vector<2x8x1xf32>
    %46 = arith.addf %44, %45 : vector<2x8x1xf32>
    %47 = tpu.reciprocal %46 {approx = true} : vector<2x8x1xf32> -> vector<2x8x1xf32>
    %48 = vector.shape_cast %47 : vector<2x8x1xf32> to vector<16x1xf32>
    "tpu.trace_start"() <{level = 10 : i32, message = "bij,bjd->bid"}> : () -> ()
    %cst_31 = arith.constant dense<0.000000e+00> : vector<2x8x24xf32>
    %49 = tpu.matmul %42, %0, %cst_31 {dimension_numbers = #tpu.dot_dimension_numbers<[2], [1], [1], [2], [0, 0, 0, 1, 1, 2], [0], [0]>} : vector<2x8x8xf32>, vector<2x8x24xf32>, vector<2x8x24xf32> -> vector<2x8x24xf32>
    "tpu.trace_stop"() : () -> ()
    %50 = arith.addf %49, %0 : vector<2x8x24xf32>
    %51 = vector.shape_cast %50 : vector<2x8x24xf32> to vector<16x24xf32>
    %c0_32 = arith.constant 0 : index
    %c0_33 = arith.constant 0 : index
    %c0_34 = arith.constant 0 : index
    %52 = vector.load %arg6[%c0_32, %c0_33, %c0_34] : memref<6x24x12xf32, #tpu.memory_space<vmem>>, vector<1x24x12xf32>
    %53 = vector.shape_cast %52 : vector<1x24x12xf32> to vector<24x12xf32>
    %cst_35 = arith.constant dense<0.000000e+00> : vector<16x12xf32>
    %54 = tpu.matmul %51, %53, %cst_35 {dimension_numbers = #tpu.dot_dimension_numbers<[1], [0], [0], [1], [0, 0, 1, 1], [], []>} : vector<16x24xf32>, vector<24x12xf32>, vector<16x12xf32> -> vector<16x12xf32>
    %c0_36 = arith.constant 0 : index
    %c0_37 = arith.constant 0 : index
    %c0_38 = arith.constant 0 : index
    %55 = vector.load %arg8[%c0_36, %c0_37, %c0_38] : memref<6x1x12xf32, #tpu.memory_space<vmem>>, vector<1x1x12xf32>
    %56 = vector.shape_cast %55 : vector<1x1x12xf32> to vector<1x12xf32>
    %57 = vector.broadcast %56 : vector<1x12xf32> to vector<16x12xf32>
    %58 = arith.addf %54, %57 : vector<16x12xf32>
    %59 = vector.broadcast %48 : vector<16x1xf32> to vector<16x12xf32>
    %60 = arith.mulf %58, %59 : vector<16x12xf32>
    %cst_39 = arith.constant 0.000000e+00 : f32
    %61 = vector.broadcast %cst_39 : f32 to vector<16x12xf32>
    %62 = arith.maximumf %60, %61 : vector<16x12xf32>
    %c0_40 = arith.constant 0 : index
    %c0_41 = arith.constant 0 : index
    %c0_42 = arith.constant 0 : index
    %63 = vector.load %arg10[%c0_40, %c0_41, %c0_42] : memref<6x12x24xf32, #tpu.memory_space<vmem>>, vector<1x12x24xf32>
    %64 = vector.shape_cast %63 : vector<1x12x24xf32> to vector<12x24xf32>
    %cst_43 = arith.constant dense<0.000000e+00> : vector<16x24xf32>
    %65 = tpu.matmul %62, %64, %cst_43 {dimension_numbers = #tpu.dot_dimension_numbers<[1], [0], [0], [1], [0, 0, 1, 1], [], []>} : vector<16x12xf32>, vector<12x24xf32>, vector<16x24xf32> -> vector<16x24xf32>
    %66 = arith.addf %9, %65 : vector<16x24xf32>
    %67 = vector.shape_cast %62 : vector<16x12xf32> to vector<2x8x12xf32>
    "tpu.trace_start"() <{level = 10 : i32, message = "bij,bjd->bid"}> : () -> ()
    %cst_44 = arith.constant dense<0.000000e+00> : vector<2x8x12xf32>
    %68 = tpu.matmul %42, %67, %cst_44 {dimension_numbers = #tpu.dot_dimension_numbers<[2], [1], [1], [2], [0, 0, 0, 1, 1, 2], [0], [0]>} : vector<2x8x8xf32>, vector<2x8x12xf32>, vector<2x8x12xf32> -> vector<2x8x12xf32>
    "tpu.trace_stop"() : () -> ()
    %69 = arith.addf %68, %67 : vector<2x8x12xf32>
    %70 = vector.shape_cast %69 : vector<2x8x12xf32> to vector<16x12xf32>
    %c1 = arith.constant 1 : index
    %c0_45 = arith.constant 0 : index
    %c0_46 = arith.constant 0 : index
    %71 = vector.load %arg6[%c1, %c0_45, %c0_46] : memref<6x24x12xf32, #tpu.memory_space<vmem>>, vector<1x24x12xf32>
    %72 = vector.shape_cast %71 : vector<1x24x12xf32> to vector<24x12xf32>
    %cst_47 = arith.constant dense<0.000000e+00> : vector<16x12xf32>
    %73 = tpu.matmul %51, %72, %cst_47 {dimension_numbers = #tpu.dot_dimension_numbers<[1], [0], [0], [1], [0, 0, 1, 1], [], []>} : vector<16x24xf32>, vector<24x12xf32>, vector<16x12xf32> -> vector<16x12xf32>
    %c1_48 = arith.constant 1 : index
    %c0_49 = arith.constant 0 : index
    %c0_50 = arith.constant 0 : index
    %74 = vector.load %arg8[%c1_48, %c0_49, %c0_50] : memref<6x1x12xf32, #tpu.memory_space<vmem>>, vector<1x1x12xf32>
    %75 = vector.shape_cast %74 : vector<1x1x12xf32> to vector<1x12xf32>
    %76 = vector.broadcast %75 : vector<1x12xf32> to vector<16x12xf32>
    %77 = arith.addf %73, %76 : vector<16x12xf32>
    %c0_51 = arith.constant 0 : index
    %c0_52 = arith.constant 0 : index
    %c0_53 = arith.constant 0 : index
    %78 = vector.load %arg7[%c0_51, %c0_52, %c0_53] : memref<3x12x12xf32, #tpu.memory_space<vmem>>, vector<1x12x12xf32>
    %79 = vector.shape_cast %78 : vector<1x12x12xf32> to vector<12x12xf32>
    %cst_54 = arith.constant dense<0.000000e+00> : vector<16x12xf32>
    %80 = tpu.matmul %70, %79, %cst_54 {dimension_numbers = #tpu.dot_dimension_numbers<[1], [0], [0], [1], [0, 0, 1, 1], [], []>} : vector<16x12xf32>, vector<12x12xf32>, vector<16x12xf32> -> vector<16x12xf32>
    %81 = arith.addf %77, %80 : vector<16x12xf32>
    %82 = vector.broadcast %48 : vector<16x1xf32> to vector<16x12xf32>
    %83 = arith.mulf %81, %82 : vector<16x12xf32>
    %cst_55 = arith.constant 0.000000e+00 : f32
    %84 = vector.broadcast %cst_55 : f32 to vector<16x12xf32>
    %85 = arith.maximumf %83, %84 : vector<16x12xf32>
    %c1_56 = arith.constant 1 : index
    %c0_57 = arith.constant 0 : index
    %c0_58 = arith.constant 0 : index
    %86 = vector.load %arg10[%c1_56, %c0_57, %c0_58] : memref<6x12x24xf32, #tpu.memory_space<vmem>>, vector<1x12x24xf32>
    %87 = vector.shape_cast %86 : vector<1x12x24xf32> to vector<12x24xf32>
    %cst_59 = arith.constant dense<0.000000e+00> : vector<16x24xf32>
    %88 = tpu.matmul %85, %87, %cst_59 {dimension_numbers = #tpu.dot_dimension_numbers<[1], [0], [0], [1], [0, 0, 1, 1], [], []>} : vector<16x12xf32>, vector<12x24xf32>, vector<16x24xf32> -> vector<16x24xf32>
    %89 = arith.addf %66, %88 : vector<16x24xf32>
    %c1_60 = arith.constant 1 : index
    %c0_61 = arith.constant 0 : index
    %c0_62 = arith.constant 0 : index
    %90 = vector.load %arg2[%c1_60, %c0_61, %c0_62] : memref<3x24x8xf32, #tpu.memory_space<vmem>>, vector<1x24x8xf32>
    %91 = vector.shape_cast %90 : vector<1x24x8xf32> to vector<24x8xf32>
    %cst_63 = arith.constant dense<0.000000e+00> : vector<16x8xf32>
    %92 = tpu.matmul %1, %91, %cst_63 {dimension_numbers = #tpu.dot_dimension_numbers<[1], [0], [0], [1], [0, 0, 1, 1], [], []>} : vector<16x24xf32>, vector<24x8xf32>, vector<16x8xf32> -> vector<16x8xf32>
    %c1_64 = arith.constant 1 : index
    %c0_65 = arith.constant 0 : index
    %c0_66 = arith.constant 0 : index
    %93 = vector.load %arg3[%c1_64, %c0_65, %c0_66] : memref<3x1x8xf32, #tpu.memory_space<vmem>>, vector<1x1x8xf32>
    %94 = vector.shape_cast %93 : vector<1x1x8xf32> to vector<1x8xf32>
    %95 = vector.broadcast %94 : vector<1x8xf32> to vector<16x8xf32>
    %96 = arith.addf %92, %95 : vector<16x8xf32>
    %c1_67 = arith.constant 1 : index
    %c0_68 = arith.constant 0 : index
    %c0_69 = arith.constant 0 : index
    %97 = vector.load %arg4[%c1_67, %c0_68, %c0_69] : memref<3x24x8xf32, #tpu.memory_space<vmem>>, vector<1x24x8xf32>
    %98 = vector.shape_cast %97 : vector<1x24x8xf32> to vector<24x8xf32>
    %cst_70 = arith.constant dense<0.000000e+00> : vector<16x8xf32>
    %99 = tpu.matmul %1, %98, %cst_70 {dimension_numbers = #tpu.dot_dimension_numbers<[1], [0], [0], [1], [0, 0, 1, 1], [], []>} : vector<16x24xf32>, vector<24x8xf32>, vector<16x8xf32> -> vector<16x8xf32>
    %c1_71 = arith.constant 1 : index
    %c0_72 = arith.constant 0 : index
    %c0_73 = arith.constant 0 : index
    %100 = vector.load %arg5[%c1_71, %c0_72, %c0_73] : memref<3x1x8xf32, #tpu.memory_space<vmem>>, vector<1x1x8xf32>
    %101 = vector.shape_cast %100 : vector<1x1x8xf32> to vector<1x8xf32>
    %102 = vector.broadcast %101 : vector<1x8xf32> to vector<16x8xf32>
    %103 = arith.addf %99, %102 : vector<16x8xf32>
    %104 = vector.shape_cast %96 : vector<16x8xf32> to vector<2x8x8xf32>
    %105 = vector.shape_cast %103 : vector<16x8xf32> to vector<2x8x8xf32>
    "tpu.trace_start"() <{level = 10 : i32, message = "bnd,bmd->bnm"}> : () -> ()
    %cst_74 = arith.constant dense<0.000000e+00> : vector<2x8x8xf32>
    %106 = tpu.matmul %104, %105, %cst_74 {dimension_numbers = #tpu.dot_dimension_numbers<[2], [2], [1], [1], [0, 0, 0, 1, 1, 1], [0], [0]>} : vector<2x8x8xf32>, vector<2x8x8xf32>, vector<2x8x8xf32> -> vector<2x8x8xf32>
    "tpu.trace_stop"() : () -> ()
    %cst_75 = arith.constant 0.353553385 : f32
    %107 = vector.broadcast %cst_75 : f32 to vector<2x8x8xf32>
    %108 = arith.mulf %106, %107 : vector<2x8x8xf32>
    %cst_76 = arith.constant 0.000000e+00 : f32
    %109 = vector.broadcast %cst_76 : f32 to vector<2x8x8xf32>
    %110 = arith.cmpf oeq, %4, %109 : vector<2x8x8xf32>
    %cst_77 = arith.constant -1.000000e+09 : f32
    %111 = vector.broadcast %cst_77 : f32 to vector<2x8x8xf32>
    %112 = arith.select %110, %111, %108 : vector<2x8x8xi1>, vector<2x8x8xf32>
    %cst_78 = arith.constant dense<0xFF800000> : vector<2x8xf32>
    %113 = vector.multi_reduction <maximumf>, %112, %cst_78 [2] : vector<2x8x8xf32> to vector<2x8xf32>
    %114 = vector.shape_cast %113 : vector<2x8xf32> to vector<2x8x1xf32>
    %115 = vector.broadcast %114 : vector<2x8x1xf32> to vector<2x8x8xf32>
    %116 = arith.subf %112, %115 : vector<2x8x8xf32>
    %117 = math.exp %116 : vector<2x8x8xf32>
    %cst_79 = arith.constant dense<0.000000e+00> : vector<2x8xf32>
    %118 = vector.multi_reduction <add>, %117, %cst_79 [2] : vector<2x8x8xf32> to vector<2x8xf32>
    %119 = vector.shape_cast %118 : vector<2x8xf32> to vector<2x8x1xf32>
    %120 = tpu.reciprocal %119 {approx = true} : vector<2x8x1xf32> -> vector<2x8x1xf32>
    %121 = vector.broadcast %120 : vector<2x8x1xf32> to vector<2x8x8xf32>
    %122 = arith.mulf %117, %121 : vector<2x8x8xf32>
    %cst_80 = arith.constant dense<0.000000e+00> : vector<2x8xf32>
    %123 = vector.multi_reduction <add>, %122, %cst_80 [2] : vector<2x8x8xf32> to vector<2x8xf32>
    %124 = vector.shape_cast %123 : vector<2x8xf32> to vector<2x8x1xf32>
    %cst_81 = arith.constant 1.000000e+00 : f32
    %125 = vector.broadcast %cst_81 : f32 to vector<2x8x1xf32>
    %126 = arith.addf %124, %125 : vector<2x8x1xf32>
    %127 = tpu.reciprocal %126 {approx = true} : vector<2x8x1xf32> -> vector<2x8x1xf32>
    %128 = vector.shape_cast %127 : vector<2x8x1xf32> to vector<16x1xf32>
    "tpu.trace_start"() <{level = 10 : i32, message = "bij,bjd->bid"}> : () -> ()
    %cst_82 = arith.constant dense<0.000000e+00> : vector<2x8x24xf32>
    %129 = tpu.matmul %122, %0, %cst_82 {dimension_numbers = #tpu.dot_dimension_numbers<[2], [1], [1], [2], [0, 0, 0, 1, 1, 2], [0], [0]>} : vector<2x8x8xf32>, vector<2x8x24xf32>, vector<2x8x24xf32> -> vector<2x8x24xf32>
    "tpu.trace_stop"() : () -> ()
    %130 = arith.addf %129, %0 : vector<2x8x24xf32>
    %131 = vector.shape_cast %130 : vector<2x8x24xf32> to vector<16x24xf32>
    %c2 = arith.constant 2 : index
    %c0_83 = arith.constant 0 : index
    %c0_84 = arith.constant 0 : index
    %132 = vector.load %arg6[%c2, %c0_83, %c0_84] : memref<6x24x12xf32, #tpu.memory_space<vmem>>, vector<1x24x12xf32>
    %133 = vector.shape_cast %132 : vector<1x24x12xf32> to vector<24x12xf32>
    %cst_85 = arith.constant dense<0.000000e+00> : vector<16x12xf32>
    %134 = tpu.matmul %131, %133, %cst_85 {dimension_numbers = #tpu.dot_dimension_numbers<[1], [0], [0], [1], [0, 0, 1, 1], [], []>} : vector<16x24xf32>, vector<24x12xf32>, vector<16x12xf32> -> vector<16x12xf32>
    %c2_86 = arith.constant 2 : index
    %c0_87 = arith.constant 0 : index
    %c0_88 = arith.constant 0 : index
    %135 = vector.load %arg8[%c2_86, %c0_87, %c0_88] : memref<6x1x12xf32, #tpu.memory_space<vmem>>, vector<1x1x12xf32>
    %136 = vector.shape_cast %135 : vector<1x1x12xf32> to vector<1x12xf32>
    %137 = vector.broadcast %136 : vector<1x12xf32> to vector<16x12xf32>
    %138 = arith.addf %134, %137 : vector<16x12xf32>
    %139 = vector.broadcast %128 : vector<16x1xf32> to vector<16x12xf32>
    %140 = arith.mulf %138, %139 : vector<16x12xf32>
    %cst_89 = arith.constant 0.000000e+00 : f32
    %141 = vector.broadcast %cst_89 : f32 to vector<16x12xf32>
    %142 = arith.maximumf %140, %141 : vector<16x12xf32>
    %c2_90 = arith.constant 2 : index
    %c0_91 = arith.constant 0 : index
    %c0_92 = arith.constant 0 : index
    %143 = vector.load %arg10[%c2_90, %c0_91, %c0_92] : memref<6x12x24xf32, #tpu.memory_space<vmem>>, vector<1x12x24xf32>
    %144 = vector.shape_cast %143 : vector<1x12x24xf32> to vector<12x24xf32>
    %cst_93 = arith.constant dense<0.000000e+00> : vector<16x24xf32>
    %145 = tpu.matmul %142, %144, %cst_93 {dimension_numbers = #tpu.dot_dimension_numbers<[1], [0], [0], [1], [0, 0, 1, 1], [], []>} : vector<16x12xf32>, vector<12x24xf32>, vector<16x24xf32> -> vector<16x24xf32>
    %146 = arith.addf %89, %145 : vector<16x24xf32>
    %147 = vector.shape_cast %142 : vector<16x12xf32> to vector<2x8x12xf32>
    "tpu.trace_start"() <{level = 10 : i32, message = "bij,bjd->bid"}> : () -> ()
    %cst_94 = arith.constant dense<0.000000e+00> : vector<2x8x12xf32>
    %148 = tpu.matmul %122, %147, %cst_94 {dimension_numbers = #tpu.dot_dimension_numbers<[2], [1], [1], [2], [0, 0, 0, 1, 1, 2], [0], [0]>} : vector<2x8x8xf32>, vector<2x8x12xf32>, vector<2x8x12xf32> -> vector<2x8x12xf32>
    "tpu.trace_stop"() : () -> ()
    %149 = arith.addf %148, %147 : vector<2x8x12xf32>
    %150 = vector.shape_cast %149 : vector<2x8x12xf32> to vector<16x12xf32>
    %c3 = arith.constant 3 : index
    %c0_95 = arith.constant 0 : index
    %c0_96 = arith.constant 0 : index
    %151 = vector.load %arg6[%c3, %c0_95, %c0_96] : memref<6x24x12xf32, #tpu.memory_space<vmem>>, vector<1x24x12xf32>
    %152 = vector.shape_cast %151 : vector<1x24x12xf32> to vector<24x12xf32>
    %cst_97 = arith.constant dense<0.000000e+00> : vector<16x12xf32>
    %153 = tpu.matmul %131, %152, %cst_97 {dimension_numbers = #tpu.dot_dimension_numbers<[1], [0], [0], [1], [0, 0, 1, 1], [], []>} : vector<16x24xf32>, vector<24x12xf32>, vector<16x12xf32> -> vector<16x12xf32>
    %c3_98 = arith.constant 3 : index
    %c0_99 = arith.constant 0 : index
    %c0_100 = arith.constant 0 : index
    %154 = vector.load %arg8[%c3_98, %c0_99, %c0_100] : memref<6x1x12xf32, #tpu.memory_space<vmem>>, vector<1x1x12xf32>
    %155 = vector.shape_cast %154 : vector<1x1x12xf32> to vector<1x12xf32>
    %156 = vector.broadcast %155 : vector<1x12xf32> to vector<16x12xf32>
    %157 = arith.addf %153, %156 : vector<16x12xf32>
    %c1_101 = arith.constant 1 : index
    %c0_102 = arith.constant 0 : index
    %c0_103 = arith.constant 0 : index
    %158 = vector.load %arg7[%c1_101, %c0_102, %c0_103] : memref<3x12x12xf32, #tpu.memory_space<vmem>>, vector<1x12x12xf32>
    %159 = vector.shape_cast %158 : vector<1x12x12xf32> to vector<12x12xf32>
    %cst_104 = arith.constant dense<0.000000e+00> : vector<16x12xf32>
    %160 = tpu.matmul %150, %159, %cst_104 {dimension_numbers = #tpu.dot_dimension_numbers<[1], [0], [0], [1], [0, 0, 1, 1], [], []>} : vector<16x12xf32>, vector<12x12xf32>, vector<16x12xf32> -> vector<16x12xf32>
    %161 = arith.addf %157, %160 : vector<16x12xf32>
    %162 = vector.broadcast %128 : vector<16x1xf32> to vector<16x12xf32>
    %163 = arith.mulf %161, %162 : vector<16x12xf32>
    %cst_105 = arith.constant 0.000000e+00 : f32
    %164 = vector.broadcast %cst_105 : f32 to vector<16x12xf32>
    %165 = arith.maximumf %163, %164 : vector<16x12xf32>
    %c3_106 = arith.constant 3 : index
    %c0_107 = arith.constant 0 : index
    %c0_108 = arith.constant 0 : index
    %166 = vector.load %arg10[%c3_106, %c0_107, %c0_108] : memref<6x12x24xf32, #tpu.memory_space<vmem>>, vector<1x12x24xf32>
    %167 = vector.shape_cast %166 : vector<1x12x24xf32> to vector<12x24xf32>
    %cst_109 = arith.constant dense<0.000000e+00> : vector<16x24xf32>
    %168 = tpu.matmul %165, %167, %cst_109 {dimension_numbers = #tpu.dot_dimension_numbers<[1], [0], [0], [1], [0, 0, 1, 1], [], []>} : vector<16x12xf32>, vector<12x24xf32>, vector<16x24xf32> -> vector<16x24xf32>
    %169 = arith.addf %146, %168 : vector<16x24xf32>
    %c2_110 = arith.constant 2 : index
    %c0_111 = arith.constant 0 : index
    %c0_112 = arith.constant 0 : index
    %170 = vector.load %arg2[%c2_110, %c0_111, %c0_112] : memref<3x24x8xf32, #tpu.memory_space<vmem>>, vector<1x24x8xf32>
    %171 = vector.shape_cast %170 : vector<1x24x8xf32> to vector<24x8xf32>
    %cst_113 = arith.constant dense<0.000000e+00> : vector<16x8xf32>
    %172 = tpu.matmul %1, %171, %cst_113 {dimension_numbers = #tpu.dot_dimension_numbers<[1], [0], [0], [1], [0, 0, 1, 1], [], []>} : vector<16x24xf32>, vector<24x8xf32>, vector<16x8xf32> -> vector<16x8xf32>
    %c2_114 = arith.constant 2 : index
    %c0_115 = arith.constant 0 : index
    %c0_116 = arith.constant 0 : index
    %173 = vector.load %arg3[%c2_114, %c0_115, %c0_116] : memref<3x1x8xf32, #tpu.memory_space<vmem>>, vector<1x1x8xf32>
    %174 = vector.shape_cast %173 : vector<1x1x8xf32> to vector<1x8xf32>
    %175 = vector.broadcast %174 : vector<1x8xf32> to vector<16x8xf32>
    %176 = arith.addf %172, %175 : vector<16x8xf32>
    %c2_117 = arith.constant 2 : index
    %c0_118 = arith.constant 0 : index
    %c0_119 = arith.constant 0 : index
    %177 = vector.load %arg4[%c2_117, %c0_118, %c0_119] : memref<3x24x8xf32, #tpu.memory_space<vmem>>, vector<1x24x8xf32>
    %178 = vector.shape_cast %177 : vector<1x24x8xf32> to vector<24x8xf32>
    %cst_120 = arith.constant dense<0.000000e+00> : vector<16x8xf32>
    %179 = tpu.matmul %1, %178, %cst_120 {dimension_numbers = #tpu.dot_dimension_numbers<[1], [0], [0], [1], [0, 0, 1, 1], [], []>} : vector<16x24xf32>, vector<24x8xf32>, vector<16x8xf32> -> vector<16x8xf32>
    %c2_121 = arith.constant 2 : index
    %c0_122 = arith.constant 0 : index
    %c0_123 = arith.constant 0 : index
    %180 = vector.load %arg5[%c2_121, %c0_122, %c0_123] : memref<3x1x8xf32, #tpu.memory_space<vmem>>, vector<1x1x8xf32>
    %181 = vector.shape_cast %180 : vector<1x1x8xf32> to vector<1x8xf32>
    %182 = vector.broadcast %181 : vector<1x8xf32> to vector<16x8xf32>
    %183 = arith.addf %179, %182 : vector<16x8xf32>
    %184 = vector.shape_cast %176 : vector<16x8xf32> to vector<2x8x8xf32>
    %185 = vector.shape_cast %183 : vector<16x8xf32> to vector<2x8x8xf32>
    "tpu.trace_start"() <{level = 10 : i32, message = "bnd,bmd->bnm"}> : () -> ()
    %cst_124 = arith.constant dense<0.000000e+00> : vector<2x8x8xf32>
    %186 = tpu.matmul %184, %185, %cst_124 {dimension_numbers = #tpu.dot_dimension_numbers<[2], [2], [1], [1], [0, 0, 0, 1, 1, 1], [0], [0]>} : vector<2x8x8xf32>, vector<2x8x8xf32>, vector<2x8x8xf32> -> vector<2x8x8xf32>
    "tpu.trace_stop"() : () -> ()
    %cst_125 = arith.constant 0.353553385 : f32
    %187 = vector.broadcast %cst_125 : f32 to vector<2x8x8xf32>
    %188 = arith.mulf %186, %187 : vector<2x8x8xf32>
    %cst_126 = arith.constant 0.000000e+00 : f32
    %189 = vector.broadcast %cst_126 : f32 to vector<2x8x8xf32>
    %190 = arith.cmpf oeq, %4, %189 : vector<2x8x8xf32>
    %cst_127 = arith.constant -1.000000e+09 : f32
    %191 = vector.broadcast %cst_127 : f32 to vector<2x8x8xf32>
    %192 = arith.select %190, %191, %188 : vector<2x8x8xi1>, vector<2x8x8xf32>
    %cst_128 = arith.constant dense<0xFF800000> : vector<2x8xf32>
    %193 = vector.multi_reduction <maximumf>, %192, %cst_128 [2] : vector<2x8x8xf32> to vector<2x8xf32>
    %194 = vector.shape_cast %193 : vector<2x8xf32> to vector<2x8x1xf32>
    %195 = vector.broadcast %194 : vector<2x8x1xf32> to vector<2x8x8xf32>
    %196 = arith.subf %192, %195 : vector<2x8x8xf32>
    %197 = math.exp %196 : vector<2x8x8xf32>
    %cst_129 = arith.constant dense<0.000000e+00> : vector<2x8xf32>
    %198 = vector.multi_reduction <add>, %197, %cst_129 [2] : vector<2x8x8xf32> to vector<2x8xf32>
    %199 = vector.shape_cast %198 : vector<2x8xf32> to vector<2x8x1xf32>
    %200 = tpu.reciprocal %199 {approx = true} : vector<2x8x1xf32> -> vector<2x8x1xf32>
    %201 = vector.broadcast %200 : vector<2x8x1xf32> to vector<2x8x8xf32>
    %202 = arith.mulf %197, %201 : vector<2x8x8xf32>
    %cst_130 = arith.constant dense<0.000000e+00> : vector<2x8xf32>
    %203 = vector.multi_reduction <add>, %202, %cst_130 [2] : vector<2x8x8xf32> to vector<2x8xf32>
    %204 = vector.shape_cast %203 : vector<2x8xf32> to vector<2x8x1xf32>
    %cst_131 = arith.constant 1.000000e+00 : f32
    %205 = vector.broadcast %cst_131 : f32 to vector<2x8x1xf32>
    %206 = arith.addf %204, %205 : vector<2x8x1xf32>
    %207 = tpu.reciprocal %206 {approx = true} : vector<2x8x1xf32> -> vector<2x8x1xf32>
    %208 = vector.shape_cast %207 : vector<2x8x1xf32> to vector<16x1xf32>
    "tpu.trace_start"() <{level = 10 : i32, message = "bij,bjd->bid"}> : () -> ()
    %cst_132 = arith.constant dense<0.000000e+00> : vector<2x8x24xf32>
    %209 = tpu.matmul %202, %0, %cst_132 {dimension_numbers = #tpu.dot_dimension_numbers<[2], [1], [1], [2], [0, 0, 0, 1, 1, 2], [0], [0]>} : vector<2x8x8xf32>, vector<2x8x24xf32>, vector<2x8x24xf32> -> vector<2x8x24xf32>
    "tpu.trace_stop"() : () -> ()
    %210 = arith.addf %209, %0 : vector<2x8x24xf32>
    %211 = vector.shape_cast %210 : vector<2x8x24xf32> to vector<16x24xf32>
    %c4 = arith.constant 4 : index
    %c0_133 = arith.constant 0 : index
    %c0_134 = arith.constant 0 : index
    %212 = vector.load %arg6[%c4, %c0_133, %c0_134] : memref<6x24x12xf32, #tpu.memory_space<vmem>>, vector<1x24x12xf32>
    %213 = vector.shape_cast %212 : vector<1x24x12xf32> to vector<24x12xf32>
    %cst_135 = arith.constant dense<0.000000e+00> : vector<16x12xf32>
    %214 = tpu.matmul %211, %213, %cst_135 {dimension_numbers = #tpu.dot_dimension_numbers<[1], [0], [0], [1], [0, 0, 1, 1], [], []>} : vector<16x24xf32>, vector<24x12xf32>, vector<16x12xf32> -> vector<16x12xf32>
    %c4_136 = arith.constant 4 : index
    %c0_137 = arith.constant 0 : index
    %c0_138 = arith.constant 0 : index
    %215 = vector.load %arg8[%c4_136, %c0_137, %c0_138] : memref<6x1x12xf32, #tpu.memory_space<vmem>>, vector<1x1x12xf32>
    %216 = vector.shape_cast %215 : vector<1x1x12xf32> to vector<1x12xf32>
    %217 = vector.broadcast %216 : vector<1x12xf32> to vector<16x12xf32>
    %218 = arith.addf %214, %217 : vector<16x12xf32>
    %219 = vector.broadcast %208 : vector<16x1xf32> to vector<16x12xf32>
    %220 = arith.mulf %218, %219 : vector<16x12xf32>
    %cst_139 = arith.constant 0.000000e+00 : f32
    %221 = vector.broadcast %cst_139 : f32 to vector<16x12xf32>
    %222 = arith.maximumf %220, %221 : vector<16x12xf32>
    %c4_140 = arith.constant 4 : index
    %c0_141 = arith.constant 0 : index
    %c0_142 = arith.constant 0 : index
    %223 = vector.load %arg10[%c4_140, %c0_141, %c0_142] : memref<6x12x24xf32, #tpu.memory_space<vmem>>, vector<1x12x24xf32>
    %224 = vector.shape_cast %223 : vector<1x12x24xf32> to vector<12x24xf32>
    %cst_143 = arith.constant dense<0.000000e+00> : vector<16x24xf32>
    %225 = tpu.matmul %222, %224, %cst_143 {dimension_numbers = #tpu.dot_dimension_numbers<[1], [0], [0], [1], [0, 0, 1, 1], [], []>} : vector<16x12xf32>, vector<12x24xf32>, vector<16x24xf32> -> vector<16x24xf32>
    %226 = arith.addf %169, %225 : vector<16x24xf32>
    %227 = vector.shape_cast %222 : vector<16x12xf32> to vector<2x8x12xf32>
    "tpu.trace_start"() <{level = 10 : i32, message = "bij,bjd->bid"}> : () -> ()
    %cst_144 = arith.constant dense<0.000000e+00> : vector<2x8x12xf32>
    %228 = tpu.matmul %202, %227, %cst_144 {dimension_numbers = #tpu.dot_dimension_numbers<[2], [1], [1], [2], [0, 0, 0, 1, 1, 2], [0], [0]>} : vector<2x8x8xf32>, vector<2x8x12xf32>, vector<2x8x12xf32> -> vector<2x8x12xf32>
    "tpu.trace_stop"() : () -> ()
    %229 = arith.addf %228, %227 : vector<2x8x12xf32>
    %230 = vector.shape_cast %229 : vector<2x8x12xf32> to vector<16x12xf32>
    %c5 = arith.constant 5 : index
    %c0_145 = arith.constant 0 : index
    %c0_146 = arith.constant 0 : index
    %231 = vector.load %arg6[%c5, %c0_145, %c0_146] : memref<6x24x12xf32, #tpu.memory_space<vmem>>, vector<1x24x12xf32>
    %232 = vector.shape_cast %231 : vector<1x24x12xf32> to vector<24x12xf32>
    %cst_147 = arith.constant dense<0.000000e+00> : vector<16x12xf32>
    %233 = tpu.matmul %211, %232, %cst_147 {dimension_numbers = #tpu.dot_dimension_numbers<[1], [0], [0], [1], [0, 0, 1, 1], [], []>} : vector<16x24xf32>, vector<24x12xf32>, vector<16x12xf32> -> vector<16x12xf32>
    %c5_148 = arith.constant 5 : index
    %c0_149 = arith.constant 0 : index
    %c0_150 = arith.constant 0 : index
    %234 = vector.load %arg8[%c5_148, %c0_149, %c0_150] : memref<6x1x12xf32, #tpu.memory_space<vmem>>, vector<1x1x12xf32>
    %235 = vector.shape_cast %234 : vector<1x1x12xf32> to vector<1x12xf32>
    %236 = vector.broadcast %235 : vector<1x12xf32> to vector<16x12xf32>
    %237 = arith.addf %233, %236 : vector<16x12xf32>
    %c2_151 = arith.constant 2 : index
    %c0_152 = arith.constant 0 : index
    %c0_153 = arith.constant 0 : index
    %238 = vector.load %arg7[%c2_151, %c0_152, %c0_153] : memref<3x12x12xf32, #tpu.memory_space<vmem>>, vector<1x12x12xf32>
    %239 = vector.shape_cast %238 : vector<1x12x12xf32> to vector<12x12xf32>
    %cst_154 = arith.constant dense<0.000000e+00> : vector<16x12xf32>
    %240 = tpu.matmul %230, %239, %cst_154 {dimension_numbers = #tpu.dot_dimension_numbers<[1], [0], [0], [1], [0, 0, 1, 1], [], []>} : vector<16x12xf32>, vector<12x12xf32>, vector<16x12xf32> -> vector<16x12xf32>
    %241 = arith.addf %237, %240 : vector<16x12xf32>
    %242 = vector.broadcast %208 : vector<16x1xf32> to vector<16x12xf32>
    %243 = arith.mulf %241, %242 : vector<16x12xf32>
    %cst_155 = arith.constant 0.000000e+00 : f32
    %244 = vector.broadcast %cst_155 : f32 to vector<16x12xf32>
    %245 = arith.maximumf %243, %244 : vector<16x12xf32>
    %c5_156 = arith.constant 5 : index
    %c0_157 = arith.constant 0 : index
    %c0_158 = arith.constant 0 : index
    %246 = vector.load %arg10[%c5_156, %c0_157, %c0_158] : memref<6x12x24xf32, #tpu.memory_space<vmem>>, vector<1x12x24xf32>
    %247 = vector.shape_cast %246 : vector<1x12x24xf32> to vector<12x24xf32>
    %cst_159 = arith.constant dense<0.000000e+00> : vector<16x24xf32>
    %248 = tpu.matmul %245, %247, %cst_159 {dimension_numbers = #tpu.dot_dimension_numbers<[1], [0], [0], [1], [0, 0, 1, 1], [], []>} : vector<16x12xf32>, vector<12x24xf32>, vector<16x24xf32> -> vector<16x24xf32>
    %249 = arith.addf %226, %248 : vector<16x24xf32>
    %250 = vector.shape_cast %249 : vector<16x24xf32> to vector<2x8x24xf32>
    %c0_160 = arith.constant 0 : index
    %c0_161 = arith.constant 0 : index
    %c0_162 = arith.constant 0 : index
    %251 = vector.load %arg12[%c0_160, %c0_161, %c0_162] : memref<2x8x24xf32, #tpu.memory_space<vmem>>, vector<2x8x24xf32>
    tpu.vector_store %arg12[%c0_160, %c0_161, %c0_162], %250 {strides = array<i32>} : memref<2x8x24xf32, #tpu.memory_space<vmem>>, vector<2x8x24xf32>,
    return
  }
}

module attributes {stable_mosaic.version = 11 : i64} {
  func.func @kernel(%arg0: memref<2x8x24xf32, #tpu.memory_space<vmem>>, %arg1: memref<2x1x8xf32, #tpu.memory_space<vmem>>, %arg2: memref<3x24x8xf32, #tpu.memory_space<vmem>>, %arg3: memref<3x1x8xf32, #tpu.memory_space<vmem>>, %arg4: memref<3x24x8xf32, #tpu.memory_space<vmem>>, %arg5: memref<3x1x8xf32, #tpu.memory_space<vmem>>, %arg6: memref<12x24x6xf32, #tpu.memory_space<vmem>>, %arg7: memref<18x6x6xf32, #tpu.memory_space<vmem>>, %arg8: memref<12x1x6xf32, #tpu.memory_space<vmem>>, %arg9: memref<24x24xf32, #tpu.memory_space<vmem>>, %arg10: memref<12x6x24xf32, #tpu.memory_space<vmem>>, %arg11: memref<1x24xf32, #tpu.memory_space<vmem>>, %arg12: memref<2x8x24xf32, #tpu.memory_space<vmem>>) attributes {dimension_semantics = [], scalar_prefetch = 0 : i64, scratch_operands = 0 : i64, tpu.core_type = #tpu.core_type<tc>} {
    %c0 = arith.constant 0 : index
    %c0_0 = arith.constant 0 : index
    %c0_1 = arith.constant 0 : index
    %0 = vector.load %arg0[%c0, %c0_0, %c0_1] : memref<2x8x24xf32, #tpu.memory_space<vmem>>, vector<2x8x24xf32>
    %1 = vector.shape_cast %0 : vector<2x8x24xf32> to vector<16x24xf32>
    %c0_2 = arith.constant 0 : index
    %c0_3 = arith.constant 0 : index
    %c0_4 = arith.constant 0 : index
    %2 = vector.load %arg1[%c0_2, %c0_3, %c0_4] : memref<2x1x8xf32, #tpu.memory_space<vmem>>, vector<2x1x8xf32>
    %3 = vector.shape_cast %2 : vector<2x1x8xf32> to vector<2x1x8xf32>
    %4 = vector.broadcast %3 : vector<2x1x8xf32> to vector<2x8x8xf32>
    %c0_5 = arith.constant 0 : index
    %c0_6 = arith.constant 0 : index
    %5 = vector.load %arg9[%c0_5, %c0_6] : memref<24x24xf32, #tpu.memory_space<vmem>>, vector<24x24xf32>
    %cst = arith.constant dense<0.000000e+00> : vector<16x24xf32>
    %6 = tpu.matmul %1, %5, %cst {dimension_numbers = #tpu.dot_dimension_numbers<[1], [0], [0], [1], [0, 0, 1, 1], [], []>} : vector<16x24xf32>, vector<24x24xf32>, vector<16x24xf32> -> vector<16x24xf32>
    %c0_7 = arith.constant 0 : index
    %c0_8 = arith.constant 0 : index
    %7 = vector.load %arg11[%c0_7, %c0_8] : memref<1x24xf32, #tpu.memory_space<vmem>>, vector<1x24xf32>
    %8 = vector.broadcast %7 : vector<1x24xf32> to vector<16x24xf32>
    %9 = arith.addf %6, %8 : vector<16x24xf32>
    %c0_9 = arith.constant 0 : index
    %c0_10 = arith.constant 0 : index
    %c0_11 = arith.constant 0 : index
    %10 = vector.load %arg2[%c0_9, %c0_10, %c0_11] : memref<3x24x8xf32, #tpu.memory_space<vmem>>, vector<1x24x8xf32>
    %11 = vector.shape_cast %10 : vector<1x24x8xf32> to vector<24x8xf32>
    %cst_12 = arith.constant dense<0.000000e+00> : vector<16x8xf32>
    %12 = tpu.matmul %1, %11, %cst_12 {dimension_numbers = #tpu.dot_dimension_numbers<[1], [0], [0], [1], [0, 0, 1, 1], [], []>} : vector<16x24xf32>, vector<24x8xf32>, vector<16x8xf32> -> vector<16x8xf32>
    %c0_13 = arith.constant 0 : index
    %c0_14 = arith.constant 0 : index
    %c0_15 = arith.constant 0 : index
    %13 = vector.load %arg3[%c0_13, %c0_14, %c0_15] : memref<3x1x8xf32, #tpu.memory_space<vmem>>, vector<1x1x8xf32>
    %14 = vector.shape_cast %13 : vector<1x1x8xf32> to vector<1x8xf32>
    %15 = vector.broadcast %14 : vector<1x8xf32> to vector<16x8xf32>
    %16 = arith.addf %12, %15 : vector<16x8xf32>
    %c0_16 = arith.constant 0 : index
    %c0_17 = arith.constant 0 : index
    %c0_18 = arith.constant 0 : index
    %17 = vector.load %arg4[%c0_16, %c0_17, %c0_18] : memref<3x24x8xf32, #tpu.memory_space<vmem>>, vector<1x24x8xf32>
    %18 = vector.shape_cast %17 : vector<1x24x8xf32> to vector<24x8xf32>
    %cst_19 = arith.constant dense<0.000000e+00> : vector<16x8xf32>
    %19 = tpu.matmul %1, %18, %cst_19 {dimension_numbers = #tpu.dot_dimension_numbers<[1], [0], [0], [1], [0, 0, 1, 1], [], []>} : vector<16x24xf32>, vector<24x8xf32>, vector<16x8xf32> -> vector<16x8xf32>
    %c0_20 = arith.constant 0 : index
    %c0_21 = arith.constant 0 : index
    %c0_22 = arith.constant 0 : index
    %20 = vector.load %arg5[%c0_20, %c0_21, %c0_22] : memref<3x1x8xf32, #tpu.memory_space<vmem>>, vector<1x1x8xf32>
    %21 = vector.shape_cast %20 : vector<1x1x8xf32> to vector<1x8xf32>
    %22 = vector.broadcast %21 : vector<1x8xf32> to vector<16x8xf32>
    %23 = arith.addf %19, %22 : vector<16x8xf32>
    %24 = vector.shape_cast %16 : vector<16x8xf32> to vector<2x8x8xf32>
    %25 = vector.shape_cast %23 : vector<16x8xf32> to vector<2x8x8xf32>
    "tpu.trace_start"() <{level = 10 : i32, message = "bnd,bmd->bnm"}> : () -> ()
    %cst_23 = arith.constant dense<0.000000e+00> : vector<2x8x8xf32>
    %26 = tpu.matmul %24, %25, %cst_23 {dimension_numbers = #tpu.dot_dimension_numbers<[2], [2], [1], [1], [0, 0, 0, 1, 1, 1], [0], [0]>} : vector<2x8x8xf32>, vector<2x8x8xf32>, vector<2x8x8xf32> -> vector<2x8x8xf32>
    "tpu.trace_stop"() : () -> ()
    %cst_24 = arith.constant 0.353553385 : f32
    %27 = vector.broadcast %cst_24 : f32 to vector<2x8x8xf32>
    %28 = arith.mulf %26, %27 : vector<2x8x8xf32>
    %cst_25 = arith.constant 0.000000e+00 : f32
    %29 = vector.broadcast %cst_25 : f32 to vector<2x8x8xf32>
    %30 = arith.cmpf oeq, %4, %29 : vector<2x8x8xf32>
    %cst_26 = arith.constant -1.000000e+09 : f32
    %31 = vector.broadcast %cst_26 : f32 to vector<2x8x8xf32>
    %32 = arith.select %30, %31, %28 : vector<2x8x8xi1>, vector<2x8x8xf32>
    %cst_27 = arith.constant dense<0xFF800000> : vector<2x8xf32>
    %33 = vector.multi_reduction <maximumf>, %32, %cst_27 [2] : vector<2x8x8xf32> to vector<2x8xf32>
    %34 = vector.shape_cast %33 : vector<2x8xf32> to vector<2x8x1xf32>
    %35 = vector.broadcast %34 : vector<2x8x1xf32> to vector<2x8x8xf32>
    %36 = arith.subf %32, %35 : vector<2x8x8xf32>
    %37 = math.exp %36 : vector<2x8x8xf32>
    %cst_28 = arith.constant dense<0.000000e+00> : vector<2x8xf32>
    %38 = vector.multi_reduction <add>, %37, %cst_28 [2] : vector<2x8x8xf32> to vector<2x8xf32>
    %39 = vector.shape_cast %38 : vector<2x8xf32> to vector<2x8x1xf32>
    %40 = tpu.reciprocal %39 {approx = true} : vector<2x8x1xf32> -> vector<2x8x1xf32>
    %41 = vector.broadcast %40 : vector<2x8x1xf32> to vector<2x8x8xf32>
    %42 = arith.mulf %37, %41 : vector<2x8x8xf32>
    %cst_29 = arith.constant dense<0.000000e+00> : vector<2x8xf32>
    %43 = vector.multi_reduction <add>, %42, %cst_29 [2] : vector<2x8x8xf32> to vector<2x8xf32>
    %44 = vector.shape_cast %43 : vector<2x8xf32> to vector<2x8x1xf32>
    %cst_30 = arith.constant 1.000000e+00 : f32
    %45 = vector.broadcast %cst_30 : f32 to vector<2x8x1xf32>
    %46 = arith.addf %44, %45 : vector<2x8x1xf32>
    %47 = tpu.reciprocal %46 {approx = true} : vector<2x8x1xf32> -> vector<2x8x1xf32>
    %48 = vector.shape_cast %47 : vector<2x8x1xf32> to vector<16x1xf32>
    "tpu.trace_start"() <{level = 10 : i32, message = "bij,bjd->bid"}> : () -> ()
    %cst_31 = arith.constant dense<0.000000e+00> : vector<2x8x24xf32>
    %49 = tpu.matmul %42, %0, %cst_31 {dimension_numbers = #tpu.dot_dimension_numbers<[2], [1], [1], [2], [0, 0, 0, 1, 1, 2], [0], [0]>} : vector<2x8x8xf32>, vector<2x8x24xf32>, vector<2x8x24xf32> -> vector<2x8x24xf32>
    "tpu.trace_stop"() : () -> ()
    %50 = arith.addf %49, %0 : vector<2x8x24xf32>
    %51 = vector.shape_cast %50 : vector<2x8x24xf32> to vector<16x24xf32>
    %c0_32 = arith.constant 0 : index
    %c0_33 = arith.constant 0 : index
    %c0_34 = arith.constant 0 : index
    %52 = vector.load %arg6[%c0_32, %c0_33, %c0_34] : memref<12x24x6xf32, #tpu.memory_space<vmem>>, vector<1x24x6xf32>
    %53 = vector.shape_cast %52 : vector<1x24x6xf32> to vector<24x6xf32>
    %cst_35 = arith.constant dense<0.000000e+00> : vector<16x6xf32>
    %54 = tpu.matmul %51, %53, %cst_35 {dimension_numbers = #tpu.dot_dimension_numbers<[1], [0], [0], [1], [0, 0, 1, 1], [], []>} : vector<16x24xf32>, vector<24x6xf32>, vector<16x6xf32> -> vector<16x6xf32>
    %c0_36 = arith.constant 0 : index
    %c0_37 = arith.constant 0 : index
    %c0_38 = arith.constant 0 : index
    %55 = vector.load %arg8[%c0_36, %c0_37, %c0_38] : memref<12x1x6xf32, #tpu.memory_space<vmem>>, vector<1x1x6xf32>
    %56 = vector.shape_cast %55 : vector<1x1x6xf32> to vector<1x6xf32>
    %57 = vector.broadcast %56 : vector<1x6xf32> to vector<16x6xf32>
    %58 = arith.addf %54, %57 : vector<16x6xf32>
    %59 = vector.broadcast %48 : vector<16x1xf32> to vector<16x6xf32>
    %60 = arith.mulf %58, %59 : vector<16x6xf32>
    %cst_39 = arith.constant 0.000000e+00 : f32
    %61 = vector.broadcast %cst_39 : f32 to vector<16x6xf32>
    %62 = arith.maximumf %60, %61 : vector<16x6xf32>
    %c0_40 = arith.constant 0 : index
    %c0_41 = arith.constant 0 : index
    %c0_42 = arith.constant 0 : index
    %63 = vector.load %arg10[%c0_40, %c0_41, %c0_42] : memref<12x6x24xf32, #tpu.memory_space<vmem>>, vector<1x6x24xf32>
    %64 = vector.shape_cast %63 : vector<1x6x24xf32> to vector<6x24xf32>
    %cst_43 = arith.constant dense<0.000000e+00> : vector<16x24xf32>
    %65 = tpu.matmul %62, %64, %cst_43 {dimension_numbers = #tpu.dot_dimension_numbers<[1], [0], [0], [1], [0, 0, 1, 1], [], []>} : vector<16x6xf32>, vector<6x24xf32>, vector<16x24xf32> -> vector<16x24xf32>
    %66 = arith.addf %9, %65 : vector<16x24xf32>
    %67 = vector.shape_cast %62 : vector<16x6xf32> to vector<2x8x6xf32>
    "tpu.trace_start"() <{level = 10 : i32, message = "bij,bjd->bid"}> : () -> ()
    %cst_44 = arith.constant dense<0.000000e+00> : vector<2x8x6xf32>
    %68 = tpu.matmul %42, %67, %cst_44 {dimension_numbers = #tpu.dot_dimension_numbers<[2], [1], [1], [2], [0, 0, 0, 1, 1, 2], [0], [0]>} : vector<2x8x8xf32>, vector<2x8x6xf32>, vector<2x8x6xf32> -> vector<2x8x6xf32>
    "tpu.trace_stop"() : () -> ()
    %69 = arith.addf %68, %67 : vector<2x8x6xf32>
    %70 = vector.shape_cast %69 : vector<2x8x6xf32> to vector<16x6xf32>
    %c1 = arith.constant 1 : index
    %c0_45 = arith.constant 0 : index
    %c0_46 = arith.constant 0 : index
    %71 = vector.load %arg6[%c1, %c0_45, %c0_46] : memref<12x24x6xf32, #tpu.memory_space<vmem>>, vector<1x24x6xf32>
    %72 = vector.shape_cast %71 : vector<1x24x6xf32> to vector<24x6xf32>
    %cst_47 = arith.constant dense<0.000000e+00> : vector<16x6xf32>
    %73 = tpu.matmul %51, %72, %cst_47 {dimension_numbers = #tpu.dot_dimension_numbers<[1], [0], [0], [1], [0, 0, 1, 1], [], []>} : vector<16x24xf32>, vector<24x6xf32>, vector<16x6xf32> -> vector<16x6xf32>
    %c1_48 = arith.constant 1 : index
    %c0_49 = arith.constant 0 : index
    %c0_50 = arith.constant 0 : index
    %74 = vector.load %arg8[%c1_48, %c0_49, %c0_50] : memref<12x1x6xf32, #tpu.memory_space<vmem>>, vector<1x1x6xf32>
    %75 = vector.shape_cast %74 : vector<1x1x6xf32> to vector<1x6xf32>
    %76 = vector.broadcast %75 : vector<1x6xf32> to vector<16x6xf32>
    %77 = arith.addf %73, %76 : vector<16x6xf32>
    %c0_51 = arith.constant 0 : index
    %c0_52 = arith.constant 0 : index
    %c0_53 = arith.constant 0 : index
    %78 = vector.load %arg7[%c0_51, %c0_52, %c0_53] : memref<18x6x6xf32, #tpu.memory_space<vmem>>, vector<1x6x6xf32>
    %79 = vector.shape_cast %78 : vector<1x6x6xf32> to vector<6x6xf32>
    %cst_54 = arith.constant dense<0.000000e+00> : vector<16x6xf32>
    %80 = tpu.matmul %70, %79, %cst_54 {dimension_numbers = #tpu.dot_dimension_numbers<[1], [0], [0], [1], [0, 0, 1, 1], [], []>} : vector<16x6xf32>, vector<6x6xf32>, vector<16x6xf32> -> vector<16x6xf32>
    %81 = arith.addf %77, %80 : vector<16x6xf32>
    %82 = vector.broadcast %48 : vector<16x1xf32> to vector<16x6xf32>
    %83 = arith.mulf %81, %82 : vector<16x6xf32>
    %cst_55 = arith.constant 0.000000e+00 : f32
    %84 = vector.broadcast %cst_55 : f32 to vector<16x6xf32>
    %85 = arith.maximumf %83, %84 : vector<16x6xf32>
    %c1_56 = arith.constant 1 : index
    %c0_57 = arith.constant 0 : index
    %c0_58 = arith.constant 0 : index
    %86 = vector.load %arg10[%c1_56, %c0_57, %c0_58] : memref<12x6x24xf32, #tpu.memory_space<vmem>>, vector<1x6x24xf32>
    %87 = vector.shape_cast %86 : vector<1x6x24xf32> to vector<6x24xf32>
    %cst_59 = arith.constant dense<0.000000e+00> : vector<16x24xf32>
    %88 = tpu.matmul %85, %87, %cst_59 {dimension_numbers = #tpu.dot_dimension_numbers<[1], [0], [0], [1], [0, 0, 1, 1], [], []>} : vector<16x6xf32>, vector<6x24xf32>, vector<16x24xf32> -> vector<16x24xf32>
    %89 = arith.addf %66, %88 : vector<16x24xf32>
    %90 = vector.shape_cast %85 : vector<16x6xf32> to vector<2x8x6xf32>
    "tpu.trace_start"() <{level = 10 : i32, message = "bij,bjd->bid"}> : () -> ()
    %cst_60 = arith.constant dense<0.000000e+00> : vector<2x8x6xf32>
    %91 = tpu.matmul %42, %90, %cst_60 {dimension_numbers = #tpu.dot_dimension_numbers<[2], [1], [1], [2], [0, 0, 0, 1, 1, 2], [0], [0]>} : vector<2x8x8xf32>, vector<2x8x6xf32>, vector<2x8x6xf32> -> vector<2x8x6xf32>
    "tpu.trace_stop"() : () -> ()
    %92 = arith.addf %91, %90 : vector<2x8x6xf32>
    %93 = vector.shape_cast %92 : vector<2x8x6xf32> to vector<16x6xf32>
    %c2 = arith.constant 2 : index
    %c0_61 = arith.constant 0 : index
    %c0_62 = arith.constant 0 : index
    %94 = vector.load %arg6[%c2, %c0_61, %c0_62] : memref<12x24x6xf32, #tpu.memory_space<vmem>>, vector<1x24x6xf32>
    %95 = vector.shape_cast %94 : vector<1x24x6xf32> to vector<24x6xf32>
    %cst_63 = arith.constant dense<0.000000e+00> : vector<16x6xf32>
    %96 = tpu.matmul %51, %95, %cst_63 {dimension_numbers = #tpu.dot_dimension_numbers<[1], [0], [0], [1], [0, 0, 1, 1], [], []>} : vector<16x24xf32>, vector<24x6xf32>, vector<16x6xf32> -> vector<16x6xf32>
    %c2_64 = arith.constant 2 : index
    %c0_65 = arith.constant 0 : index
    %c0_66 = arith.constant 0 : index
    %97 = vector.load %arg8[%c2_64, %c0_65, %c0_66] : memref<12x1x6xf32, #tpu.memory_space<vmem>>, vector<1x1x6xf32>
    %98 = vector.shape_cast %97 : vector<1x1x6xf32> to vector<1x6xf32>
    %99 = vector.broadcast %98 : vector<1x6xf32> to vector<16x6xf32>
    %100 = arith.addf %96, %99 : vector<16x6xf32>
    %c1_67 = arith.constant 1 : index
    %c0_68 = arith.constant 0 : index
    %c0_69 = arith.constant 0 : index
    %101 = vector.load %arg7[%c1_67, %c0_68, %c0_69] : memref<18x6x6xf32, #tpu.memory_space<vmem>>, vector<1x6x6xf32>
    %102 = vector.shape_cast %101 : vector<1x6x6xf32> to vector<6x6xf32>
    %cst_70 = arith.constant dense<0.000000e+00> : vector<16x6xf32>
    %103 = tpu.matmul %70, %102, %cst_70 {dimension_numbers = #tpu.dot_dimension_numbers<[1], [0], [0], [1], [0, 0, 1, 1], [], []>} : vector<16x6xf32>, vector<6x6xf32>, vector<16x6xf32> -> vector<16x6xf32>
    %104 = arith.addf %100, %103 : vector<16x6xf32>
    %c2_71 = arith.constant 2 : index
    %c0_72 = arith.constant 0 : index
    %c0_73 = arith.constant 0 : index
    %105 = vector.load %arg7[%c2_71, %c0_72, %c0_73] : memref<18x6x6xf32, #tpu.memory_space<vmem>>, vector<1x6x6xf32>
    %106 = vector.shape_cast %105 : vector<1x6x6xf32> to vector<6x6xf32>
    %cst_74 = arith.constant dense<0.000000e+00> : vector<16x6xf32>
    %107 = tpu.matmul %93, %106, %cst_74 {dimension_numbers = #tpu.dot_dimension_numbers<[1], [0], [0], [1], [0, 0, 1, 1], [], []>} : vector<16x6xf32>, vector<6x6xf32>, vector<16x6xf32> -> vector<16x6xf32>
    %108 = arith.addf %104, %107 : vector<16x6xf32>
    %109 = vector.broadcast %48 : vector<16x1xf32> to vector<16x6xf32>
    %110 = arith.mulf %108, %109 : vector<16x6xf32>
    %cst_75 = arith.constant 0.000000e+00 : f32
    %111 = vector.broadcast %cst_75 : f32 to vector<16x6xf32>
    %112 = arith.maximumf %110, %111 : vector<16x6xf32>
    %c2_76 = arith.constant 2 : index
    %c0_77 = arith.constant 0 : index
    %c0_78 = arith.constant 0 : index
    %113 = vector.load %arg10[%c2_76, %c0_77, %c0_78] : memref<12x6x24xf32, #tpu.memory_space<vmem>>, vector<1x6x24xf32>
    %114 = vector.shape_cast %113 : vector<1x6x24xf32> to vector<6x24xf32>
    %cst_79 = arith.constant dense<0.000000e+00> : vector<16x24xf32>
    %115 = tpu.matmul %112, %114, %cst_79 {dimension_numbers = #tpu.dot_dimension_numbers<[1], [0], [0], [1], [0, 0, 1, 1], [], []>} : vector<16x6xf32>, vector<6x24xf32>, vector<16x24xf32> -> vector<16x24xf32>
    %116 = arith.addf %89, %115 : vector<16x24xf32>
    %117 = vector.shape_cast %112 : vector<16x6xf32> to vector<2x8x6xf32>
    "tpu.trace_start"() <{level = 10 : i32, message = "bij,bjd->bid"}> : () -> ()
    %cst_80 = arith.constant dense<0.000000e+00> : vector<2x8x6xf32>
    %118 = tpu.matmul %42, %117, %cst_80 {dimension_numbers = #tpu.dot_dimension_numbers<[2], [1], [1], [2], [0, 0, 0, 1, 1, 2], [0], [0]>} : vector<2x8x8xf32>, vector<2x8x6xf32>, vector<2x8x6xf32> -> vector<2x8x6xf32>
    "tpu.trace_stop"() : () -> ()
    %119 = arith.addf %118, %117 : vector<2x8x6xf32>
    %120 = vector.shape_cast %119 : vector<2x8x6xf32> to vector<16x6xf32>
    %c3 = arith.constant 3 : index
    %c0_81 = arith.constant 0 : index
    %c0_82 = arith.constant 0 : index
    %121 = vector.load %arg6[%c3, %c0_81, %c0_82] : memref<12x24x6xf32, #tpu.memory_space<vmem>>, vector<1x24x6xf32>
    %122 = vector.shape_cast %121 : vector<1x24x6xf32> to vector<24x6xf32>
    %cst_83 = arith.constant dense<0.000000e+00> : vector<16x6xf32>
    %123 = tpu.matmul %51, %122, %cst_83 {dimension_numbers = #tpu.dot_dimension_numbers<[1], [0], [0], [1], [0, 0, 1, 1], [], []>} : vector<16x24xf32>, vector<24x6xf32>, vector<16x6xf32> -> vector<16x6xf32>
    %c3_84 = arith.constant 3 : index
    %c0_85 = arith.constant 0 : index
    %c0_86 = arith.constant 0 : index
    %124 = vector.load %arg8[%c3_84, %c0_85, %c0_86] : memref<12x1x6xf32, #tpu.memory_space<vmem>>, vector<1x1x6xf32>
    %125 = vector.shape_cast %124 : vector<1x1x6xf32> to vector<1x6xf32>
    %126 = vector.broadcast %125 : vector<1x6xf32> to vector<16x6xf32>
    %127 = arith.addf %123, %126 : vector<16x6xf32>
    %c3_87 = arith.constant 3 : index
    %c0_88 = arith.constant 0 : index
    %c0_89 = arith.constant 0 : index
    %128 = vector.load %arg7[%c3_87, %c0_88, %c0_89] : memref<18x6x6xf32, #tpu.memory_space<vmem>>, vector<1x6x6xf32>
    %129 = vector.shape_cast %128 : vector<1x6x6xf32> to vector<6x6xf32>
    %cst_90 = arith.constant dense<0.000000e+00> : vector<16x6xf32>
    %130 = tpu.matmul %70, %129, %cst_90 {dimension_numbers = #tpu.dot_dimension_numbers<[1], [0], [0], [1], [0, 0, 1, 1], [], []>} : vector<16x6xf32>, vector<6x6xf32>, vector<16x6xf32> -> vector<16x6xf32>
    %131 = arith.addf %127, %130 : vector<16x6xf32>
    %c4 = arith.constant 4 : index
    %c0_91 = arith.constant 0 : index
    %c0_92 = arith.constant 0 : index
    %132 = vector.load %arg7[%c4, %c0_91, %c0_92] : memref<18x6x6xf32, #tpu.memory_space<vmem>>, vector<1x6x6xf32>
    %133 = vector.shape_cast %132 : vector<1x6x6xf32> to vector<6x6xf32>
    %cst_93 = arith.constant dense<0.000000e+00> : vector<16x6xf32>
    %134 = tpu.matmul %93, %133, %cst_93 {dimension_numbers = #tpu.dot_dimension_numbers<[1], [0], [0], [1], [0, 0, 1, 1], [], []>} : vector<16x6xf32>, vector<6x6xf32>, vector<16x6xf32> -> vector<16x6xf32>
    %135 = arith.addf %131, %134 : vector<16x6xf32>
    %c5 = arith.constant 5 : index
    %c0_94 = arith.constant 0 : index
    %c0_95 = arith.constant 0 : index
    %136 = vector.load %arg7[%c5, %c0_94, %c0_95] : memref<18x6x6xf32, #tpu.memory_space<vmem>>, vector<1x6x6xf32>
    %137 = vector.shape_cast %136 : vector<1x6x6xf32> to vector<6x6xf32>
    %cst_96 = arith.constant dense<0.000000e+00> : vector<16x6xf32>
    %138 = tpu.matmul %120, %137, %cst_96 {dimension_numbers = #tpu.dot_dimension_numbers<[1], [0], [0], [1], [0, 0, 1, 1], [], []>} : vector<16x6xf32>, vector<6x6xf32>, vector<16x6xf32> -> vector<16x6xf32>
    %139 = arith.addf %135, %138 : vector<16x6xf32>
    %140 = vector.broadcast %48 : vector<16x1xf32> to vector<16x6xf32>
    %141 = arith.mulf %139, %140 : vector<16x6xf32>
    %cst_97 = arith.constant 0.000000e+00 : f32
    %142 = vector.broadcast %cst_97 : f32 to vector<16x6xf32>
    %143 = arith.maximumf %141, %142 : vector<16x6xf32>
    %c3_98 = arith.constant 3 : index
    %c0_99 = arith.constant 0 : index
    %c0_100 = arith.constant 0 : index
    %144 = vector.load %arg10[%c3_98, %c0_99, %c0_100] : memref<12x6x24xf32, #tpu.memory_space<vmem>>, vector<1x6x24xf32>
    %145 = vector.shape_cast %144 : vector<1x6x24xf32> to vector<6x24xf32>
    %cst_101 = arith.constant dense<0.000000e+00> : vector<16x24xf32>
    %146 = tpu.matmul %143, %145, %cst_101 {dimension_numbers = #tpu.dot_dimension_numbers<[1], [0], [0], [1], [0, 0, 1, 1], [], []>} : vector<16x6xf32>, vector<6x24xf32>, vector<16x24xf32> -> vector<16x24xf32>
    %147 = arith.addf %116, %146 : vector<16x24xf32>
    %c1_102 = arith.constant 1 : index
    %c0_103 = arith.constant 0 : index
    %c0_104 = arith.constant 0 : index
    %148 = vector.load %arg2[%c1_102, %c0_103, %c0_104] : memref<3x24x8xf32, #tpu.memory_space<vmem>>, vector<1x24x8xf32>
    %149 = vector.shape_cast %148 : vector<1x24x8xf32> to vector<24x8xf32>
    %cst_105 = arith.constant dense<0.000000e+00> : vector<16x8xf32>
    %150 = tpu.matmul %1, %149, %cst_105 {dimension_numbers = #tpu.dot_dimension_numbers<[1], [0], [0], [1], [0, 0, 1, 1], [], []>} : vector<16x24xf32>, vector<24x8xf32>, vector<16x8xf32> -> vector<16x8xf32>
    %c1_106 = arith.constant 1 : index
    %c0_107 = arith.constant 0 : index
    %c0_108 = arith.constant 0 : index
    %151 = vector.load %arg3[%c1_106, %c0_107, %c0_108] : memref<3x1x8xf32, #tpu.memory_space<vmem>>, vector<1x1x8xf32>
    %152 = vector.shape_cast %151 : vector<1x1x8xf32> to vector<1x8xf32>
    %153 = vector.broadcast %152 : vector<1x8xf32> to vector<16x8xf32>
    %154 = arith.addf %150, %153 : vector<16x8xf32>
    %c1_109 = arith.constant 1 : index
    %c0_110 = arith.constant 0 : index
    %c0_111 = arith.constant 0 : index
    %155 = vector.load %arg4[%c1_109, %c0_110, %c0_111] : memref<3x24x8xf32, #tpu.memory_space<vmem>>, vector<1x24x8xf32>
    %156 = vector.shape_cast %155 : vector<1x24x8xf32> to vector<24x8xf32>
    %cst_112 = arith.constant dense<0.000000e+00> : vector<16x8xf32>
    %157 = tpu.matmul %1, %156, %cst_112 {dimension_numbers = #tpu.dot_dimension_numbers<[1], [0], [0], [1], [0, 0, 1, 1], [], []>} : vector<16x24xf32>, vector<24x8xf32>, vector<16x8xf32> -> vector<16x8xf32>
    %c1_113 = arith.constant 1 : index
    %c0_114 = arith.constant 0 : index
    %c0_115 = arith.constant 0 : index
    %158 = vector.load %arg5[%c1_113, %c0_114, %c0_115] : memref<3x1x8xf32, #tpu.memory_space<vmem>>, vector<1x1x8xf32>
    %159 = vector.shape_cast %158 : vector<1x1x8xf32> to vector<1x8xf32>
    %160 = vector.broadcast %159 : vector<1x8xf32> to vector<16x8xf32>
    %161 = arith.addf %157, %160 : vector<16x8xf32>
    %162 = vector.shape_cast %154 : vector<16x8xf32> to vector<2x8x8xf32>
    %163 = vector.shape_cast %161 : vector<16x8xf32> to vector<2x8x8xf32>
    "tpu.trace_start"() <{level = 10 : i32, message = "bnd,bmd->bnm"}> : () -> ()
    %cst_116 = arith.constant dense<0.000000e+00> : vector<2x8x8xf32>
    %164 = tpu.matmul %162, %163, %cst_116 {dimension_numbers = #tpu.dot_dimension_numbers<[2], [2], [1], [1], [0, 0, 0, 1, 1, 1], [0], [0]>} : vector<2x8x8xf32>, vector<2x8x8xf32>, vector<2x8x8xf32> -> vector<2x8x8xf32>
    "tpu.trace_stop"() : () -> ()
    %cst_117 = arith.constant 0.353553385 : f32
    %165 = vector.broadcast %cst_117 : f32 to vector<2x8x8xf32>
    %166 = arith.mulf %164, %165 : vector<2x8x8xf32>
    %cst_118 = arith.constant 0.000000e+00 : f32
    %167 = vector.broadcast %cst_118 : f32 to vector<2x8x8xf32>
    %168 = arith.cmpf oeq, %4, %167 : vector<2x8x8xf32>
    %cst_119 = arith.constant -1.000000e+09 : f32
    %169 = vector.broadcast %cst_119 : f32 to vector<2x8x8xf32>
    %170 = arith.select %168, %169, %166 : vector<2x8x8xi1>, vector<2x8x8xf32>
    %cst_120 = arith.constant dense<0xFF800000> : vector<2x8xf32>
    %171 = vector.multi_reduction <maximumf>, %170, %cst_120 [2] : vector<2x8x8xf32> to vector<2x8xf32>
    %172 = vector.shape_cast %171 : vector<2x8xf32> to vector<2x8x1xf32>
    %173 = vector.broadcast %172 : vector<2x8x1xf32> to vector<2x8x8xf32>
    %174 = arith.subf %170, %173 : vector<2x8x8xf32>
    %175 = math.exp %174 : vector<2x8x8xf32>
    %cst_121 = arith.constant dense<0.000000e+00> : vector<2x8xf32>
    %176 = vector.multi_reduction <add>, %175, %cst_121 [2] : vector<2x8x8xf32> to vector<2x8xf32>
    %177 = vector.shape_cast %176 : vector<2x8xf32> to vector<2x8x1xf32>
    %178 = tpu.reciprocal %177 {approx = true} : vector<2x8x1xf32> -> vector<2x8x1xf32>
    %179 = vector.broadcast %178 : vector<2x8x1xf32> to vector<2x8x8xf32>
    %180 = arith.mulf %175, %179 : vector<2x8x8xf32>
    %cst_122 = arith.constant dense<0.000000e+00> : vector<2x8xf32>
    %181 = vector.multi_reduction <add>, %180, %cst_122 [2] : vector<2x8x8xf32> to vector<2x8xf32>
    %182 = vector.shape_cast %181 : vector<2x8xf32> to vector<2x8x1xf32>
    %cst_123 = arith.constant 1.000000e+00 : f32
    %183 = vector.broadcast %cst_123 : f32 to vector<2x8x1xf32>
    %184 = arith.addf %182, %183 : vector<2x8x1xf32>
    %185 = tpu.reciprocal %184 {approx = true} : vector<2x8x1xf32> -> vector<2x8x1xf32>
    %186 = vector.shape_cast %185 : vector<2x8x1xf32> to vector<16x1xf32>
    "tpu.trace_start"() <{level = 10 : i32, message = "bij,bjd->bid"}> : () -> ()
    %cst_124 = arith.constant dense<0.000000e+00> : vector<2x8x24xf32>
    %187 = tpu.matmul %180, %0, %cst_124 {dimension_numbers = #tpu.dot_dimension_numbers<[2], [1], [1], [2], [0, 0, 0, 1, 1, 2], [0], [0]>} : vector<2x8x8xf32>, vector<2x8x24xf32>, vector<2x8x24xf32> -> vector<2x8x24xf32>
    "tpu.trace_stop"() : () -> ()
    %188 = arith.addf %187, %0 : vector<2x8x24xf32>
    %189 = vector.shape_cast %188 : vector<2x8x24xf32> to vector<16x24xf32>
    %c4_125 = arith.constant 4 : index
    %c0_126 = arith.constant 0 : index
    %c0_127 = arith.constant 0 : index
    %190 = vector.load %arg6[%c4_125, %c0_126, %c0_127] : memref<12x24x6xf32, #tpu.memory_space<vmem>>, vector<1x24x6xf32>
    %191 = vector.shape_cast %190 : vector<1x24x6xf32> to vector<24x6xf32>
    %cst_128 = arith.constant dense<0.000000e+00> : vector<16x6xf32>
    %192 = tpu.matmul %189, %191, %cst_128 {dimension_numbers = #tpu.dot_dimension_numbers<[1], [0], [0], [1], [0, 0, 1, 1], [], []>} : vector<16x24xf32>, vector<24x6xf32>, vector<16x6xf32> -> vector<16x6xf32>
    %c4_129 = arith.constant 4 : index
    %c0_130 = arith.constant 0 : index
    %c0_131 = arith.constant 0 : index
    %193 = vector.load %arg8[%c4_129, %c0_130, %c0_131] : memref<12x1x6xf32, #tpu.memory_space<vmem>>, vector<1x1x6xf32>
    %194 = vector.shape_cast %193 : vector<1x1x6xf32> to vector<1x6xf32>
    %195 = vector.broadcast %194 : vector<1x6xf32> to vector<16x6xf32>
    %196 = arith.addf %192, %195 : vector<16x6xf32>
    %197 = vector.broadcast %186 : vector<16x1xf32> to vector<16x6xf32>
    %198 = arith.mulf %196, %197 : vector<16x6xf32>
    %cst_132 = arith.constant 0.000000e+00 : f32
    %199 = vector.broadcast %cst_132 : f32 to vector<16x6xf32>
    %200 = arith.maximumf %198, %199 : vector<16x6xf32>
    %c4_133 = arith.constant 4 : index
    %c0_134 = arith.constant 0 : index
    %c0_135 = arith.constant 0 : index
    %201 = vector.load %arg10[%c4_133, %c0_134, %c0_135] : memref<12x6x24xf32, #tpu.memory_space<vmem>>, vector<1x6x24xf32>
    %202 = vector.shape_cast %201 : vector<1x6x24xf32> to vector<6x24xf32>
    %cst_136 = arith.constant dense<0.000000e+00> : vector<16x24xf32>
    %203 = tpu.matmul %200, %202, %cst_136 {dimension_numbers = #tpu.dot_dimension_numbers<[1], [0], [0], [1], [0, 0, 1, 1], [], []>} : vector<16x6xf32>, vector<6x24xf32>, vector<16x24xf32> -> vector<16x24xf32>
    %204 = arith.addf %147, %203 : vector<16x24xf32>
    %205 = vector.shape_cast %200 : vector<16x6xf32> to vector<2x8x6xf32>
    "tpu.trace_start"() <{level = 10 : i32, message = "bij,bjd->bid"}> : () -> ()
    %cst_137 = arith.constant dense<0.000000e+00> : vector<2x8x6xf32>
    %206 = tpu.matmul %180, %205, %cst_137 {dimension_numbers = #tpu.dot_dimension_numbers<[2], [1], [1], [2], [0, 0, 0, 1, 1, 2], [0], [0]>} : vector<2x8x8xf32>, vector<2x8x6xf32>, vector<2x8x6xf32> -> vector<2x8x6xf32>
    "tpu.trace_stop"() : () -> ()
    %207 = arith.addf %206, %205 : vector<2x8x6xf32>
    %208 = vector.shape_cast %207 : vector<2x8x6xf32> to vector<16x6xf32>
    %c5_138 = arith.constant 5 : index
    %c0_139 = arith.constant 0 : index
    %c0_140 = arith.constant 0 : index
    %209 = vector.load %arg6[%c5_138, %c0_139, %c0_140] : memref<12x24x6xf32, #tpu.memory_space<vmem>>, vector<1x24x6xf32>
    %210 = vector.shape_cast %209 : vector<1x24x6xf32> to vector<24x6xf32>
    %cst_141 = arith.constant dense<0.000000e+00> : vector<16x6xf32>
    %211 = tpu.matmul %189, %210, %cst_141 {dimension_numbers = #tpu.dot_dimension_numbers<[1], [0], [0], [1], [0, 0, 1, 1], [], []>} : vector<16x24xf32>, vector<24x6xf32>, vector<16x6xf32> -> vector<16x6xf32>
    %c5_142 = arith.constant 5 : index
    %c0_143 = arith.constant 0 : index
    %c0_144 = arith.constant 0 : index
    %212 = vector.load %arg8[%c5_142, %c0_143, %c0_144] : memref<12x1x6xf32, #tpu.memory_space<vmem>>, vector<1x1x6xf32>
    %213 = vector.shape_cast %212 : vector<1x1x6xf32> to vector<1x6xf32>
    %214 = vector.broadcast %213 : vector<1x6xf32> to vector<16x6xf32>
    %215 = arith.addf %211, %214 : vector<16x6xf32>
    %c6 = arith.constant 6 : index
    %c0_145 = arith.constant 0 : index
    %c0_146 = arith.constant 0 : index
    %216 = vector.load %arg7[%c6, %c0_145, %c0_146] : memref<18x6x6xf32, #tpu.memory_space<vmem>>, vector<1x6x6xf32>
    %217 = vector.shape_cast %216 : vector<1x6x6xf32> to vector<6x6xf32>
    %cst_147 = arith.constant dense<0.000000e+00> : vector<16x6xf32>
    %218 = tpu.matmul %208, %217, %cst_147 {dimension_numbers = #tpu.dot_dimension_numbers<[1], [0], [0], [1], [0, 0, 1, 1], [], []>} : vector<16x6xf32>, vector<6x6xf32>, vector<16x6xf32> -> vector<16x6xf32>
    %219 = arith.addf %215, %218 : vector<16x6xf32>
    %220 = vector.broadcast %186 : vector<16x1xf32> to vector<16x6xf32>
    %221 = arith.mulf %219, %220 : vector<16x6xf32>
    %cst_148 = arith.constant 0.000000e+00 : f32
    %222 = vector.broadcast %cst_148 : f32 to vector<16x6xf32>
    %223 = arith.maximumf %221, %222 : vector<16x6xf32>
    %c5_149 = arith.constant 5 : index
    %c0_150 = arith.constant 0 : index
    %c0_151 = arith.constant 0 : index
    %224 = vector.load %arg10[%c5_149, %c0_150, %c0_151] : memref<12x6x24xf32, #tpu.memory_space<vmem>>, vector<1x6x24xf32>
    %225 = vector.shape_cast %224 : vector<1x6x24xf32> to vector<6x24xf32>
    %cst_152 = arith.constant dense<0.000000e+00> : vector<16x24xf32>
    %226 = tpu.matmul %223, %225, %cst_152 {dimension_numbers = #tpu.dot_dimension_numbers<[1], [0], [0], [1], [0, 0, 1, 1], [], []>} : vector<16x6xf32>, vector<6x24xf32>, vector<16x24xf32> -> vector<16x24xf32>
    %227 = arith.addf %204, %226 : vector<16x24xf32>
    %228 = vector.shape_cast %223 : vector<16x6xf32> to vector<2x8x6xf32>
    "tpu.trace_start"() <{level = 10 : i32, message = "bij,bjd->bid"}> : () -> ()
    %cst_153 = arith.constant dense<0.000000e+00> : vector<2x8x6xf32>
    %229 = tpu.matmul %180, %228, %cst_153 {dimension_numbers = #tpu.dot_dimension_numbers<[2], [1], [1], [2], [0, 0, 0, 1, 1, 2], [0], [0]>} : vector<2x8x8xf32>, vector<2x8x6xf32>, vector<2x8x6xf32> -> vector<2x8x6xf32>
    "tpu.trace_stop"() : () -> ()
    %230 = arith.addf %229, %228 : vector<2x8x6xf32>
    %231 = vector.shape_cast %230 : vector<2x8x6xf32> to vector<16x6xf32>
    %c6_154 = arith.constant 6 : index
    %c0_155 = arith.constant 0 : index
    %c0_156 = arith.constant 0 : index
    %232 = vector.load %arg6[%c6_154, %c0_155, %c0_156] : memref<12x24x6xf32, #tpu.memory_space<vmem>>, vector<1x24x6xf32>
    %233 = vector.shape_cast %232 : vector<1x24x6xf32> to vector<24x6xf32>
    %cst_157 = arith.constant dense<0.000000e+00> : vector<16x6xf32>
    %234 = tpu.matmul %189, %233, %cst_157 {dimension_numbers = #tpu.dot_dimension_numbers<[1], [0], [0], [1], [0, 0, 1, 1], [], []>} : vector<16x24xf32>, vector<24x6xf32>, vector<16x6xf32> -> vector<16x6xf32>
    %c6_158 = arith.constant 6 : index
    %c0_159 = arith.constant 0 : index
    %c0_160 = arith.constant 0 : index
    %235 = vector.load %arg8[%c6_158, %c0_159, %c0_160] : memref<12x1x6xf32, #tpu.memory_space<vmem>>, vector<1x1x6xf32>
    %236 = vector.shape_cast %235 : vector<1x1x6xf32> to vector<1x6xf32>
    %237 = vector.broadcast %236 : vector<1x6xf32> to vector<16x6xf32>
    %238 = arith.addf %234, %237 : vector<16x6xf32>
    %c7 = arith.constant 7 : index
    %c0_161 = arith.constant 0 : index
    %c0_162 = arith.constant 0 : index
    %239 = vector.load %arg7[%c7, %c0_161, %c0_162] : memref<18x6x6xf32, #tpu.memory_space<vmem>>, vector<1x6x6xf32>
    %240 = vector.shape_cast %239 : vector<1x6x6xf32> to vector<6x6xf32>
    %cst_163 = arith.constant dense<0.000000e+00> : vector<16x6xf32>
    %241 = tpu.matmul %208, %240, %cst_163 {dimension_numbers = #tpu.dot_dimension_numbers<[1], [0], [0], [1], [0, 0, 1, 1], [], []>} : vector<16x6xf32>, vector<6x6xf32>, vector<16x6xf32> -> vector<16x6xf32>
    %242 = arith.addf %238, %241 : vector<16x6xf32>
    %c8 = arith.constant 8 : index
    %c0_164 = arith.constant 0 : index
    %c0_165 = arith.constant 0 : index
    %243 = vector.load %arg7[%c8, %c0_164, %c0_165] : memref<18x6x6xf32, #tpu.memory_space<vmem>>, vector<1x6x6xf32>
    %244 = vector.shape_cast %243 : vector<1x6x6xf32> to vector<6x6xf32>
    %cst_166 = arith.constant dense<0.000000e+00> : vector<16x6xf32>
    %245 = tpu.matmul %231, %244, %cst_166 {dimension_numbers = #tpu.dot_dimension_numbers<[1], [0], [0], [1], [0, 0, 1, 1], [], []>} : vector<16x6xf32>, vector<6x6xf32>, vector<16x6xf32> -> vector<16x6xf32>
    %246 = arith.addf %242, %245 : vector<16x6xf32>
    %247 = vector.broadcast %186 : vector<16x1xf32> to vector<16x6xf32>
    %248 = arith.mulf %246, %247 : vector<16x6xf32>
    %cst_167 = arith.constant 0.000000e+00 : f32
    %249 = vector.broadcast %cst_167 : f32 to vector<16x6xf32>
    %250 = arith.maximumf %248, %249 : vector<16x6xf32>
    %c6_168 = arith.constant 6 : index
    %c0_169 = arith.constant 0 : index
    %c0_170 = arith.constant 0 : index
    %251 = vector.load %arg10[%c6_168, %c0_169, %c0_170] : memref<12x6x24xf32, #tpu.memory_space<vmem>>, vector<1x6x24xf32>
    %252 = vector.shape_cast %251 : vector<1x6x24xf32> to vector<6x24xf32>
    %cst_171 = arith.constant dense<0.000000e+00> : vector<16x24xf32>
    %253 = tpu.matmul %250, %252, %cst_171 {dimension_numbers = #tpu.dot_dimension_numbers<[1], [0], [0], [1], [0, 0, 1, 1], [], []>} : vector<16x6xf32>, vector<6x24xf32>, vector<16x24xf32> -> vector<16x24xf32>
    %254 = arith.addf %227, %253 : vector<16x24xf32>
    %255 = vector.shape_cast %250 : vector<16x6xf32> to vector<2x8x6xf32>
    "tpu.trace_start"() <{level = 10 : i32, message = "bij,bjd->bid"}> : () -> ()
    %cst_172 = arith.constant dense<0.000000e+00> : vector<2x8x6xf32>
    %256 = tpu.matmul %180, %255, %cst_172 {dimension_numbers = #tpu.dot_dimension_numbers<[2], [1], [1], [2], [0, 0, 0, 1, 1, 2], [0], [0]>} : vector<2x8x8xf32>, vector<2x8x6xf32>, vector<2x8x6xf32> -> vector<2x8x6xf32>
    "tpu.trace_stop"() : () -> ()
    %257 = arith.addf %256, %255 : vector<2x8x6xf32>
    %258 = vector.shape_cast %257 : vector<2x8x6xf32> to vector<16x6xf32>
    %c7_173 = arith.constant 7 : index
    %c0_174 = arith.constant 0 : index
    %c0_175 = arith.constant 0 : index
    %259 = vector.load %arg6[%c7_173, %c0_174, %c0_175] : memref<12x24x6xf32, #tpu.memory_space<vmem>>, vector<1x24x6xf32>
    %260 = vector.shape_cast %259 : vector<1x24x6xf32> to vector<24x6xf32>
    %cst_176 = arith.constant dense<0.000000e+00> : vector<16x6xf32>
    %261 = tpu.matmul %189, %260, %cst_176 {dimension_numbers = #tpu.dot_dimension_numbers<[1], [0], [0], [1], [0, 0, 1, 1], [], []>} : vector<16x24xf32>, vector<24x6xf32>, vector<16x6xf32> -> vector<16x6xf32>
    %c7_177 = arith.constant 7 : index
    %c0_178 = arith.constant 0 : index
    %c0_179 = arith.constant 0 : index
    %262 = vector.load %arg8[%c7_177, %c0_178, %c0_179] : memref<12x1x6xf32, #tpu.memory_space<vmem>>, vector<1x1x6xf32>
    %263 = vector.shape_cast %262 : vector<1x1x6xf32> to vector<1x6xf32>
    %264 = vector.broadcast %263 : vector<1x6xf32> to vector<16x6xf32>
    %265 = arith.addf %261, %264 : vector<16x6xf32>
    %c9 = arith.constant 9 : index
    %c0_180 = arith.constant 0 : index
    %c0_181 = arith.constant 0 : index
    %266 = vector.load %arg7[%c9, %c0_180, %c0_181] : memref<18x6x6xf32, #tpu.memory_space<vmem>>, vector<1x6x6xf32>
    %267 = vector.shape_cast %266 : vector<1x6x6xf32> to vector<6x6xf32>
    %cst_182 = arith.constant dense<0.000000e+00> : vector<16x6xf32>
    %268 = tpu.matmul %208, %267, %cst_182 {dimension_numbers = #tpu.dot_dimension_numbers<[1], [0], [0], [1], [0, 0, 1, 1], [], []>} : vector<16x6xf32>, vector<6x6xf32>, vector<16x6xf32> -> vector<16x6xf32>
    %269 = arith.addf %265, %268 : vector<16x6xf32>
    %c10 = arith.constant 10 : index
    %c0_183 = arith.constant 0 : index
    %c0_184 = arith.constant 0 : index
    %270 = vector.load %arg7[%c10, %c0_183, %c0_184] : memref<18x6x6xf32, #tpu.memory_space<vmem>>, vector<1x6x6xf32>
    %271 = vector.shape_cast %270 : vector<1x6x6xf32> to vector<6x6xf32>
    %cst_185 = arith.constant dense<0.000000e+00> : vector<16x6xf32>
    %272 = tpu.matmul %231, %271, %cst_185 {dimension_numbers = #tpu.dot_dimension_numbers<[1], [0], [0], [1], [0, 0, 1, 1], [], []>} : vector<16x6xf32>, vector<6x6xf32>, vector<16x6xf32> -> vector<16x6xf32>
    %273 = arith.addf %269, %272 : vector<16x6xf32>
    %c11 = arith.constant 11 : index
    %c0_186 = arith.constant 0 : index
    %c0_187 = arith.constant 0 : index
    %274 = vector.load %arg7[%c11, %c0_186, %c0_187] : memref<18x6x6xf32, #tpu.memory_space<vmem>>, vector<1x6x6xf32>
    %275 = vector.shape_cast %274 : vector<1x6x6xf32> to vector<6x6xf32>
    %cst_188 = arith.constant dense<0.000000e+00> : vector<16x6xf32>
    %276 = tpu.matmul %258, %275, %cst_188 {dimension_numbers = #tpu.dot_dimension_numbers<[1], [0], [0], [1], [0, 0, 1, 1], [], []>} : vector<16x6xf32>, vector<6x6xf32>, vector<16x6xf32> -> vector<16x6xf32>
    %277 = arith.addf %273, %276 : vector<16x6xf32>
    %278 = vector.broadcast %186 : vector<16x1xf32> to vector<16x6xf32>
    %279 = arith.mulf %277, %278 : vector<16x6xf32>
    %cst_189 = arith.constant 0.000000e+00 : f32
    %280 = vector.broadcast %cst_189 : f32 to vector<16x6xf32>
    %281 = arith.maximumf %279, %280 : vector<16x6xf32>
    %c7_190 = arith.constant 7 : index
    %c0_191 = arith.constant 0 : index
    %c0_192 = arith.constant 0 : index
    %282 = vector.load %arg10[%c7_190, %c0_191, %c0_192] : memref<12x6x24xf32, #tpu.memory_space<vmem>>, vector<1x6x24xf32>
    %283 = vector.shape_cast %282 : vector<1x6x24xf32> to vector<6x24xf32>
    %cst_193 = arith.constant dense<0.000000e+00> : vector<16x24xf32>
    %284 = tpu.matmul %281, %283, %cst_193 {dimension_numbers = #tpu.dot_dimension_numbers<[1], [0], [0], [1], [0, 0, 1, 1], [], []>} : vector<16x6xf32>, vector<6x24xf32>, vector<16x24xf32> -> vector<16x24xf32>
    %285 = arith.addf %254, %284 : vector<16x24xf32>
    %c2_194 = arith.constant 2 : index
    %c0_195 = arith.constant 0 : index
    %c0_196 = arith.constant 0 : index
    %286 = vector.load %arg2[%c2_194, %c0_195, %c0_196] : memref<3x24x8xf32, #tpu.memory_space<vmem>>, vector<1x24x8xf32>
    %287 = vector.shape_cast %286 : vector<1x24x8xf32> to vector<24x8xf32>
    %cst_197 = arith.constant dense<0.000000e+00> : vector<16x8xf32>
    %288 = tpu.matmul %1, %287, %cst_197 {dimension_numbers = #tpu.dot_dimension_numbers<[1], [0], [0], [1], [0, 0, 1, 1], [], []>} : vector<16x24xf32>, vector<24x8xf32>, vector<16x8xf32> -> vector<16x8xf32>
    %c2_198 = arith.constant 2 : index
    %c0_199 = arith.constant 0 : index
    %c0_200 = arith.constant 0 : index
    %289 = vector.load %arg3[%c2_198, %c0_199, %c0_200] : memref<3x1x8xf32, #tpu.memory_space<vmem>>, vector<1x1x8xf32>
    %290 = vector.shape_cast %289 : vector<1x1x8xf32> to vector<1x8xf32>
    %291 = vector.broadcast %290 : vector<1x8xf32> to vector<16x8xf32>
    %292 = arith.addf %288, %291 : vector<16x8xf32>
    %c2_201 = arith.constant 2 : index
    %c0_202 = arith.constant 0 : index
    %c0_203 = arith.constant 0 : index
    %293 = vector.load %arg4[%c2_201, %c0_202, %c0_203] : memref<3x24x8xf32, #tpu.memory_space<vmem>>, vector<1x24x8xf32>
    %294 = vector.shape_cast %293 : vector<1x24x8xf32> to vector<24x8xf32>
    %cst_204 = arith.constant dense<0.000000e+00> : vector<16x8xf32>
    %295 = tpu.matmul %1, %294, %cst_204 {dimension_numbers = #tpu.dot_dimension_numbers<[1], [0], [0], [1], [0, 0, 1, 1], [], []>} : vector<16x24xf32>, vector<24x8xf32>, vector<16x8xf32> -> vector<16x8xf32>
    %c2_205 = arith.constant 2 : index
    %c0_206 = arith.constant 0 : index
    %c0_207 = arith.constant 0 : index
    %296 = vector.load %arg5[%c2_205, %c0_206, %c0_207] : memref<3x1x8xf32, #tpu.memory_space<vmem>>, vector<1x1x8xf32>
    %297 = vector.shape_cast %296 : vector<1x1x8xf32> to vector<1x8xf32>
    %298 = vector.broadcast %297 : vector<1x8xf32> to vector<16x8xf32>
    %299 = arith.addf %295, %298 : vector<16x8xf32>
    %300 = vector.shape_cast %292 : vector<16x8xf32> to vector<2x8x8xf32>
    %301 = vector.shape_cast %299 : vector<16x8xf32> to vector<2x8x8xf32>
    "tpu.trace_start"() <{level = 10 : i32, message = "bnd,bmd->bnm"}> : () -> ()
    %cst_208 = arith.constant dense<0.000000e+00> : vector<2x8x8xf32>
    %302 = tpu.matmul %300, %301, %cst_208 {dimension_numbers = #tpu.dot_dimension_numbers<[2], [2], [1], [1], [0, 0, 0, 1, 1, 1], [0], [0]>} : vector<2x8x8xf32>, vector<2x8x8xf32>, vector<2x8x8xf32> -> vector<2x8x8xf32>
    "tpu.trace_stop"() : () -> ()
    %cst_209 = arith.constant 0.353553385 : f32
    %303 = vector.broadcast %cst_209 : f32 to vector<2x8x8xf32>
    %304 = arith.mulf %302, %303 : vector<2x8x8xf32>
    %cst_210 = arith.constant 0.000000e+00 : f32
    %305 = vector.broadcast %cst_210 : f32 to vector<2x8x8xf32>
    %306 = arith.cmpf oeq, %4, %305 : vector<2x8x8xf32>
    %cst_211 = arith.constant -1.000000e+09 : f32
    %307 = vector.broadcast %cst_211 : f32 to vector<2x8x8xf32>
    %308 = arith.select %306, %307, %304 : vector<2x8x8xi1>, vector<2x8x8xf32>
    %cst_212 = arith.constant dense<0xFF800000> : vector<2x8xf32>
    %309 = vector.multi_reduction <maximumf>, %308, %cst_212 [2] : vector<2x8x8xf32> to vector<2x8xf32>
    %310 = vector.shape_cast %309 : vector<2x8xf32> to vector<2x8x1xf32>
    %311 = vector.broadcast %310 : vector<2x8x1xf32> to vector<2x8x8xf32>
    %312 = arith.subf %308, %311 : vector<2x8x8xf32>
    %313 = math.exp %312 : vector<2x8x8xf32>
    %cst_213 = arith.constant dense<0.000000e+00> : vector<2x8xf32>
    %314 = vector.multi_reduction <add>, %313, %cst_213 [2] : vector<2x8x8xf32> to vector<2x8xf32>
    %315 = vector.shape_cast %314 : vector<2x8xf32> to vector<2x8x1xf32>
    %316 = tpu.reciprocal %315 {approx = true} : vector<2x8x1xf32> -> vector<2x8x1xf32>
    %317 = vector.broadcast %316 : vector<2x8x1xf32> to vector<2x8x8xf32>
    %318 = arith.mulf %313, %317 : vector<2x8x8xf32>
    %cst_214 = arith.constant dense<0.000000e+00> : vector<2x8xf32>
    %319 = vector.multi_reduction <add>, %318, %cst_214 [2] : vector<2x8x8xf32> to vector<2x8xf32>
    %320 = vector.shape_cast %319 : vector<2x8xf32> to vector<2x8x1xf32>
    %cst_215 = arith.constant 1.000000e+00 : f32
    %321 = vector.broadcast %cst_215 : f32 to vector<2x8x1xf32>
    %322 = arith.addf %320, %321 : vector<2x8x1xf32>
    %323 = tpu.reciprocal %322 {approx = true} : vector<2x8x1xf32> -> vector<2x8x1xf32>
    %324 = vector.shape_cast %323 : vector<2x8x1xf32> to vector<16x1xf32>
    "tpu.trace_start"() <{level = 10 : i32, message = "bij,bjd->bid"}> : () -> ()
    %cst_216 = arith.constant dense<0.000000e+00> : vector<2x8x24xf32>
    %325 = tpu.matmul %318, %0, %cst_216 {dimension_numbers = #tpu.dot_dimension_numbers<[2], [1], [1], [2], [0, 0, 0, 1, 1, 2], [0], [0]>} : vector<2x8x8xf32>, vector<2x8x24xf32>, vector<2x8x24xf32> -> vector<2x8x24xf32>
    "tpu.trace_stop"() : () -> ()
    %326 = arith.addf %325, %0 : vector<2x8x24xf32>
    %327 = vector.shape_cast %326 : vector<2x8x24xf32> to vector<16x24xf32>
    %c8_217 = arith.constant 8 : index
    %c0_218 = arith.constant 0 : index
    %c0_219 = arith.constant 0 : index
    %328 = vector.load %arg6[%c8_217, %c0_218, %c0_219] : memref<12x24x6xf32, #tpu.memory_space<vmem>>, vector<1x24x6xf32>
    %329 = vector.shape_cast %328 : vector<1x24x6xf32> to vector<24x6xf32>
    %cst_220 = arith.constant dense<0.000000e+00> : vector<16x6xf32>
    %330 = tpu.matmul %327, %329, %cst_220 {dimension_numbers = #tpu.dot_dimension_numbers<[1], [0], [0], [1], [0, 0, 1, 1], [], []>} : vector<16x24xf32>, vector<24x6xf32>, vector<16x6xf32> -> vector<16x6xf32>
    %c8_221 = arith.constant 8 : index
    %c0_222 = arith.constant 0 : index
    %c0_223 = arith.constant 0 : index
    %331 = vector.load %arg8[%c8_221, %c0_222, %c0_223] : memref<12x1x6xf32, #tpu.memory_space<vmem>>, vector<1x1x6xf32>
    %332 = vector.shape_cast %331 : vector<1x1x6xf32> to vector<1x6xf32>
    %333 = vector.broadcast %332 : vector<1x6xf32> to vector<16x6xf32>
    %334 = arith.addf %330, %333 : vector<16x6xf32>
    %335 = vector.broadcast %324 : vector<16x1xf32> to vector<16x6xf32>
    %336 = arith.mulf %334, %335 : vector<16x6xf32>
    %cst_224 = arith.constant 0.000000e+00 : f32
    %337 = vector.broadcast %cst_224 : f32 to vector<16x6xf32>
    %338 = arith.maximumf %336, %337 : vector<16x6xf32>
    %c8_225 = arith.constant 8 : index
    %c0_226 = arith.constant 0 : index
    %c0_227 = arith.constant 0 : index
    %339 = vector.load %arg10[%c8_225, %c0_226, %c0_227] : memref<12x6x24xf32, #tpu.memory_space<vmem>>, vector<1x6x24xf32>
    %340 = vector.shape_cast %339 : vector<1x6x24xf32> to vector<6x24xf32>
    %cst_228 = arith.constant dense<0.000000e+00> : vector<16x24xf32>
    %341 = tpu.matmul %338, %340, %cst_228 {dimension_numbers = #tpu.dot_dimension_numbers<[1], [0], [0], [1], [0, 0, 1, 1], [], []>} : vector<16x6xf32>, vector<6x24xf32>, vector<16x24xf32> -> vector<16x24xf32>
    %342 = arith.addf %285, %341 : vector<16x24xf32>
    %343 = vector.shape_cast %338 : vector<16x6xf32> to vector<2x8x6xf32>
    "tpu.trace_start"() <{level = 10 : i32, message = "bij,bjd->bid"}> : () -> ()
    %cst_229 = arith.constant dense<0.000000e+00> : vector<2x8x6xf32>
    %344 = tpu.matmul %318, %343, %cst_229 {dimension_numbers = #tpu.dot_dimension_numbers<[2], [1], [1], [2], [0, 0, 0, 1, 1, 2], [0], [0]>} : vector<2x8x8xf32>, vector<2x8x6xf32>, vector<2x8x6xf32> -> vector<2x8x6xf32>
    "tpu.trace_stop"() : () -> ()
    %345 = arith.addf %344, %343 : vector<2x8x6xf32>
    %346 = vector.shape_cast %345 : vector<2x8x6xf32> to vector<16x6xf32>
    %c9_230 = arith.constant 9 : index
    %c0_231 = arith.constant 0 : index
    %c0_232 = arith.constant 0 : index
    %347 = vector.load %arg6[%c9_230, %c0_231, %c0_232] : memref<12x24x6xf32, #tpu.memory_space<vmem>>, vector<1x24x6xf32>
    %348 = vector.shape_cast %347 : vector<1x24x6xf32> to vector<24x6xf32>
    %cst_233 = arith.constant dense<0.000000e+00> : vector<16x6xf32>
    %349 = tpu.matmul %327, %348, %cst_233 {dimension_numbers = #tpu.dot_dimension_numbers<[1], [0], [0], [1], [0, 0, 1, 1], [], []>} : vector<16x24xf32>, vector<24x6xf32>, vector<16x6xf32> -> vector<16x6xf32>
    %c9_234 = arith.constant 9 : index
    %c0_235 = arith.constant 0 : index
    %c0_236 = arith.constant 0 : index
    %350 = vector.load %arg8[%c9_234, %c0_235, %c0_236] : memref<12x1x6xf32, #tpu.memory_space<vmem>>, vector<1x1x6xf32>
    %351 = vector.shape_cast %350 : vector<1x1x6xf32> to vector<1x6xf32>
    %352 = vector.broadcast %351 : vector<1x6xf32> to vector<16x6xf32>
    %353 = arith.addf %349, %352 : vector<16x6xf32>
    %c12 = arith.constant 12 : index
    %c0_237 = arith.constant 0 : index
    %c0_238 = arith.constant 0 : index
    %354 = vector.load %arg7[%c12, %c0_237, %c0_238] : memref<18x6x6xf32, #tpu.memory_space<vmem>>, vector<1x6x6xf32>
    %355 = vector.shape_cast %354 : vector<1x6x6xf32> to vector<6x6xf32>
    %cst_239 = arith.constant dense<0.000000e+00> : vector<16x6xf32>
    %356 = tpu.matmul %346, %355, %cst_239 {dimension_numbers = #tpu.dot_dimension_numbers<[1], [0], [0], [1], [0, 0, 1, 1], [], []>} : vector<16x6xf32>, vector<6x6xf32>, vector<16x6xf32> -> vector<16x6xf32>
    %357 = arith.addf %353, %356 : vector<16x6xf32>
    %358 = vector.broadcast %324 : vector<16x1xf32> to vector<16x6xf32>
    %359 = arith.mulf %357, %358 : vector<16x6xf32>
    %cst_240 = arith.constant 0.000000e+00 : f32
    %360 = vector.broadcast %cst_240 : f32 to vector<16x6xf32>
    %361 = arith.maximumf %359, %360 : vector<16x6xf32>
    %c9_241 = arith.constant 9 : index
    %c0_242 = arith.constant 0 : index
    %c0_243 = arith.constant 0 : index
    %362 = vector.load %arg10[%c9_241, %c0_242, %c0_243] : memref<12x6x24xf32, #tpu.memory_space<vmem>>, vector<1x6x24xf32>
    %363 = vector.shape_cast %362 : vector<1x6x24xf32> to vector<6x24xf32>
    %cst_244 = arith.constant dense<0.000000e+00> : vector<16x24xf32>
    %364 = tpu.matmul %361, %363, %cst_244 {dimension_numbers = #tpu.dot_dimension_numbers<[1], [0], [0], [1], [0, 0, 1, 1], [], []>} : vector<16x6xf32>, vector<6x24xf32>, vector<16x24xf32> -> vector<16x24xf32>
    %365 = arith.addf %342, %364 : vector<16x24xf32>
    %366 = vector.shape_cast %361 : vector<16x6xf32> to vector<2x8x6xf32>
    "tpu.trace_start"() <{level = 10 : i32, message = "bij,bjd->bid"}> : () -> ()
    %cst_245 = arith.constant dense<0.000000e+00> : vector<2x8x6xf32>
    %367 = tpu.matmul %318, %366, %cst_245 {dimension_numbers = #tpu.dot_dimension_numbers<[2], [1], [1], [2], [0, 0, 0, 1, 1, 2], [0], [0]>} : vector<2x8x8xf32>, vector<2x8x6xf32>, vector<2x8x6xf32> -> vector<2x8x6xf32>
    "tpu.trace_stop"() : () -> ()
    %368 = arith.addf %367, %366 : vector<2x8x6xf32>
    %369 = vector.shape_cast %368 : vector<2x8x6xf32> to vector<16x6xf32>
    %c10_246 = arith.constant 10 : index
    %c0_247 = arith.constant 0 : index
    %c0_248 = arith.constant 0 : index
    %370 = vector.load %arg6[%c10_246, %c0_247, %c0_248] : memref<12x24x6xf32, #tpu.memory_space<vmem>>, vector<1x24x6xf32>
    %371 = vector.shape_cast %370 : vector<1x24x6xf32> to vector<24x6xf32>
    %cst_249 = arith.constant dense<0.000000e+00> : vector<16x6xf32>
    %372 = tpu.matmul %327, %371, %cst_249 {dimension_numbers = #tpu.dot_dimension_numbers<[1], [0], [0], [1], [0, 0, 1, 1], [], []>} : vector<16x24xf32>, vector<24x6xf32>, vector<16x6xf32> -> vector<16x6xf32>
    %c10_250 = arith.constant 10 : index
    %c0_251 = arith.constant 0 : index
    %c0_252 = arith.constant 0 : index
    %373 = vector.load %arg8[%c10_250, %c0_251, %c0_252] : memref<12x1x6xf32, #tpu.memory_space<vmem>>, vector<1x1x6xf32>
    %374 = vector.shape_cast %373 : vector<1x1x6xf32> to vector<1x6xf32>
    %375 = vector.broadcast %374 : vector<1x6xf32> to vector<16x6xf32>
    %376 = arith.addf %372, %375 : vector<16x6xf32>
    %c13 = arith.constant 13 : index
    %c0_253 = arith.constant 0 : index
    %c0_254 = arith.constant 0 : index
    %377 = vector.load %arg7[%c13, %c0_253, %c0_254] : memref<18x6x6xf32, #tpu.memory_space<vmem>>, vector<1x6x6xf32>
    %378 = vector.shape_cast %377 : vector<1x6x6xf32> to vector<6x6xf32>
    %cst_255 = arith.constant dense<0.000000e+00> : vector<16x6xf32>
    %379 = tpu.matmul %346, %378, %cst_255 {dimension_numbers = #tpu.dot_dimension_numbers<[1], [0], [0], [1], [0, 0, 1, 1], [], []>} : vector<16x6xf32>, vector<6x6xf32>, vector<16x6xf32> -> vector<16x6xf32>
    %380 = arith.addf %376, %379 : vector<16x6xf32>
    %c14 = arith.constant 14 : index
    %c0_256 = arith.constant 0 : index
    %c0_257 = arith.constant 0 : index
    %381 = vector.load %arg7[%c14, %c0_256, %c0_257] : memref<18x6x6xf32, #tpu.memory_space<vmem>>, vector<1x6x6xf32>
    %382 = vector.shape_cast %381 : vector<1x6x6xf32> to vector<6x6xf32>
    %cst_258 = arith.constant dense<0.000000e+00> : vector<16x6xf32>
    %383 = tpu.matmul %369, %382, %cst_258 {dimension_numbers = #tpu.dot_dimension_numbers<[1], [0], [0], [1], [0, 0, 1, 1], [], []>} : vector<16x6xf32>, vector<6x6xf32>, vector<16x6xf32> -> vector<16x6xf32>
    %384 = arith.addf %380, %383 : vector<16x6xf32>
    %385 = vector.broadcast %324 : vector<16x1xf32> to vector<16x6xf32>
    %386 = arith.mulf %384, %385 : vector<16x6xf32>
    %cst_259 = arith.constant 0.000000e+00 : f32
    %387 = vector.broadcast %cst_259 : f32 to vector<16x6xf32>
    %388 = arith.maximumf %386, %387 : vector<16x6xf32>
    %c10_260 = arith.constant 10 : index
    %c0_261 = arith.constant 0 : index
    %c0_262 = arith.constant 0 : index
    %389 = vector.load %arg10[%c10_260, %c0_261, %c0_262] : memref<12x6x24xf32, #tpu.memory_space<vmem>>, vector<1x6x24xf32>
    %390 = vector.shape_cast %389 : vector<1x6x24xf32> to vector<6x24xf32>
    %cst_263 = arith.constant dense<0.000000e+00> : vector<16x24xf32>
    %391 = tpu.matmul %388, %390, %cst_263 {dimension_numbers = #tpu.dot_dimension_numbers<[1], [0], [0], [1], [0, 0, 1, 1], [], []>} : vector<16x6xf32>, vector<6x24xf32>, vector<16x24xf32> -> vector<16x24xf32>
    %392 = arith.addf %365, %391 : vector<16x24xf32>
    %393 = vector.shape_cast %388 : vector<16x6xf32> to vector<2x8x6xf32>
    "tpu.trace_start"() <{level = 10 : i32, message = "bij,bjd->bid"}> : () -> ()
    %cst_264 = arith.constant dense<0.000000e+00> : vector<2x8x6xf32>
    %394 = tpu.matmul %318, %393, %cst_264 {dimension_numbers = #tpu.dot_dimension_numbers<[2], [1], [1], [2], [0, 0, 0, 1, 1, 2], [0], [0]>} : vector<2x8x8xf32>, vector<2x8x6xf32>, vector<2x8x6xf32> -> vector<2x8x6xf32>
    "tpu.trace_stop"() : () -> ()
    %395 = arith.addf %394, %393 : vector<2x8x6xf32>
    %396 = vector.shape_cast %395 : vector<2x8x6xf32> to vector<16x6xf32>
    %c11_265 = arith.constant 11 : index
    %c0_266 = arith.constant 0 : index
    %c0_267 = arith.constant 0 : index
    %397 = vector.load %arg6[%c11_265, %c0_266, %c0_267] : memref<12x24x6xf32, #tpu.memory_space<vmem>>, vector<1x24x6xf32>
    %398 = vector.shape_cast %397 : vector<1x24x6xf32> to vector<24x6xf32>
    %cst_268 = arith.constant dense<0.000000e+00> : vector<16x6xf32>
    %399 = tpu.matmul %327, %398, %cst_268 {dimension_numbers = #tpu.dot_dimension_numbers<[1], [0], [0], [1], [0, 0, 1, 1], [], []>} : vector<16x24xf32>, vector<24x6xf32>, vector<16x6xf32> -> vector<16x6xf32>
    %c11_269 = arith.constant 11 : index
    %c0_270 = arith.constant 0 : index
    %c0_271 = arith.constant 0 : index
    %400 = vector.load %arg8[%c11_269, %c0_270, %c0_271] : memref<12x1x6xf32, #tpu.memory_space<vmem>>, vector<1x1x6xf32>
    %401 = vector.shape_cast %400 : vector<1x1x6xf32> to vector<1x6xf32>
    %402 = vector.broadcast %401 : vector<1x6xf32> to vector<16x6xf32>
    %403 = arith.addf %399, %402 : vector<16x6xf32>
    %c15 = arith.constant 15 : index
    %c0_272 = arith.constant 0 : index
    %c0_273 = arith.constant 0 : index
    %404 = vector.load %arg7[%c15, %c0_272, %c0_273] : memref<18x6x6xf32, #tpu.memory_space<vmem>>, vector<1x6x6xf32>
    %405 = vector.shape_cast %404 : vector<1x6x6xf32> to vector<6x6xf32>
    %cst_274 = arith.constant dense<0.000000e+00> : vector<16x6xf32>
    %406 = tpu.matmul %346, %405, %cst_274 {dimension_numbers = #tpu.dot_dimension_numbers<[1], [0], [0], [1], [0, 0, 1, 1], [], []>} : vector<16x6xf32>, vector<6x6xf32>, vector<16x6xf32> -> vector<16x6xf32>
    %407 = arith.addf %403, %406 : vector<16x6xf32>
    %c16 = arith.constant 16 : index
    %c0_275 = arith.constant 0 : index
    %c0_276 = arith.constant 0 : index
    %408 = vector.load %arg7[%c16, %c0_275, %c0_276] : memref<18x6x6xf32, #tpu.memory_space<vmem>>, vector<1x6x6xf32>
    %409 = vector.shape_cast %408 : vector<1x6x6xf32> to vector<6x6xf32>
    %cst_277 = arith.constant dense<0.000000e+00> : vector<16x6xf32>
    %410 = tpu.matmul %369, %409, %cst_277 {dimension_numbers = #tpu.dot_dimension_numbers<[1], [0], [0], [1], [0, 0, 1, 1], [], []>} : vector<16x6xf32>, vector<6x6xf32>, vector<16x6xf32> -> vector<16x6xf32>
    %411 = arith.addf %407, %410 : vector<16x6xf32>
    %c17 = arith.constant 17 : index
    %c0_278 = arith.constant 0 : index
    %c0_279 = arith.constant 0 : index
    %412 = vector.load %arg7[%c17, %c0_278, %c0_279] : memref<18x6x6xf32, #tpu.memory_space<vmem>>, vector<1x6x6xf32>
    %413 = vector.shape_cast %412 : vector<1x6x6xf32> to vector<6x6xf32>
    %cst_280 = arith.constant dense<0.000000e+00> : vector<16x6xf32>
    %414 = tpu.matmul %396, %413, %cst_280 {dimension_numbers = #tpu.dot_dimension_numbers<[1], [0], [0], [1], [0, 0, 1, 1], [], []>} : vector<16x6xf32>, vector<6x6xf32>, vector<16x6xf32> -> vector<16x6xf32>
    %415 = arith.addf %411, %414 : vector<16x6xf32>
    %416 = vector.broadcast %324 : vector<16x1xf32> to vector<16x6xf32>
    %417 = arith.mulf %415, %416 : vector<16x6xf32>
    %cst_281 = arith.constant 0.000000e+00 : f32
    %418 = vector.broadcast %cst_281 : f32 to vector<16x6xf32>
    %419 = arith.maximumf %417, %418 : vector<16x6xf32>
    %c11_282 = arith.constant 11 : index
    %c0_283 = arith.constant 0 : index
    %c0_284 = arith.constant 0 : index
    %420 = vector.load %arg10[%c11_282, %c0_283, %c0_284] : memref<12x6x24xf32, #tpu.memory_space<vmem>>, vector<1x6x24xf32>
    %421 = vector.shape_cast %420 : vector<1x6x24xf32> to vector<6x24xf32>
    %cst_285 = arith.constant dense<0.000000e+00> : vector<16x24xf32>
    %422 = tpu.matmul %419, %421, %cst_285 {dimension_numbers = #tpu.dot_dimension_numbers<[1], [0], [0], [1], [0, 0, 1, 1], [], []>} : vector<16x6xf32>, vector<6x24xf32>, vector<16x24xf32> -> vector<16x24xf32>
    %423 = arith.addf %392, %422 : vector<16x24xf32>
    %424 = vector.shape_cast %423 : vector<16x24xf32> to vector<2x8x24xf32>
    %c0_286 = arith.constant 0 : index
    %c0_287 = arith.constant 0 : index
    %c0_288 = arith.constant 0 : index
    %425 = vector.load %arg12[%c0_286, %c0_287, %c0_288] : memref<2x8x24xf32, #tpu.memory_space<vmem>>, vector<2x8x24xf32>
    tpu.vector_store %arg12[%c0_286, %c0_287, %c0_288], %424 {strides = array<i32>} : memref<2x8x24xf32, #tpu.memory_space<vmem>>, vector<2x8x24xf32>,
    return
  }
}

module attributes {stable_mosaic.version = 11 : i64} {
  func.func @kernel(%arg0: memref<2x8x24xf32, #tpu.memory_space<vmem>>, %arg1: memref<2x8x24xf32, #tpu.memory_space<vmem>>, %arg2: memref<2x8x24xf32, #tpu.memory_space<vmem>>, %arg3: memref<2x8x24xf32, #tpu.memory_space<vmem>>, %arg4: memref<4x24x24xf32, #tpu.memory_space<vmem>>, %arg5: memref<1x24xf32, #tpu.memory_space<vmem>>, %arg6: memref<2x8x24xf32, #tpu.memory_space<vmem>>) attributes {dimension_semantics = [], scalar_prefetch = 0 : i64, scratch_operands = 0 : i64, tpu.core_type = #tpu.core_type<tc>} {
    %c0 = arith.constant 0 : index
    %c0_0 = arith.constant 0 : index
    %c0_1 = arith.constant 0 : index
    %0 = vector.load %arg0[%c0, %c0_0, %c0_1] : memref<2x8x24xf32, #tpu.memory_space<vmem>>, vector<2x8x24xf32>
    %1 = vector.shape_cast %0 : vector<2x8x24xf32> to vector<16x24xf32>
    %c0_2 = arith.constant 0 : index
    %c0_3 = arith.constant 0 : index
    %c0_4 = arith.constant 0 : index
    %2 = vector.load %arg4[%c0_2, %c0_3, %c0_4] : memref<4x24x24xf32, #tpu.memory_space<vmem>>, vector<1x24x24xf32>
    %3 = vector.shape_cast %2 : vector<1x24x24xf32> to vector<24x24xf32>
    %cst = arith.constant dense<0.000000e+00> : vector<16x24xf32>
    %4 = tpu.matmul %1, %3, %cst {dimension_numbers = #tpu.dot_dimension_numbers<[1], [0], [0], [1], [0, 0, 1, 1], [], []>} : vector<16x24xf32>, vector<24x24xf32>, vector<16x24xf32> -> vector<16x24xf32>
    %c0_5 = arith.constant 0 : index
    %c0_6 = arith.constant 0 : index
    %5 = vector.load %arg5[%c0_5, %c0_6] : memref<1x24xf32, #tpu.memory_space<vmem>>, vector<1x24xf32>
    %6 = vector.broadcast %5 : vector<1x24xf32> to vector<16x24xf32>
    %7 = arith.addf %4, %6 : vector<16x24xf32>
    %c0_7 = arith.constant 0 : index
    %c0_8 = arith.constant 0 : index
    %c0_9 = arith.constant 0 : index
    %8 = vector.load %arg1[%c0_7, %c0_8, %c0_9] : memref<2x8x24xf32, #tpu.memory_space<vmem>>, vector<2x8x24xf32>
    %9 = vector.shape_cast %8 : vector<2x8x24xf32> to vector<16x24xf32>
    %c1 = arith.constant 1 : index
    %c0_10 = arith.constant 0 : index
    %c0_11 = arith.constant 0 : index
    %10 = vector.load %arg4[%c1, %c0_10, %c0_11] : memref<4x24x24xf32, #tpu.memory_space<vmem>>, vector<1x24x24xf32>
    %11 = vector.shape_cast %10 : vector<1x24x24xf32> to vector<24x24xf32>
    %cst_12 = arith.constant dense<0.000000e+00> : vector<16x24xf32>
    %12 = tpu.matmul %9, %11, %cst_12 {dimension_numbers = #tpu.dot_dimension_numbers<[1], [0], [0], [1], [0, 0, 1, 1], [], []>} : vector<16x24xf32>, vector<24x24xf32>, vector<16x24xf32> -> vector<16x24xf32>
    %13 = arith.addf %7, %12 : vector<16x24xf32>
    %c0_13 = arith.constant 0 : index
    %c0_14 = arith.constant 0 : index
    %c0_15 = arith.constant 0 : index
    %14 = vector.load %arg2[%c0_13, %c0_14, %c0_15] : memref<2x8x24xf32, #tpu.memory_space<vmem>>, vector<2x8x24xf32>
    %15 = vector.shape_cast %14 : vector<2x8x24xf32> to vector<16x24xf32>
    %c2 = arith.constant 2 : index
    %c0_16 = arith.constant 0 : index
    %c0_17 = arith.constant 0 : index
    %16 = vector.load %arg4[%c2, %c0_16, %c0_17] : memref<4x24x24xf32, #tpu.memory_space<vmem>>, vector<1x24x24xf32>
    %17 = vector.shape_cast %16 : vector<1x24x24xf32> to vector<24x24xf32>
    %cst_18 = arith.constant dense<0.000000e+00> : vector<16x24xf32>
    %18 = tpu.matmul %15, %17, %cst_18 {dimension_numbers = #tpu.dot_dimension_numbers<[1], [0], [0], [1], [0, 0, 1, 1], [], []>} : vector<16x24xf32>, vector<24x24xf32>, vector<16x24xf32> -> vector<16x24xf32>
    %19 = arith.addf %13, %18 : vector<16x24xf32>
    %c0_19 = arith.constant 0 : index
    %c0_20 = arith.constant 0 : index
    %c0_21 = arith.constant 0 : index
    %20 = vector.load %arg3[%c0_19, %c0_20, %c0_21] : memref<2x8x24xf32, #tpu.memory_space<vmem>>, vector<2x8x24xf32>
    %21 = vector.shape_cast %20 : vector<2x8x24xf32> to vector<16x24xf32>
    %c3 = arith.constant 3 : index
    %c0_22 = arith.constant 0 : index
    %c0_23 = arith.constant 0 : index
    %22 = vector.load %arg4[%c3, %c0_22, %c0_23] : memref<4x24x24xf32, #tpu.memory_space<vmem>>, vector<1x24x24xf32>
    %23 = vector.shape_cast %22 : vector<1x24x24xf32> to vector<24x24xf32>
    %cst_24 = arith.constant dense<0.000000e+00> : vector<16x24xf32>
    %24 = tpu.matmul %21, %23, %cst_24 {dimension_numbers = #tpu.dot_dimension_numbers<[1], [0], [0], [1], [0, 0, 1, 1], [], []>} : vector<16x24xf32>, vector<24x24xf32>, vector<16x24xf32> -> vector<16x24xf32>
    %25 = arith.addf %19, %24 : vector<16x24xf32>
    %26 = vector.shape_cast %25 : vector<16x24xf32> to vector<2x8x24xf32>
    %c0_25 = arith.constant 0 : index
    %c0_26 = arith.constant 0 : index
    %c0_27 = arith.constant 0 : index
    %27 = vector.load %arg6[%c0_25, %c0_26, %c0_27] : memref<2x8x24xf32, #tpu.memory_space<vmem>>, vector<2x8x24xf32>
    tpu.vector_store %arg6[%c0_25, %c0_26, %c0_27], %26 {strides = array<i32>} : memref<2x8x24xf32, #tpu.memory_space<vmem>>, vector<2x8x24xf32>,
    return
  }
}

</mosaic_0001>

<bundles_post_ra>
// kernel: aggcn_forward.5
= control target key start
LH: loop header
LB: loop body
LE: loop exit
PB: predicated region body
PF: predicated region fallthrough
CT: control target
= control target key end

     0   :  { %vm33_vm0 = vcmask 64512   ;;  %vm54_vm1 = vcmask 195584   ;;  %v1018_v0 = vmov 0.0   ;;  %vm1019_vm2 = vmmov 0   ;;  %s1192_s1 = inlined_call_operand.vmem [shape: f32[2,8,24], index: 1, kind: input, shape index: {}]   ;;  %s1193_s0 = inlined_call_operand.vmem [shape: f32[2,8,8], index: 0, kind: input, shape index: {}]   ;;  %s1194_s5 = inlined_call_operand.vmem [shape: f32[24,24], index: 5, kind: input, shape index: {}]   ;;  %s1195_s2 = inlined_call_operand.vmem [shape: f32[2,24,12], index: 2, kind: input, shape index: {}]   ;;  %s1196_s6 = inlined_call_operand.vmem [shape: f32[2,12,24], index: 6, kind: input, shape index: {}]   ;;  %s1197_s4 = inlined_call_operand.vmem [shape: f32[2,1,12], index: 4, kind: input, shape index: {}]   ;;  %s1198_s3 = inlined_call_operand.vmem [shape: f32[1,12,12], index: 3, kind: input, shape index: {}]   ;;  %s1199_s7 = inlined_call_operand.vmem [shape: f32[1,24], index: 7, kind: input, shape index: {}]   ;;  %s1200_s8 = inlined_call_operand.vmem [shape: f32[2,8,24], index: 8, kind: output, shape index: {}]  }
   0x1   :  { %953 = vmatprep.subr.mxu1 %v1018_v0  ;;  %v31_v1 = vld [vmem:[%s1192_s1] sm:$0xff]  ;;  %955 = vmatprep.mubr.msk.f32.mxu1 %vm1019_vm2, %v1018_v0  ;;  %v32_v3 = vld [vmem:[%s1192_s1 + $0x8] sm:$0xff]  ;;  %v46_v4 = vld [vmem:[%s1194_s5 + $0x10] sm:$0xff]  ;;  %vm386_vm3 = vcmask 1043456   ;;  %vm379_vm4 = vcmask 97280  }
   0x2   :  { %v1074_v2 = vld [vmem:[%s1193_s0] sm:$0xff]  ;;  %954 = vmatpush3.msra.mxu1 %v31_v1  ;;  %950 = vmatprep.mubr.msk.f32.mxu0 %vm54_vm1, %v31_v1  ;;  %v1089_v5 = vld [vmem:[%s1193_s0 + $0x8] sm:$0xff]  ;;  %v284_v8 = vld [vmem:[%s1195_s2 + $0x10] sm:$0xff] }
   0x3   :  { %956 = vmatmul.mubr.msk.f32.vlgmr.msra.gmra.mxu1 %vm33_vm0, %v1074_v2  ;;  %958 = vmatprep.subr.mxu1 %v1018_v0  ;;  %v45_v6 = vld [vmem:[%s1194_s5 + $0x8] sm:$0xff]  ;;  %v44_v7 = vld [vmem:[%s1194_s5] sm:$0xff]  ;;  %v34_v11 = vsel %vm33_vm0, %v1074_v2, 0.0  ;;  %v37_v12 = vsel %vm33_vm0, %v1089_v5, 0.0  ;;  %v894_v40 = vld [vmem:[%s1195_s2 + $0x18] sm:$0xff] }
   0x4   :  { %959 = vmatpush3.msra.mxu1 %v32_v3  ;;  %960 = vmatprep.mubr.msk.f32.mxu1 %vm1019_vm2, %v1018_v0  ;;  %v283_v9 = vld [vmem:[%s1195_s2 + $0x8] sm:$0xff]  ;;  %v282_v10 = vld [vmem:[%s1195_s2] sm:$0xff]  ;;  %v905_v54 = vld [vmem:[%s1196_s6 + $0x18] sm:$0xf] }
   0x5   :  { %944 = vmatprep.subr.mxu0 %v46_v4  ;;  %35 = vadd.xlane.f32.xlu0 %v34_v11  ;;  %v378_v19 = vld [vmem:[%s1196_s6 + $0x8] sm:$0xf]  ;;  %v377_v20 = vld [vmem:[%s1196_s6] sm:$0xff]  ;;  %v904_v55 = vld [vmem:[%s1196_s6 + $0x10] sm:$0xff] }
   0x6   :  { %945 = vmatpush3.msra.mxu0 %v46_v4  ;;  %972 = vmatprep.subr.msk.mxu1 %vm386_vm3, %v378_v19  ;;  %v886_v27 = vld [vmem:[%s1197_s4] ss:$0 sm:$0xff]  ;;  %v896_v38 = vld [vmem:[%s1195_s2 + $0x28] sm:$0xff]  ;;  %v898_v57 = vld [vmem:[%s1197_s4 + $0x1] ss:$0 sm:$0xff] }
   0x7   :  { %961 = vmatmul.mubr.msk.f32.vlgmr.msra.gmra.mxu1 %vm33_vm0, %v1089_v5  ;;  %946 = vmatprep.subr.mxu0 %v45_v6  ;;  %v895_v39 = vld [vmem:[%s1195_s2 + $0x20] sm:$0xff]  ;;  %v695_v41 = vld [vmem:[%s1198_s3 + $0x8] sm:$0xf] }
   0x8   :  { %947 = vmatpush3.msra.mxu0 %v45_v6  ;;  %973 = vmatpush3.msk.msra.mxu1 %vm386_vm3, %v378_v19  ;;  %v694_v42 = vld [vmem:[%s1198_s3] sm:$0xff] }
   0x9   :  { %948 = vmatprep.subr.mxu0 %v44_v7  ;;  %38 = vadd.xlane.f32.xlu0 %v37_v12  ;;  %v881_v43 = vld [vmem:[%s1199_s7] ss:$0 sm:$0xff] }
   0xa   :  { %949 = vmatpush3.msra.mxu0 %v44_v7  ;;  %974 = vmatprep.subr.mxu1 %v377_v20 }
   0xb   :  { %951 = vmatmul.mubr.msk.f32.vlgmr.msra.gmra.mxu0 %vm54_vm1, %v32_v3  ;;  %963 = vmatprep.subr.mxu0 %v284_v8 }
   0xc   :  { %964 = vmatpush3.msra.mxu0 %v284_v8  ;;  %975 = vmatpush3.msra.mxu1 %v377_v20 }
   0xd   :  { %965 = vmatprep.subr.mxu0 %v283_v9  ;;  %979 = vmatprep.subr.mxu1 %v1018_v0 }
   0xe   :  { %966 = vmatpush3.msra.mxu0 %v283_v9 }
   0xf   :  { %967 = vmatprep.subr.mxu0 %v282_v10 }
  0x10   :  { %968 = vmatpush3.msra.mxu0 %v282_v10 }
  0x11   :  { %984 = vmatprep.subr.mxu0 %v1018_v0 }
  0x8e   :  { %v36_v21 = vpop.xlane.xlu0 %35 }
  0x8f   :  { %v40_v24 = vadd.f32 1.0, %v36_v21 }
  0x92   :  { %v39_v22 = vpop.xlane.xlu0 %38 }
  0x93   :  { %v41_v23 = vadd.f32 1.0, %v39_v22 }
  0x95   :  { %1014 = vrcp.f32 %v41_v23 }
  0x96   :  { %1016 = vrcp.f32 %v40_v24 }
  0xa2   :  { %v1134_v28 = vpop.eup %1014 }
  0xa3   :  { %v1017_v34 = vpop.eup %1016 }
  0xc3   :  { %v205_v13 = vpop.f32.mrf.mxu1 }
  0xc4   :  { %v206_v14 = vadd.f32 %v205_v13, %v31_v1 }
  0xc5   :  { %v957_v15 = vpop.f32.mrf.mxu1 }
  0xc6   :  { %969 = vmatprep.mubr.msk.f32.mxu0 %vm54_vm1, %v206_v14 }
  0xc7   :  { %v278_v16 = vpop.f32.mrf.mxu1 }
  0xc8   :  { %v279_v17 = vadd.f32 %v278_v16, %v32_v3 }
  0xc9   :  { %v962_v18 = vpop.f32.mrf.mxu1 }
  0xca   :  { %970 = vmatmul.mubr.msk.f32.vlgmr.msra.gmra.mxu0 %vm54_vm1, %v279_v17 }
  0xcb   :  { %986 = vmatprep.mubr.msk.f32.mxu0 %vm1019_vm2, %v1018_v0  ;;  %v952_v25 = vpop.f32.mrf.mxu0 }
  0xcc   :  { %v133_v45 = vadd.f32 %v952_v25, %v881_v43 }
  0xcd   :  { %v1129_v26 = vpop.f32.mrf.mxu0 }
 0x18a   :  { %v971_v29 = vpop.f32.mrf.mxu0 }
 0x18b   :  { %v370_v30 = vadd.f32 %v971_v29, %v886_v27 }
 0x18c   :  { %v364_v31 = vpop.f32.mrf.mxu0 }
 0x18d   :  { %v374_v32 = vmul.f32 %v1134_v28, %v370_v30  ;;  %v365_v33 = vadd.f32 %v886_v27, %v364_v31 }
 0x18f   :  { %v376_v35 = vmax.f32 %v374_v32, 0.0  ;;  %v373_v36 = vmul.f32 %v1017_v34, %v365_v33 }
 0x191   :  { %v375_v37 = vmax.f32 %v373_v36, 0.0  ;;  %985 = vmatpush3.msra.mxu0 %v376_v35 }
 0x192   :  { %987 = vmatmul.mubr.msk.f32.vlgmr.msra.gmra.mxu0 %vm33_vm0, %v1089_v5  ;;  %998 = vmatprep.subr.msk.mxu0 %vm386_vm3, %v695_v41  ;;  %v128_v5 = vadd.f32 %v881_v43, %v1129_v26 }
 0x193   :  { %976 = vmatprep.mubr.msk.f32.mxu1 %vm379_vm4, %v375_v37  ;;  %999 = vmatpush3.msk.msra.mxu0 %vm386_vm3, %v695_v41 }
 0x194   :  { %977 = vmatmul.mubr.msk.f32.vlgmr.msra.gmra.mxu1 %vm379_vm4, %v376_v35  ;;  %1000 = vmatprep.subr.mxu0 %v694_v42 }
 0x195   :  { %980 = vmatpush3.msra.mxu1 %v375_v37  ;;  %981 = vmatprep.mubr.msk.f32.mxu1 %vm1019_vm2, %v1018_v0 }
 0x196   :  { %989 = vmatprep.subr.mxu1 %v896_v38  ;;  %1001 = vmatpush3.msra.mxu0 %v694_v42 }
 0x197   :  { %1005 = vmatprep.subr.msk.mxu0 %vm386_vm3, %v905_v54 }
 0x198   :  { %982 = vmatmul.mubr.msk.f32.vlgmr.msra.gmra.mxu1 %vm33_vm0, %v1074_v2 }
 0x199   :  { %990 = vmatpush3.msra.mxu1 %v896_v38  ;;  %995 = vmatprep.mubr.msk.f32.mxu1 %vm54_vm1, %v206_v14 }
 0x19a   :  { %991 = vmatprep.subr.mxu1 %v895_v39 }
 0x19b   :  { %992 = vmatpush3.msra.mxu1 %v895_v39 }
 0x19c   :  { %993 = vmatprep.subr.mxu1 %v894_v40 }
 0x19d   :  { %994 = vmatpush3.msra.mxu1 %v894_v40 }
 0x19e   :  { %996 = vmatmul.mubr.msk.f32.vlgmr.msra.gmra.mxu1 %vm54_vm1, %v279_v17 }
 0x252   :  { %v603_v44 = vpop.f32.mrf.mxu0 }
 0x253   :  { %v604_v52 = vadd.f32 %v603_v44, %v376_v35 }
 0x254   :  { %v978_v46 = vpop.f32.mrf.mxu1  ;;  %v988_v47 = vpop.f32.mrf.mxu0 }
 0x255   :  { %v466_v48 = vadd.f32 %v978_v46, %v133_v45 }
 0x256   :  { %v456_v49 = vpop.f32.mrf.mxu1 }
 0x257   :  { %v465_v7 = vadd.f32 %v456_v49, %v128_v5 }
 0x258   :  { %v533_v50 = vpop.f32.mrf.mxu1 }
 0x259   :  { %v534_v51 = vadd.f32 %v533_v50, %v375_v37 }
 0x25a   :  { %v983_v53 = vpop.f32.mrf.mxu1 }
 0x25b   :  { %1002 = vmatprep.mubr.msk.f32.mxu0 %vm379_vm4, %v534_v51 }
 0x25c   :  { %1003 = vmatmul.mubr.msk.f32.vlgmr.msra.gmra.mxu0 %vm379_vm4, %v604_v52 }
 0x25d   :  { %1006 = vmatpush3.msk.msra.mxu0 %vm386_vm3, %v905_v54 }
 0x25e   :  { %1007 = vmatprep.subr.mxu0 %v904_v55  ;;  %v997_v56 = vpop.f32.mrf.mxu1 }
 0x25f   :  { %1008 = vmatpush3.msra.mxu0 %v904_v55  ;;  %v691_v59 = vadd.f32 %v997_v56, %v898_v57 }
 0x260   :  { %v685_v58 = vpop.f32.mrf.mxu1 }
 0x261   :  { %v686_v61 = vadd.f32 %v898_v57, %v685_v58 }
 0x31c   :  { %v1004_v60 = vpop.f32.mrf.mxu0 }
 0x31d   :  { %v781_v62 = vadd.f32 %v1004_v60, %v691_v59 }
 0x31e   :  { %v771_v63 = vpop.f32.mrf.mxu0 }
 0x31f   :  { %v780_v0 = vadd.f32 %v771_v63, %v686_v61  ;;  %v783_v1 = vmul.f32 %v1134_v28, %v781_v62 }
 0x321   :  { %v782_v2 = vmul.f32 %v1017_v34, %v780_v0  ;;  %v785_v4 = vmax.f32 %v783_v1, 0.0 }
 0x323   :  { %v784_v3 = vmax.f32 %v782_v2, 0.0 }
 0x325   :  { %1009 = vmatprep.mubr.msk.f32.mxu0 %vm379_vm4, %v784_v3 }
 0x326   :  { %1010 = vmatmul.mubr.msk.f32.vlgmr.msra.gmra.mxu0 %vm379_vm4, %v785_v4 }
 0x3e6   :  { %v1011_v6 = vpop.f32.mrf.mxu0 }
 0x3e7   :  { %v874_v8 = vadd.f32 %v1011_v6, %v466_v48 }
 0x3e8   :  { %v864_v9 = vpop.f32.mrf.mxu0 }
 0x3e9   :  { %876 = vst.msk [vmem:[%s1200_s8 + $0x8] sm:$0xff] %vm54_vm1, %v874_v8  ;;  %v873_v10 = vadd.f32 %v864_v9, %v465_v7 }
 0x3eb   :  { %875 = vst.msk [vmem:[%s1200_s8] sm:$0xff] %vm54_vm1, %v873_v10 }

// kernel: aggcn_forward.6
= control target key start
LH: loop header
LB: loop body
LE: loop exit
PB: predicated region body
PF: predicated region fallthrough
CT: control target
= control target key end

     0   :  { %vm33_vm0 = vcmask 64512   ;;  %vm54_vm1 = vcmask 195584   ;;  %v2223_v0 = vmov 0.0   ;;  %vm2224_vm2 = vmmov 0   ;;  %s2521_s1 = inlined_call_operand.vmem [shape: f32[2,8,24], index: 1, kind: input, shape index: {}]   ;;  %s2522_s0 = inlined_call_operand.vmem [shape: f32[2,8,8], index: 0, kind: input, shape index: {}]   ;;  %s2523_s5 = inlined_call_operand.vmem [shape: f32[24,24], index: 5, kind: input, shape index: {}]   ;;  %s2524_s2 = inlined_call_operand.vmem [shape: f32[4,24,6], index: 2, kind: input, shape index: {}]   ;;  %s2525_s6 = inlined_call_operand.vmem [shape: f32[4,6,24], index: 6, kind: input, shape index: {}]   ;;  %s2526_s4 = inlined_call_operand.vmem [shape: f32[4,1,6], index: 4, kind: input, shape index: {}]   ;;  %s2527_s3 = inlined_call_operand.vmem [shape: f32[6,6,6], index: 3, kind: input, shape index: {}]   ;;  %s2528_s7 = inlined_call_operand.vmem [shape: f32[1,24], index: 7, kind: input, shape index: {}]   ;;  %s2529_s8 = inlined_call_operand.vmem [shape: f32[2,8,24], index: 8, kind: output, shape index: {}]  }
   0x1   :  { %2091 = vmatprep.subr.mxu1 %v2223_v0  ;;  %v31_v1 = vld [vmem:[%s2521_s1] sm:$0xff]  ;;  %2093 = vmatprep.mubr.msk.f32.mxu1 %vm2224_vm2, %v2223_v0  ;;  %v32_v3 = vld [vmem:[%s2521_s1 + $0x8] sm:$0xff]  ;;  %v46_v4 = vld [vmem:[%s2523_s5 + $0x10] sm:$0xff]  ;;  %vm385_vm3 = vcmask 1045504   ;;  %vm378_vm4 = vcmask 48128  }
   0x2   :  { %v2279_v2 = vld [vmem:[%s2522_s0] sm:$0xff]  ;;  %2092 = vmatpush3.msra.mxu1 %v31_v1  ;;  %2088 = vmatprep.mubr.msk.f32.mxu0 %vm54_vm1, %v31_v1  ;;  %v2296_v5 = vld [vmem:[%s2522_s0 + $0x8] sm:$0xff]  ;;  %v284_v8 = vld [vmem:[%s2524_s2 + $0x10] sm:$0xff] }
   0x3   :  { %2094 = vmatmul.mubr.msk.f32.vlgmr.msra.gmra.mxu1 %vm33_vm0, %v2279_v2  ;;  %2096 = vmatprep.subr.mxu1 %v2223_v0  ;;  %v45_v6 = vld [vmem:[%s2523_s5 + $0x8] sm:$0xff]  ;;  %v44_v7 = vld [vmem:[%s2523_s5] sm:$0xff]  ;;  %v34_v11 = vsel %vm33_vm0, %v2279_v2, 0.0  ;;  %v37_v12 = vsel %vm33_vm0, %v2296_v5, 0.0  ;;  %v1951_v39 = vld [vmem:[%s2524_s2 + $0x18] sm:$0xff] }
   0x4   :  { %2097 = vmatpush3.msra.mxu1 %v32_v3  ;;  %2098 = vmatprep.mubr.msk.f32.mxu1 %vm2224_vm2, %v2223_v0  ;;  %v283_v9 = vld [vmem:[%s2524_s2 + $0x8] sm:$0xff]  ;;  %v282_v10 = vld [vmem:[%s2524_s2] sm:$0xff] }
   0x5   :  { %2082 = vmatprep.subr.mxu0 %v46_v4  ;;  %35 = vadd.xlane.f32.xlu0 %v34_v11  ;;  %v377_v19 = vld [vmem:[%s2525_s6] sm:$0x3f]  ;;  %v1953_v37 = vld [vmem:[%s2524_s2 + $0x28] sm:$0xff] }
   0x6   :  { %2083 = vmatpush3.msra.mxu0 %v46_v4  ;;  %2110 = vmatprep.subr.msk.mxu1 %vm385_vm3, %v377_v19  ;;  %v1943_v26 = vld [vmem:[%s2526_s4] ss:$0 sm:$0xff]  ;;  %v1961_v52 = vld [vmem:[%s2525_s6 + $0x8] sm:$0x3f]  ;;  %v1955_v54 = vld [vmem:[%s2526_s4 + $0x1] ss:$0 sm:$0xff] }
   0x7   :  { %2099 = vmatmul.mubr.msk.f32.vlgmr.msra.gmra.mxu1 %vm33_vm0, %v2296_v5  ;;  %2084 = vmatprep.subr.mxu0 %v45_v6  ;;  %v1952_v38 = vld [vmem:[%s2524_s2 + $0x20] sm:$0xff] }
   0x8   :  { %2085 = vmatpush3.msra.mxu0 %v45_v6  ;;  %2111 = vmatpush3.msk.msra.mxu1 %vm385_vm3, %v377_v19  ;;  %v693_v40 = vld [vmem:[%s2527_s3] sm:$0x3f]  ;;  %v1968_v6 = vld [vmem:[%s2524_s2 + $0x38] sm:$0xff] }
   0x9   :  { %2086 = vmatprep.subr.mxu0 %v44_v7  ;;  %38 = vadd.xlane.f32.xlu0 %v37_v12  ;;  %v1938_v41 = vld [vmem:[%s2528_s7] ss:$0 sm:$0xff] }
   0xa   :  { %2087 = vmatpush3.msra.mxu0 %v44_v7  ;;  %2115 = vmatprep.subr.mxu1 %v2223_v0  ;;  %v1969_v4 = vld [vmem:[%s2524_s2 + $0x40] sm:$0xff]  ;;  %v1967_v7 = vld [vmem:[%s2524_s2 + $0x30] sm:$0xff] }
   0xb   :  { %2089 = vmatmul.mubr.msk.f32.vlgmr.msra.gmra.mxu0 %vm54_vm1, %v32_v3  ;;  %2101 = vmatprep.subr.mxu0 %v284_v8 }
   0xc   :  { %2102 = vmatpush3.msra.mxu0 %v284_v8  ;;  %v1974_v8 = vld [vmem:[%s2527_s3 + $0x8] sm:$0x3f] }
   0xd   :  { %2103 = vmatprep.subr.mxu0 %v283_v9 }
   0xe   :  { %2104 = vmatpush3.msra.mxu0 %v283_v9  ;;  %v1978_v9 = vld [vmem:[%s2527_s3 + $0x10] sm:$0x3f] }
   0xf   :  { %2105 = vmatprep.subr.mxu0 %v282_v10 }
  0x10   :  { %2106 = vmatpush3.msra.mxu0 %v282_v10 }
  0x11   :  { %2120 = vmatprep.subr.mxu0 %v2223_v0 }
  0x8e   :  { %v36_v20 = vpop.xlane.xlu0 %35 }
  0x8f   :  { %v40_v23 = vadd.f32 1.0, %v36_v20 }
  0x92   :  { %v39_v21 = vpop.xlane.xlu0 %38 }
  0x93   :  { %v41_v22 = vadd.f32 1.0, %v39_v21 }
  0x95   :  { %2219 = vrcp.f32 %v41_v22 }
  0x96   :  { %2221 = vrcp.f32 %v40_v23 }
  0xa2   :  { %v2342_v27 = vpop.eup %2219 }
  0xa3   :  { %v2345_v33 = vpop.eup %2221 }
  0xc3   :  { %v205_v13 = vpop.f32.mrf.mxu1 }
  0xc4   :  { %v2321_v14 = vadd.f32 %v205_v13, %v31_v1 }
  0xc5   :  { %v2095_v15 = vpop.f32.mrf.mxu1 }
  0xc6   :  { %2107 = vmatprep.mubr.msk.f32.mxu0 %vm54_vm1, %v2321_v14 }
  0xc7   :  { %v278_v16 = vpop.f32.mrf.mxu1 }
  0xc8   :  { %v2325_v17 = vadd.f32 %v278_v16, %v32_v3 }
  0xc9   :  { %v2100_v18 = vpop.f32.mrf.mxu1 }
  0xca   :  { %2108 = vmatmul.mubr.msk.f32.vlgmr.msra.gmra.mxu0 %vm54_vm1, %v2325_v17 }
  0xcb   :  { %2122 = vmatprep.mubr.msk.f32.mxu0 %vm2224_vm2, %v2223_v0  ;;  %v2090_v24 = vpop.f32.mrf.mxu0 }
  0xcc   :  { %v133_v43 = vadd.f32 %v2090_v24, %v1938_v41  ;;  %v1982_v24 = vld [vmem:[%s2525_s6 + $0x10] sm:$0x3f] }
  0xcd   :  { %v2337_v25 = vpop.f32.mrf.mxu0 }
  0xce   :  { %v128_v10 = vadd.f32 %v1938_v41, %v2337_v25 }
 0x18a   :  { %v2109_v28 = vpop.f32.mrf.mxu0 }
 0x18b   :  { %v370_v29 = vadd.f32 %v2109_v28, %v1943_v26 }
 0x18c   :  { %v364_v30 = vpop.f32.mrf.mxu0 }
 0x18d   :  { %v374_v31 = vmul.f32 %v2342_v27, %v370_v29  ;;  %v365_v32 = vadd.f32 %v1943_v26, %v364_v30  ;;  %v1971_v26 = vld [vmem:[%s2526_s4 + $0x2] ss:$0 sm:$0xff] }
 0x18f   :  { %v376_v34 = vmax.f32 %v374_v31, 0.0  ;;  %v373_v35 = vmul.f32 %v2345_v33, %v365_v32 }
 0x191   :  { %v375_v36 = vmax.f32 %v373_v35, 0.0  ;;  %2121 = vmatpush3.msra.mxu0 %v376_v34 }
 0x192   :  { %2123 = vmatmul.mubr.msk.f32.vlgmr.msra.gmra.mxu0 %vm33_vm0, %v2296_v5  ;;  %2134 = vmatprep.subr.msk.mxu0 %vm385_vm3, %v693_v40 }
 0x193   :  { %2112 = vmatprep.mubr.msk.f32.mxu1 %vm378_vm4, %v375_v36  ;;  %2135 = vmatpush3.msk.msra.mxu0 %vm385_vm3, %v693_v40 }
 0x194   :  { %2113 = vmatmul.mubr.msk.f32.vlgmr.msra.gmra.mxu1 %vm378_vm4, %v376_v34  ;;  %2139 = vmatprep.subr.msk.mxu0 %vm385_vm3, %v1961_v52 }
 0x195   :  { %2116 = vmatpush3.msra.mxu1 %v375_v36  ;;  %2117 = vmatprep.mubr.msk.f32.mxu1 %vm2224_vm2, %v2223_v0 }
 0x196   :  { %2125 = vmatprep.subr.mxu1 %v1953_v37 }
 0x198   :  { %2118 = vmatmul.mubr.msk.f32.vlgmr.msra.gmra.mxu1 %vm33_vm0, %v2279_v2 }
 0x199   :  { %2126 = vmatpush3.msra.mxu1 %v1953_v37  ;;  %2131 = vmatprep.mubr.msk.f32.mxu1 %vm54_vm1, %v2321_v14 }
 0x19a   :  { %2127 = vmatprep.subr.mxu1 %v1952_v38 }
 0x19b   :  { %2128 = vmatpush3.msra.mxu1 %v1952_v38 }
 0x19c   :  { %2129 = vmatprep.subr.mxu1 %v1951_v39 }
 0x19d   :  { %2130 = vmatpush3.msra.mxu1 %v1951_v39 }
 0x19e   :  { %2132 = vmatmul.mubr.msk.f32.vlgmr.msra.gmra.mxu1 %vm54_vm1, %v2325_v17  ;;  %2144 = vmatprep.subr.mxu1 %v2223_v0 }
 0x19f   :  { %2146 = vmatprep.mubr.msk.f32.mxu1 %vm2224_vm2, %v2223_v0 }
 0x252   :  { %v602_v42 = vpop.f32.mrf.mxu0 }
 0x253   :  { %v2382_v50 = vadd.f32 %v602_v42, %v376_v34 }
 0x254   :  { %v2114_v44 = vpop.f32.mrf.mxu1  ;;  %v2124_v45 = vpop.f32.mrf.mxu0 }
 0x255   :  { %v465_v46 = vadd.f32 %v2114_v44, %v133_v43  ;;  %v1990_v44 = vld [vmem:[%s2524_s2 + $0x58] sm:$0xff]  ;;  %v1989_v45 = vld [vmem:[%s2524_s2 + $0x50] sm:$0xff] }
 0x256   :  { %v455_v47 = vpop.f32.mrf.mxu1 }
 0x257   :  { %v464_v13 = vadd.f32 %v455_v47, %v128_v10 }
 0x258   :  { %v532_v48 = vpop.f32.mrf.mxu1 }
 0x259   :  { %v2380_v49 = vadd.f32 %v532_v48, %v375_v36 }
 0x25a   :  { %v2119_v51 = vpop.f32.mrf.mxu1 }
 0x25b   :  { %2136 = vmatprep.mubr.msk.f32.mxu0 %vm378_vm4, %v2380_v49 }
 0x25c   :  { %2137 = vmatmul.mubr.msk.f32.vlgmr.msra.gmra.mxu0 %vm378_vm4, %v2382_v50 }
 0x25d   :  { %2140 = vmatpush3.msk.msra.mxu0 %vm385_vm3, %v1961_v52 }
 0x25e   :  { %2149 = vmatprep.subr.mxu0 %v2223_v0  ;;  %v2133_v53 = vpop.f32.mrf.mxu1 }
 0x25f   :  { %v690_v56 = vadd.f32 %v2133_v53, %v1955_v54 }
 0x260   :  { %v684_v55 = vpop.f32.mrf.mxu1 }
 0x261   :  { %v685_v58 = vadd.f32 %v1955_v54, %v684_v55  ;;  %v2007_v55 = vld [vmem:[%s2525_s6 + $0x18] sm:$0x3f] }
 0x31c   :  { %v2138_v57 = vpop.f32.mrf.mxu0 }
 0x31d   :  { %v779_v59 = vadd.f32 %v2138_v57, %v690_v56 }
 0x31e   :  { %v769_v60 = vpop.f32.mrf.mxu0 }
 0x31f   :  { %v778_v61 = vadd.f32 %v769_v60, %v685_v58  ;;  %v781_v62 = vmul.f32 %v2342_v27, %v779_v59  ;;  %v1992_v58 = vld [vmem:[%s2526_s4 + $0x3] ss:$0 sm:$0xff] }
 0x321   :  { %v780_v63 = vmul.f32 %v2345_v33, %v778_v61  ;;  %v783_v3 = vmax.f32 %v781_v62, 0.0 }
 0x323   :  { %v782_v1 = vmax.f32 %v780_v63, 0.0 }
 0x325   :  { %2141 = vmatprep.mubr.msk.f32.mxu0 %vm378_vm4, %v782_v1  ;;  %2145 = vmatpush3.msra.mxu1 %v782_v1 }
 0x326   :  { %2142 = vmatmul.mubr.msk.f32.vlgmr.msra.gmra.mxu0 %vm378_vm4, %v783_v3  ;;  %2147 = vmatmul.mubr.msk.f32.vlgmr.msra.gmra.mxu1 %vm33_vm0, %v2279_v2 }
 0x327   :  { %2150 = vmatpush3.msra.mxu0 %v783_v3  ;;  %2154 = vmatprep.subr.mxu1 %v1969_v4 }
 0x328   :  { %2155 = vmatpush3.msra.mxu1 %v1969_v4  ;;  %2160 = vmatprep.mubr.msk.f32.mxu1 %vm54_vm1, %v2321_v14 }
 0x329   :  { %2156 = vmatprep.subr.mxu1 %v1968_v6  ;;  %2151 = vmatprep.mubr.msk.f32.mxu0 %vm2224_vm2, %v2223_v0 }
 0x32a   :  { %2157 = vmatpush3.msra.mxu1 %v1968_v6  ;;  %2152 = vmatmul.mubr.msk.f32.vlgmr.msra.gmra.mxu0 %vm33_vm0, %v2296_v5 }
 0x32b   :  { %2158 = vmatprep.subr.mxu1 %v1967_v7  ;;  %2165 = vmatprep.mubr.msk.f32.mxu0 %vm378_vm4, %v2380_v49 }
 0x32c   :  { %2159 = vmatpush3.msra.mxu1 %v1967_v7  ;;  %2163 = vmatprep.subr.msk.mxu0 %vm385_vm3, %v1974_v8 }
 0x32d   :  { %2161 = vmatmul.mubr.msk.f32.vlgmr.msra.gmra.mxu1 %vm54_vm1, %v2325_v17  ;;  %2164 = vmatpush3.msk.msra.mxu0 %vm385_vm3, %v1974_v8 }
 0x32e   :  { %2166 = vmatmul.mubr.msk.f32.vlgmr.msra.gmra.mxu0 %vm378_vm4, %v2382_v50  ;;  %2168 = vmatprep.subr.msk.mxu1 %vm385_vm3, %v1978_v9 }
 0x32f   :  { %2169 = vmatpush3.msk.msra.mxu1 %vm385_vm3, %v1978_v9  ;;  %2173 = vmatprep.subr.msk.mxu0 %vm385_vm3, %v1982_v24 }
 0x330   :  { %2178 = vmatprep.subr.mxu1 %v2223_v0  ;;  %2174 = vmatpush3.msk.msra.mxu0 %vm385_vm3, %v1982_v24 }
 0x331   :  { %2183 = vmatprep.subr.mxu0 %v2223_v0 }
 0x3e6   :  { %v2143_v11 = vpop.f32.mrf.mxu0  ;;  %v938_v12 = vpop.f32.mrf.mxu1 }
 0x3e7   :  { %v2436_v15 = vadd.f32 %v2143_v11, %v465_v46  ;;  %v939_v16 = vadd.f32 %v938_v12, %v782_v1  ;;  %v1988_v46 = vld [vmem:[%s2524_s2 + $0x48] sm:$0xff] }
 0x3e8   :  { %v861_v18 = vpop.f32.mrf.mxu0  ;;  %v2148_v19 = vpop.f32.mrf.mxu1 }
 0x3e9   :  { %v2438_v20 = vadd.f32 %v861_v18, %v464_v13  ;;  %2170 = vmatprep.mubr.msk.f32.mxu1 %vm378_vm4, %v939_v16 }
 0x3ea   :  { %v1008_v21 = vpop.f32.mrf.mxu0 }
 0x3eb   :  { %v1009_v22 = vadd.f32 %v1008_v21, %v783_v3 }
 0x3ec   :  { %v2153_v23 = vpop.f32.mrf.mxu0 }
 0x3ed   :  { %2171 = vmatmul.mubr.msk.f32.vlgmr.msra.gmra.mxu1 %vm378_vm4, %v1009_v22  ;;  %v2162_v25 = vpop.f32.mrf.mxu1 }
 0x3ee   :  { %2180 = vmatprep.mubr.msk.f32.mxu1 %vm2224_vm2, %v2223_v0  ;;  %v2167_v29 = vpop.f32.mrf.mxu0  ;;  %v1096_v30 = vadd.f32 %v2162_v25, %v1971_v26 }
 0x3ef   :  { %v1090_v28 = vpop.f32.mrf.mxu1 }
 0x3f0   :  { %v1091_v31 = vadd.f32 %v1971_v26, %v1090_v28  ;;  %v1170_v32 = vpop.f32.mrf.mxu0  ;;  %v1180_v34 = vadd.f32 %v2167_v29, %v1096_v30 }
 0x3f2   :  { %v1179_v36 = vadd.f32 %v1170_v32, %v1091_v31 }
 0x4ad   :  { %v2172_v35 = vpop.f32.mrf.mxu1 }
 0x4ae   :  { %v1268_v37 = vadd.f32 %v2172_v35, %v1180_v34 }
 0x4af   :  { %v1258_v38 = vpop.f32.mrf.mxu1 }
 0x4b0   :  { %v1267_v39 = vadd.f32 %v1258_v38, %v1179_v36  ;;  %v1270_v40 = vmul.f32 %v2342_v27, %v1268_v37 }
 0x4b2   :  { %v1269_v41 = vmul.f32 %v2345_v33, %v1267_v39  ;;  %v1272_v43 = vmax.f32 %v1270_v40, 0.0 }
 0x4b4   :  { %v1271_v42 = vmax.f32 %v1269_v41, 0.0 }
 0x4b6   :  { %2175 = vmatprep.mubr.msk.f32.mxu0 %vm378_vm4, %v1271_v42  ;;  %2179 = vmatpush3.msra.mxu1 %v1271_v42 }
 0x4b7   :  { %2176 = vmatmul.mubr.msk.f32.vlgmr.msra.gmra.mxu0 %vm378_vm4, %v1272_v43  ;;  %2181 = vmatmul.mubr.msk.f32.vlgmr.msra.gmra.mxu1 %vm33_vm0, %v2279_v2  ;;  %v1995_v2 = vld [vmem:[%s2527_s3 + $0x18] sm:$0x3f] }
 0x4b8   :  { %2184 = vmatpush3.msra.mxu0 %v1272_v43  ;;  %2188 = vmatprep.subr.mxu1 %v1990_v44 }
 0x4b9   :  { %2189 = vmatpush3.msra.mxu1 %v1990_v44  ;;  %2194 = vmatprep.mubr.msk.f32.mxu1 %vm54_vm1, %v2321_v14  ;;  %v1999_v14 = vld [vmem:[%s2527_s3 + $0x20] sm:$0x3f] }
 0x4ba   :  { %2190 = vmatprep.subr.mxu1 %v1989_v45  ;;  %2185 = vmatprep.mubr.msk.f32.mxu0 %vm2224_vm2, %v2223_v0  ;;  %v2003_v0 = vld [vmem:[%s2527_s3 + $0x28] sm:$0x3f] }
 0x4bb   :  { %2191 = vmatpush3.msra.mxu1 %v1989_v45  ;;  %2186 = vmatmul.mubr.msk.f32.vlgmr.msra.gmra.mxu0 %vm33_vm0, %v2296_v5 }
 0x4bc   :  { %2192 = vmatprep.subr.mxu1 %v1988_v46  ;;  %2199 = vmatprep.mubr.msk.f32.mxu0 %vm378_vm4, %v2380_v49 }
 0x4bd   :  { %2193 = vmatpush3.msra.mxu1 %v1988_v46  ;;  %2197 = vmatprep.subr.msk.mxu0 %vm385_vm3, %v1995_v2 }
 0x4be   :  { %2195 = vmatmul.mubr.msk.f32.vlgmr.msra.gmra.mxu1 %vm54_vm1, %v2325_v17  ;;  %2198 = vmatpush3.msk.msra.mxu0 %vm385_vm3, %v1995_v2 }
 0x4bf   :  { %2200 = vmatmul.mubr.msk.f32.vlgmr.msra.gmra.mxu0 %vm378_vm4, %v2382_v50  ;;  %2202 = vmatprep.subr.msk.mxu0 %vm385_vm3, %v1999_v14 }
 0x4c0   :  { %2204 = vmatprep.mubr.msk.f32.mxu0 %vm378_vm4, %v939_v16  ;;  %2203 = vmatpush3.msk.msra.mxu0 %vm385_vm3, %v1999_v14 }
 0x4c1   :  { %2207 = vmatprep.subr.msk.mxu1 %vm385_vm3, %v2003_v0  ;;  %2212 = vmatprep.subr.msk.mxu0 %vm385_vm3, %v2007_v55 }
 0x4c2   :  { %2208 = vmatpush3.msk.msra.mxu1 %vm385_vm3, %v2003_v0 }
 0x4c3   :  { %2205 = vmatmul.mubr.msk.f32.vlgmr.msra.gmra.mxu0 %vm378_vm4, %v1009_v22 }
 0x4c4   :  { %2213 = vmatpush3.msk.msra.mxu0 %vm385_vm3, %v2007_v55 }
 0x577   :  { %v2177_v5 = vpop.f32.mrf.mxu0  ;;  %v1427_v17 = vpop.f32.mrf.mxu1 }
 0x578   :  { %v1360_v47 = vadd.f32 %v2177_v5, %v2436_v15  ;;  %v1428_v48 = vadd.f32 %v1427_v17, %v1271_v42 }
 0x579   :  { %v1350_v49 = vpop.f32.mrf.mxu0  ;;  %v2182_v50 = vpop.f32.mrf.mxu1 }
 0x57a   :  { %v1359_v51 = vadd.f32 %v1350_v49, %v2438_v20  ;;  %2209 = vmatprep.mubr.msk.f32.mxu1 %vm378_vm4, %v1428_v48 }
 0x57b   :  { %v1497_v52 = vpop.f32.mrf.mxu0 }
 0x57c   :  { %v1498_v53 = vadd.f32 %v1497_v52, %v1272_v43 }
 0x57d   :  { %v2187_v54 = vpop.f32.mrf.mxu0 }
 0x57e   :  { %2210 = vmatmul.mubr.msk.f32.vlgmr.msra.gmra.mxu1 %vm378_vm4, %v1498_v53  ;;  %v2196_v57 = vpop.f32.mrf.mxu1 }
 0x57f   :  { %v2201_v56 = vpop.f32.mrf.mxu0  ;;  %v1585_v61 = vadd.f32 %v2196_v57, %v1992_v58 }
 0x580   :  { %v1579_v60 = vpop.f32.mrf.mxu1 }
 0x581   :  { %v1659_v59 = vpop.f32.mrf.mxu0  ;;  %v1580_v63 = vadd.f32 %v1992_v58, %v1579_v60  ;;  %v1669_v1 = vadd.f32 %v2201_v56, %v1585_v61 }
 0x583   :  { %v2206_v62 = vpop.f32.mrf.mxu0  ;;  %v1668_v4 = vadd.f32 %v1659_v59, %v1580_v63 }
 0x584   :  { %v1751_v6 = vadd.f32 %v2206_v62, %v1669_v1 }
 0x585   :  { %v1741_v3 = vpop.f32.mrf.mxu0 }
 0x586   :  { %v1750_v8 = vadd.f32 %v1741_v3, %v1668_v4 }
 0x63e   :  { %v2211_v7 = vpop.f32.mrf.mxu1 }
 0x63f   :  { %v1839_v9 = vadd.f32 %v2211_v7, %v1751_v6 }
 0x640   :  { %v1829_v10 = vpop.f32.mrf.mxu1 }
 0x641   :  { %v1838_v11 = vadd.f32 %v1829_v10, %v1750_v8  ;;  %v1841_v12 = vmul.f32 %v2342_v27, %v1839_v9 }
 0x643   :  { %v1840_v13 = vmul.f32 %v2345_v33, %v1838_v11  ;;  %v1843_v16 = vmax.f32 %v1841_v12, 0.0 }
 0x645   :  { %v1842_v15 = vmax.f32 %v1840_v13, 0.0 }
 0x647   :  { %2214 = vmatprep.mubr.msk.f32.mxu0 %vm378_vm4, %v1842_v15 }
 0x648   :  { %2215 = vmatmul.mubr.msk.f32.vlgmr.msra.gmra.mxu0 %vm378_vm4, %v1843_v16 }
 0x708   :  { %v2216_v18 = vpop.f32.mrf.mxu0 }
 0x709   :  { %v1931_v19 = vadd.f32 %v2216_v18, %v1360_v47 }
 0x70a   :  { %v1921_v20 = vpop.f32.mrf.mxu0 }
 0x70b   :  { %1933 = vst.msk [vmem:[%s2529_s8 + $0x8] sm:$0xff] %vm54_vm1, %v1931_v19  ;;  %v1930_v21 = vadd.f32 %v1921_v20, %v1359_v51 }
 0x70d   :  { %1932 = vst.msk [vmem:[%s2529_s8] sm:$0xff] %vm54_vm1, %v1930_v21 }

// kernel: aggcn_forward.9
= control target key start
LH: loop header
LB: loop body
LE: loop exit
PB: predicated region body
PF: predicated region fallthrough
CT: control target
= control target key end

     0   :  { %vm36_vm0 = vcmask 195584   ;;  %s616_s0 = inlined_call_operand.vmem [shape: f32[2,8,24], index: 0, kind: input, shape index: {}]   ;;  %s617_s1 = inlined_call_operand.vmem [shape: f32[2,8,24], index: 1, kind: input, shape index: {}]   ;;  %s618_s2 = inlined_call_operand.vmem [shape: f32[2,8,24], index: 2, kind: input, shape index: {}]   ;;  %s619_s3 = inlined_call_operand.vmem [shape: f32[2,8,24], index: 3, kind: input, shape index: {}]   ;;  %s620_s4 = inlined_call_operand.vmem [shape: f32[4,24,24], index: 4, kind: input, shape index: {}]   ;;  %s621_s5 = inlined_call_operand.vmem [shape: f32[1,24], index: 5, kind: input, shape index: {}]   ;;  %s622_s6 = inlined_call_operand.hbm [shape: f32[2,8,24], index: 6, kind: output, shape index: {}]  }
   0x1   :  { %v28_v0 = vld [vmem:[%s620_s4 + $0x10] sm:$0xff]  ;;  %v408_v1 = vld [vmem:[%s620_s4 + $0x28] sm:$0xff]  ;;  %v407_v3 = vld [vmem:[%s620_s4 + $0x20] sm:$0xff] }
   0x2   :  { %v27_v2 = vld [vmem:[%s620_s4 + $0x8] sm:$0xff]  ;;  %441 = vmatprep.subr.mxu0 %v28_v0  ;;  %450 = vmatprep.subr.mxu1 %v408_v1  ;;  %v26_v4 = vld [vmem:[%s620_s4] sm:$0xff]  ;;  %v406_v5 = vld [vmem:[%s620_s4 + $0x18] sm:$0xff] }
   0x3   :  { %442 = vmatpush3.msra.mxu0 %v28_v0  ;;  %451 = vmatpush3.msra.mxu1 %v408_v1  ;;  %v24_v6 = vld [vmem:[%s616_s0] sm:$0xff]  ;;  %v25_v7 = vld [vmem:[%s616_s0 + $0x8] sm:$0xff]  ;;  %v418_v10 = vld [vmem:[%s620_s4 + $0x58] sm:$0xff] }
   0x4   :  { %443 = vmatprep.subr.mxu0 %v27_v2  ;;  %452 = vmatprep.subr.mxu1 %v407_v3  ;;  %v118_v8 = vld [vmem:[%s617_s1] sm:$0xff]  ;;  %v119_v11 = vld [vmem:[%s617_s1 + $0x8] sm:$0xff] }
   0x5   :  { %444 = vmatpush3.msra.mxu0 %v27_v2  ;;  %453 = vmatpush3.msra.mxu1 %v407_v3  ;;  %v413_v9 = vld [vmem:[%s620_s4 + $0x40] sm:$0xff] }
   0x6   :  { %445 = vmatprep.subr.mxu0 %v26_v4  ;;  %454 = vmatprep.subr.mxu1 %v406_v5 }
   0x7   :  { %446 = vmatpush3.msra.mxu0 %v26_v4  ;;  %447 = vmatprep.mubr.msk.f32.mxu0 %vm36_vm0, %v24_v6 }
   0x8   :  { %11 = vsyncpa [#allocation3], 0  ;;  %455 = vmatpush3.msra.mxu1 %v406_v5  ;;  %448 = vmatmul.mubr.msk.f32.vlgmr.msra.gmra.mxu0 %vm36_vm0, %v25_v7  ;;  %v412_v12 = vld [vmem:[%s620_s4 + $0x38] sm:$0xff]  ;;  %v417_v13 = vld [vmem:[%s620_s4 + $0x50] sm:$0xff] }
   0x9   :  { %456 = vmatprep.mubr.msk.f32.mxu1 %vm36_vm0, %v118_v8  ;;  %459 = vmatprep.subr.mxu0 %v413_v9  ;;  %v411_v14 = vld [vmem:[%s620_s4 + $0x30] sm:$0xff]  ;;  %v416_v15 = vld [vmem:[%s620_s4 + $0x48] sm:$0xff]  ;;  %v207_v16 = vld [vmem:[%s618_s2] sm:$0xff] }
   0xa   :  { %468 = vmatprep.subr.mxu1 %v418_v10  ;;  %457 = vmatmul.mubr.msk.f32.vlgmr.msra.gmra.mxu1 %vm36_vm0, %v119_v11  ;;  %v296_v17 = vld [vmem:[%s619_s3] sm:$0xff]  ;;  %v208_v18 = vld [vmem:[%s618_s2 + $0x8] sm:$0xff]  ;;  %s502_s2 = smov [#allocation2]  }
   0xb   :  { %460 = vmatpush3.msra.mxu0 %v413_v9  ;;  %469 = vmatpush3.msra.mxu1 %v418_v10  ;;  %v297_v19 = vld [vmem:[%s619_s3 + $0x8] sm:$0xff]  ;;  %v403_v20 = vld [vmem:[%s621_s5] ss:$0 sm:$0xff]  ;;  %s392_s3 = sshll.u32 %s502_s2, 4  ;;  %s393_s3 = int_to_ptr.vmem [resolvable:$true] %s392_s3 }
   0xc   :  { %461 = vmatprep.subr.mxu0 %v412_v12  ;;  %470 = vmatprep.subr.mxu1 %v417_v13  ;;  %s480_s5 = scalar_lea.vmem %s393_s3, 256  ;;  %p485_p1 = scmp.lt.s32.totalorder %s393_s3, %s393_s3 }
   0xd   :  { %462 = vmatpush3.msra.mxu0 %v412_v12  ;;  %471 = vmatpush3.msra.mxu1 %v417_v13  ;;  %p481_p0 = scmp.ne.s32.totalorder %s393_s3, %s480_s5  ;;  %p486_p2 = scmp.lt.s32.totalorder %s480_s5, %s480_s5 }
   0xe   :  { %463 = vmatprep.subr.mxu0 %v411_v14  ;;  %472 = vmatprep.subr.mxu1 %v416_v15 }
   0xf   :  { %464 = vmatpush3.msra.mxu0 %v411_v14  ;;  %465 = vmatprep.mubr.msk.f32.mxu0 %vm36_vm0, %v207_v16  ;;  %p487_p3 = por %p486_p2, %p485_p1 }
  0x10   :  { %473 = vmatpush3.msra.mxu1 %v416_v15  ;;  %474 = vmatprep.mubr.msk.f32.mxu1 %vm36_vm0, %v296_v17 }
  0x11   :  { %466 = vmatmul.mubr.msk.f32.vlgmr.msra.gmra.mxu0 %vm36_vm0, %v208_v18  ;;  %475 = vmatmul.mubr.msk.f32.vlgmr.msra.gmra.mxu1 %vm36_vm0, %v297_v19  ;;  %p488_p4 = pnand %p487_p3, %p481_p0 }
  0xc8   :  { %v449_v21 = vpop.f32.mrf.mxu0 }
  0xc9   :  { %v115_v22 = vadd.f32 %v449_v21, %v403_v20 }
  0xca   :  { %v458_v23 = vpop.f32.mrf.mxu1  ;;  %v109_v24 = vpop.f32.mrf.mxu0 }
  0xcb   :  { %v206_v26 = vadd.f32 %v458_v23, %v115_v22  ;;  %v110_v27 = vadd.f32 %v403_v20, %v109_v24 }
  0xcc   :  { %v196_v25 = vpop.f32.mrf.mxu1 }
  0xcd   :  { %v205_v30 = vadd.f32 %v196_v25, %v110_v27 }
  0xd1   :  { %v467_v28 = vpop.f32.mrf.mxu0  ;;  %v476_v29 = vpop.f32.mrf.mxu1 }
  0xd2   :  { %v295_v31 = vadd.f32 %v467_v28, %v206_v26 }
  0xd3   :  { %v285_v32 = vpop.f32.mrf.mxu0  ;;  %v374_v35 = vpop.f32.mrf.mxu1 }
  0xd4   :  { %v384_v33 = vadd.f32 %v476_v29, %v295_v31  ;;  %v294_v34 = vadd.f32 %v285_v32, %v205_v30 }
  0xd6   :  { %386 = vst.msk [vmem:[#allocation2 + $0x8] sm:$0xff] %vm36_vm0, %v384_v33  ;;  %v383_v36 = vadd.f32 %v374_v35, %v294_v34 }
  0xd8   :  { %385 = vst.msk [vmem:[#allocation2] sm:$0xff] %vm36_vm0, %v383_v36 }
  0xd9   :  { %491 = shalt.err (!%p488_p4)
}
  0xda   :  { %s503_s12 = smov 128   ;;  %s504_s13 = smov 8  }
  0xdb   :  { %398 = dma.vmem_to_hbm [thread:$0]  %s393_s3, 256, %s622_s6, [#allocation3], %s503_s12, %s503_s12, %s504_s13  }
  0xdc   :  { %500 = dma.done.wait [#allocation3], 256  }
  0xdd   :  { %501 = vsyncadd [#allocation3], 4294967040 }
  0xde   :  { %402 = vsyncpa [#allocation3], 1 }

// kernel: aggcn_forward.7
= control target key start
LH: loop header
LB: loop body
LE: loop exit
PB: predicated region body
PF: predicated region fallthrough
CT: control target
= control target key end

     0   :  { %vm67_vm0 = vcmask 195584   ;;  %v4049_v11 = vmov 0.0   ;;  %vm4050_vm1 = vmmov 0   ;;  %vm319_vm2 = vcmask 64512   ;;  %s4603_s9 = inlined_call_operand.vmem [shape: f32[24,24], index: 9, kind: input, shape index: {}]   ;;  %s4604_s0 = inlined_call_operand.vmem [shape: f32[2,8,24], index: 0, kind: input, shape index: {}]   ;;  %s4605_s2 = inlined_call_operand.vmem [shape: f32[3,24,8], index: 2, kind: input, shape index: {}]   ;;  %s4606_s4 = inlined_call_operand.vmem [shape: f32[3,24,8], index: 4, kind: input, shape index: {}]   ;;  %s4607_s5 = inlined_call_operand.vmem [shape: f32[3,1,8], index: 5, kind: input, shape index: {}]   ;;  %s4608_s3 = inlined_call_operand.vmem [shape: f32[3,1,8], index: 3, kind: input, shape index: {}]   ;;  %s4609_s1 = inlined_call_operand.vmem [shape: f32[2,1,8], index: 1, kind: input, shape index: {}]   ;;  %s4610_s6 = inlined_call_operand.vmem [shape: f32[6,24,12], index: 6, kind: input, shape index: {}]   ;;  %s4611_s10 = inlined_call_operand.vmem [shape: f32[6,12,24], index: 10, kind: input, shape index: {}]   ;;  %s4612_s8 = inlined_call_operand.vmem [shape: f32[6,1,12], index: 8, kind: input, shape index: {}]   ;;  %s4613_s7 = inlined_call_operand.vmem [shape: f32[3,12,12], index: 7, kind: input, shape index: {}]   ;;  %s4614_s11 = inlined_call_operand.vmem [shape: f32[1,24], index: 11, kind: input, shape index: {}]   ;;  %s4615_s12 = inlined_call_operand.vmem [shape: f32[2,8,24], index: 12, kind: output, shape index: {}]  }
   0x1   :  { %v59_v0 = vld [vmem:[%s4603_s9 + $0x10] sm:$0xff]  ;;  %v58_v1 = vld [vmem:[%s4603_s9 + $0x8] sm:$0xff]  ;;  %v4125_v2 = vld [vmem:[%s4604_s0] sm:$0xff]  ;;  %vm760_vm5 = vcmask 1043456   ;;  %vm753_vm6 = vcmask 97280  }
   0x2   :  { %3740 = vmatprep.subr.mxu0 %v59_v0  ;;  %v57_v3 = vld [vmem:[%s4603_s9] sm:$0xff]  ;;  %3746 = vmatprep.mubr.msk.f32.mxu0 %vm67_vm0, %v4125_v2  ;;  %v151_v4 = vld [vmem:[%s4605_s2 + $0x10] sm:$0xff]  ;;  %v150_v5 = vld [vmem:[%s4605_s2 + $0x8] sm:$0xff] }
   0x3   :  { %3741 = vmatpush3.msra.mxu0 %v59_v0  ;;  %3749 = vmatprep.subr.mxu1 %v151_v4  ;;  %v4141_v6 = vld [vmem:[%s4604_s0 + $0x8] sm:$0xff]  ;;  %v236_v7 = vld [vmem:[%s4606_s4 + $0x10] sm:$0xff]  ;;  %v149_v8 = vld [vmem:[%s4605_s2] sm:$0xff] }
   0x4   :  { %3742 = vmatprep.subr.mxu0 %v58_v1  ;;  %3750 = vmatpush3.msra.mxu1 %v151_v4  ;;  %v235_v9 = vld [vmem:[%s4606_s4 + $0x8] sm:$0xff]  ;;  %v234_v10 = vld [vmem:[%s4606_s4] sm:$0xff]  ;;  %v658_v54 = vld [vmem:[%s4610_s6 + $0x10] sm:$0xff] }
   0x5   :  { %3743 = vmatpush3.msra.mxu0 %v58_v1  ;;  %3751 = vmatprep.subr.mxu1 %v150_v5  ;;  %v3469_v16 = vld [vmem:[%s4607_s5] ss:$0 sm:$0xff]  ;;  %v4202_v27 = vld [vmem:[%s4609_s1 + $0x1] ss:$0 sm:$0xff]  ;;  %v657_v55 = vld [vmem:[%s4610_s6 + $0x8] sm:$0xff] }
   0x6   :  { %3744 = vmatprep.subr.mxu0 %v57_v3  ;;  %3752 = vmatpush3.msra.mxu1 %v150_v5  ;;  %v3466_v18 = vld [vmem:[%s4608_s3] ss:$0 sm:$0xff]  ;;  %vm475_vm4 = vcmp.eq.f32.partialorder %v4202_v27, 0.0  ;;  %v752_v63 = vld [vmem:[%s4611_s10 + $0x8] sm:$0xf] }
   0x7   :  { %3745 = vmatpush3.msra.mxu0 %v57_v3  ;;  %3753 = vmatprep.subr.mxu1 %v149_v8  ;;  %v4196_v24 = vld [vmem:[%s4609_s1] ss:$0 sm:$0xff] }
   0x8   :  { %3747 = vmatmul.mubr.msk.f32.vlgmr.msra.gmra.mxu0 %vm67_vm0, %v4141_v6  ;;  %3758 = vmatprep.subr.mxu0 %v236_v7  ;;  %vm474_vm3 = vcmp.eq.f32.partialorder %v4196_v24, 0.0  ;;  %v656_v56 = vld [vmem:[%s4610_s6] sm:$0xff] }
   0x9   :  { %3759 = vmatpush3.msra.mxu0 %v236_v7  ;;  %3764 = vmatprep.mubr.msk.f32.mxu0 %vm67_vm0, %v4125_v2  ;;  %v751_v0 = vld [vmem:[%s4611_s10] sm:$0xff] }
   0xa   :  { %3760 = vmatprep.subr.mxu0 %v235_v9  ;;  %3754 = vmatpush3.msra.mxu1 %v149_v8  ;;  %v3478_v7 = vld [vmem:[%s4612_s8] ss:$0 sm:$0xff] }
   0xb   :  { %3761 = vmatpush3.msra.mxu0 %v235_v9  ;;  %3755 = vmatprep.mubr.msk.f32.mxu1 %vm67_vm0, %v4125_v2 }
   0xc   :  { %3762 = vmatprep.subr.mxu0 %v234_v10  ;;  %3756 = vmatmul.mubr.msk.f32.vlgmr.msra.gmra.mxu1 %vm67_vm0, %v4141_v6 }
   0xd   :  { %3763 = vmatpush3.msra.mxu0 %v234_v10  ;;  %3767 = vmatprep.subr.mxu1 %v4049_v11 }
   0xe   :  { %3765 = vmatmul.mubr.msk.f32.vlgmr.msra.gmra.mxu0 %vm67_vm0, %v4141_v6  ;;  %3777 = vmatprep.subr.mxu0 %v4049_v11 }
   0xf   :  { %3778 = vmatpush3.msra.mxu0 %v4125_v2  ;;  %3769 = vmatprep.mubr.msk.f32.mxu1 %vm4050_vm1, %v4049_v11 }
  0x10   :  { %3779 = vmatprep.mubr.msk.f32.mxu0 %vm4050_vm1, %v4049_v11  ;;  %3787 = vmatprep.subr.mxu0 %v658_v54 }
  0xc8   :  { %v4172_v12 = vpop.f32.mrf.mxu0 }
  0xca   :  { %v4174_v13 = vpop.f32.mrf.mxu0 }
  0xcc   :  { %v3757_v14 = vpop.f32.mrf.mxu1 }
  0xcd   :  { %v231_v23 = vadd.f32 %v3757_v14, %v3466_v18 }
  0xce   :  { %v3766_v15 = vpop.f32.mrf.mxu0  ;;  %v225_v20 = vpop.f32.mrf.mxu1 }
  0xcf   :  { %v226_v21 = vadd.f32 %v3466_v18, %v225_v20  ;;  %v316_v22 = vadd.f32 %v3766_v15, %v3469_v16 }
  0xd0   :  { %v310_v17 = vpop.f32.mrf.mxu0 }
  0xd1   :  { %v311_v19 = vadd.f32 %v3469_v16, %v310_v17 }
  0xd3   :  { %3768 = vmatpush3.xpose.msk.msra.mxu1 %vm319_vm2, %v311_v19 }
  0xd4   :  { %3772 = vmatprep.subr.mxu1 %v4049_v11 }
  0xd6   :  { %3770 = vmatmul.mubr.msk.f32.vlgmr.msra.gmra.mxu1 %vm319_vm2, %v226_v21  ;;  %v3488_v21 = vld [vmem:[%s4610_s6 + $0x28] sm:$0xff] }
  0xd7   :  { %3773 = vmatpush3.xpose.msk.msra.mxu1 %vm319_vm2, %v316_v22  ;;  %3774 = vmatprep.mubr.msk.f32.mxu1 %vm4050_vm1, %v4049_v11  ;;  %v3487_v22 = vld [vmem:[%s4610_s6 + $0x20] sm:$0xff] }
  0xd8   :  { %3782 = vmatprep.subr.mxu1 %v4049_v11 }
  0xda   :  { %3775 = vmatmul.mubr.msk.f32.vlgmr.msra.gmra.mxu1 %vm319_vm2, %v231_v23  ;;  %v3486_v23 = vld [vmem:[%s4610_s6 + $0x18] sm:$0xff] }
  0xdb   :  { %3783 = vmatpush3.msra.mxu1 %v4141_v6  ;;  %3784 = vmatprep.mubr.msk.f32.mxu1 %vm4050_vm1, %v4049_v11 }
  0xdc   :  { %3796 = vmatprep.subr.msk.mxu1 %vm760_vm5, %v752_v63 }
 0x196   :  { %v392_v25 = vpop.f32.mrf.mxu1 }
 0x197   :  { %v472_v26 = vmul.f32 0.35355338, %v392_v25  ;;  %v1069_v25 = vld [vmem:[%s4613_s7 + $0x8] sm:$0xf] }
 0x198   :  { %v3771_v28 = vpop.f32.mrf.mxu1 }
 0x199   :  { %v476_v29 = vsel %vm474_vm3, -1e+09, %v472_v26  ;;  %v1068_v26 = vld [vmem:[%s4613_s7] sm:$0xff] }
 0x19a   :  { %v468_v30 = vpop.f32.mrf.mxu1  ;;  %v478_v31 = vsel %vm319_vm2, %v476_v29, -inf  ;;  %v3463_v28 = vld [vmem:[%s4614_s11] ss:$0 sm:$0xff] }
 0x19b   :  { %v473_v32 = vmul.f32 0.35355338, %v468_v30  ;;  %479 = vmax.xlane.f32.xlu0 %v478_v31 }
 0x19c   :  { %v3776_v33 = vpop.f32.mrf.mxu1 }
 0x19d   :  { %v477_v34 = vsel %vm475_vm4, -1e+09, %v473_v32  ;;  %v141_v32 = vadd.f32 %v3463_v28, %v4174_v13  ;;  %v3496_v13 = vld [vmem:[%s4611_s10 + $0x10] sm:$0xff] }
 0x19e   :  { %v481_v35 = vsel %vm319_vm2, %v477_v34, -inf }
 0x19f   :  { %482 = vmax.xlane.f32.xlu0 %v481_v35 }
 0x224   :  { %v480_v36 = vpop.xlane.xlu0 %479 }
 0x225   :  { %v484_v37 = vsub.f32 %v476_v29, %v480_v36  ;;  %v146_v29 = vadd.f32 %v4172_v12, %v3463_v28  ;;  %v3497_v12 = vld [vmem:[%s4611_s10 + $0x18] sm:$0xf] }
 0x227   :  { %v486_v38 = vmul.f32 1.442695, %v484_v37 }
 0x228   :  { %v483_v39 = vpop.xlane.xlu0 %482 }
 0x229   :  { %4012 = vpow2.f32 %v486_v38  ;;  %v485_v40 = vsub.f32 %v477_v34, %v483_v39 }
 0x22b   :  { %v488_v41 = vmul.f32 1.442695, %v485_v40 }
 0x22d   :  { %4014 = vpow2.f32 %v488_v41  ;;  %v3510_v41 = vld [vmem:[%s4606_s4 + $0x28] sm:$0xff] }
 0x236   :  { %v4013_v42 = vpop.eup %4012 }
 0x237   :  { %v490_v43 = vsel %vm319_vm2, %v4013_v42, 0.0 }
 0x238   :  { %491 = vadd.xlane.f32.xlu1 %v490_v43  ;;  %v3502_v43 = vld [vmem:[%s4605_s2 + $0x20] sm:$0xff] }
 0x23a   :  { %v4015_v44 = vpop.eup %4014 }
 0x23b   :  { %v493_v45 = vsel %vm319_vm2, %v4015_v44, 0.0 }
 0x23c   :  { %494 = vadd.xlane.f32.xlu1 %v493_v45 }
 0x2c1   :  { %v492_v46 = vpop.xlane.xlu1 %491 }
 0x2c2   :  { %4016 = vrcp.f32 %v492_v46  ;;  %v3490_v46 = vld [vmem:[%s4612_s8 + $0x1] ss:$0 sm:$0xff] }
 0x2c5   :  { %v495_v47 = vpop.xlane.xlu1 %494 }
 0x2c6   :  { %4018 = vrcp.f32 %v495_v47 }
 0x2cf   :  { %v4017_v48 = vpop.eup %4016 }
 0x2d0   :  { %v498_v49 = vmul.f32 %v4017_v48, %v4013_v42  ;;  %v3503_v42 = vld [vmem:[%s4605_s2 + $0x28] sm:$0xff] }
 0x2d2   :  { %3780 = vmatmul.mubr.msk.f32.vlgmr.msra.gmra.mxu0 %vm319_vm2, %v498_v49  ;;  %v500_v50 = vsel %vm319_vm2, %v498_v49, 0.0 }
 0x2d3   :  { %v4019_v51 = vpop.eup %4018  ;;  %501 = vadd.xlane.f32.xlu0 %v500_v50  ;;  %3788 = vmatpush3.msra.mxu0 %v658_v54 }
 0x2d4   :  { %v4215_v52 = vmul.f32 %v4019_v51, %v4015_v44  ;;  %3789 = vmatprep.subr.mxu0 %v657_v55  ;;  %v3501_v44 = vld [vmem:[%s4605_s2 + $0x18] sm:$0xff] }
 0x2d5   :  { %3790 = vmatpush3.msra.mxu0 %v657_v55 }
 0x2d6   :  { %3785 = vmatmul.mubr.msk.f32.vlgmr.msra.gmra.mxu1 %vm319_vm2, %v4215_v52  ;;  %v503_v53 = vsel %vm319_vm2, %v4215_v52, 0.0  ;;  %3791 = vmatprep.subr.mxu0 %v656_v56 }
 0x2d7   :  { %504 = vadd.xlane.f32.xlu1 %v503_v53  ;;  %3792 = vmatpush3.msra.mxu0 %v656_v56 }
 0x2d8   :  { %3803 = vmatprep.subr.mxu0 %v4049_v11  ;;  %3797 = vmatpush3.msk.msra.mxu1 %vm760_vm5, %v752_v63 }
 0x2d9   :  { %3798 = vmatprep.subr.mxu1 %v751_v0 }
 0x2da   :  { %3799 = vmatpush3.msra.mxu1 %v751_v0  ;;  %v3512_v0 = vld [vmem:[%s4607_s5 + $0x1] ss:$0 sm:$0xff] }
 0x2db   :  { %3808 = vmatprep.subr.mxu1 %v4049_v11 }
 0x35c   :  { %v502_v3 = vpop.xlane.xlu0 %501 }
 0x35d   :  { %v506_v5 = vadd.f32 1.0, %v502_v3  ;;  %v3505_v3 = vld [vmem:[%s4608_s3 + $0x1] ss:$0 sm:$0xff] }
 0x360   :  { %v505_v1 = vpop.xlane.xlu1 %504 }
 0x361   :  { %v507_v4 = vadd.f32 1.0, %v505_v1 }
 0x363   :  { %4020 = vrcp.f32 %v507_v4 }
 0x364   :  { %4022 = vrcp.f32 %v506_v5 }
 0x370   :  { %v4249_v14 = vpop.eup %4020 }
 0x371   :  { %v4251_v16 = vpop.eup %4022 }
 0x392   :  { %v579_v57 = vpop.f32.mrf.mxu0 }
 0x393   :  { %v580_v58 = vadd.f32 %v579_v57, %v4125_v2 }
 0x394   :  { %v3781_v59 = vpop.f32.mrf.mxu0 }
 0x395   :  { %3793 = vmatprep.mubr.msk.f32.mxu0 %vm67_vm0, %v580_v58  ;;  %v3508_v59 = vld [vmem:[%s4606_s4 + $0x18] sm:$0xff] }
 0x396   :  { %v652_v60 = vpop.f32.mrf.mxu1 }
 0x397   :  { %v653_v61 = vadd.f32 %v652_v60, %v4141_v6 }
 0x398   :  { %v3786_v62 = vpop.f32.mrf.mxu1 }
 0x399   :  { %3794 = vmatmul.mubr.msk.f32.vlgmr.msra.gmra.mxu0 %vm67_vm0, %v653_v61 }
 0x39a   :  { %3805 = vmatprep.mubr.msk.f32.mxu0 %vm4050_vm1, %v4049_v11 }
 0x459   :  { %v3795_v8 = vpop.f32.mrf.mxu0 }
 0x45a   :  { %v744_v9 = vadd.f32 %v3795_v8, %v3478_v7 }
 0x45b   :  { %v738_v10 = vpop.f32.mrf.mxu0 }
 0x45c   :  { %v739_v15 = vadd.f32 %v3478_v7, %v738_v10  ;;  %v748_v17 = vmul.f32 %v4249_v14, %v744_v9 }
 0x45e   :  { %v747_v18 = vmul.f32 %v4251_v16, %v739_v15  ;;  %v750_v20 = vmax.f32 %v748_v17, 0.0 }
 0x460   :  { %v749_v19 = vmax.f32 %v747_v18, 0.0 }
 0x462   :  { %3800 = vmatprep.mubr.msk.f32.mxu1 %vm753_vm6, %v749_v19  ;;  %3804 = vmatpush3.msra.mxu0 %v749_v19 }
 0x463   :  { %3801 = vmatmul.mubr.msk.f32.vlgmr.msra.gmra.mxu1 %vm753_vm6, %v750_v20  ;;  %3806 = vmatmul.mubr.msk.f32.vlgmr.msra.gmra.mxu0 %vm319_vm2, %v498_v49 }
 0x464   :  { %3809 = vmatpush3.msra.mxu1 %v750_v20  ;;  %3813 = vmatprep.subr.mxu0 %v3488_v21 }
 0x465   :  { %3814 = vmatpush3.msra.mxu0 %v3488_v21  ;;  %3819 = vmatprep.mubr.msk.f32.mxu0 %vm67_vm0, %v580_v58  ;;  %v3509_v58 = vld [vmem:[%s4606_s4 + $0x20] sm:$0xff] }
 0x466   :  { %3815 = vmatprep.subr.mxu0 %v3487_v22  ;;  %3810 = vmatprep.mubr.msk.f32.mxu1 %vm4050_vm1, %v4049_v11 }
 0x467   :  { %3816 = vmatpush3.msra.mxu0 %v3487_v22  ;;  %3811 = vmatmul.mubr.msk.f32.vlgmr.msra.gmra.mxu1 %vm319_vm2, %v4215_v52 }
 0x468   :  { %3817 = vmatprep.subr.mxu0 %v3486_v23  ;;  %3822 = vmatprep.subr.msk.mxu1 %vm760_vm5, %v1069_v25 }
 0x469   :  { %3818 = vmatpush3.msra.mxu0 %v3486_v23  ;;  %3823 = vmatpush3.msk.msra.mxu1 %vm760_vm5, %v1069_v25 }
 0x46a   :  { %3820 = vmatmul.mubr.msk.f32.vlgmr.msra.gmra.mxu0 %vm67_vm0, %v653_v61  ;;  %3824 = vmatprep.subr.mxu1 %v1068_v26 }
 0x46b   :  { %3842 = vmatprep.mubr.msk.f32.mxu0 %vm67_vm0, %v4125_v2  ;;  %3825 = vmatpush3.msra.mxu1 %v1068_v26 }
 0x46c   :  { %3829 = vmatprep.subr.msk.mxu1 %vm760_vm5, %v3497_v12  ;;  %3836 = vmatprep.subr.mxu0 %v3503_v42 }
 0x46d   :  { %3837 = vmatpush3.msra.mxu0 %v3503_v42 }
 0x46e   :  { %3838 = vmatprep.subr.mxu0 %v3502_v43 }
 0x46f   :  { %3839 = vmatpush3.msra.mxu0 %v3502_v43  ;;  %v3523_v43 = vld [vmem:[%s4610_s6 + $0x40] sm:$0xff] }
 0x470   :  { %3840 = vmatprep.subr.mxu0 %v3501_v44 }
 0x471   :  { %3841 = vmatpush3.msra.mxu0 %v3501_v44  ;;  %v3522_v44 = vld [vmem:[%s4610_s6 + $0x38] sm:$0xff] }
 0x472   :  { %3843 = vmatmul.mubr.msk.f32.vlgmr.msra.gmra.mxu0 %vm67_vm0, %v4141_v6  ;;  %3854 = vmatprep.subr.mxu0 %v4049_v11 }
 0x473   :  { %3856 = vmatprep.mubr.msk.f32.mxu0 %vm4050_vm1, %v4049_v11 }
 0x523   :  { %v3802_v30 = vpop.f32.mrf.mxu1  ;;  %v907_v31 = vpop.f32.mrf.mxu0 }
 0x524   :  { %v840_v33 = vadd.f32 %v3802_v30, %v146_v29  ;;  %v908_v34 = vadd.f32 %v907_v31, %v749_v19 }
 0x525   :  { %v830_v35 = vpop.f32.mrf.mxu1  ;;  %v3807_v36 = vpop.f32.mrf.mxu0 }
 0x526   :  { %v839_v37 = vadd.f32 %v830_v35, %v141_v32  ;;  %3826 = vmatprep.mubr.msk.f32.mxu1 %vm753_vm6, %v908_v34 }
 0x527   :  { %v977_v38 = vpop.f32.mrf.mxu1 }
 0x528   :  { %v978_v39 = vadd.f32 %v977_v38, %v750_v20 }
 0x529   :  { %v3812_v40 = vpop.f32.mrf.mxu1 }
 0x52a   :  { %3827 = vmatmul.mubr.msk.f32.vlgmr.msra.gmra.mxu1 %vm753_vm6, %v978_v39  ;;  %v3821_v45 = vpop.f32.mrf.mxu0 }
 0x52b   :  { %3830 = vmatpush3.msk.msra.mxu1 %vm760_vm5, %v3497_v12  ;;  %v1065_v48 = vadd.f32 %v3821_v45, %v3490_v46  ;;  %v3521_v45 = vld [vmem:[%s4610_s6 + $0x30] sm:$0xff] }
 0x52c   :  { %3831 = vmatprep.subr.mxu1 %v3496_v13  ;;  %v1059_v47 = vpop.f32.mrf.mxu0 }
 0x52d   :  { %3832 = vmatpush3.msra.mxu1 %v3496_v13  ;;  %v1060_v50 = vadd.f32 %v3490_v46, %v1059_v47 }
 0x52e   :  { %3845 = vmatprep.subr.mxu1 %v3510_v41 }
 0x532   :  { %v3844_v1 = vpop.f32.mrf.mxu0 }
 0x533   :  { %v1333_v7 = vadd.f32 %v3844_v1, %v3505_v3 }
 0x534   :  { %v1327_v10 = vpop.f32.mrf.mxu0 }
 0x5ea   :  { %v3828_v49 = vpop.f32.mrf.mxu1 }
 0x5eb   :  { %v1155_v51 = vadd.f32 %v3828_v49, %v1065_v48 }
 0x5ec   :  { %v1145_v52 = vpop.f32.mrf.mxu1 }
 0x5ed   :  { %v1154_v53 = vadd.f32 %v1145_v52, %v1060_v50  ;;  %v1157_v54 = vmul.f32 %v4249_v14, %v1155_v51  ;;  %v1328_v14 = vadd.f32 %v3505_v3, %v1327_v10  ;;  %v3529_v52 = vld [vmem:[%s4611_s10 + $0x28] sm:$0xf]  ;;  %v3536_v10 = vld [vmem:[%s4610_s6 + $0x50] sm:$0xff] }
 0x5ef   :  { %v1156_v55 = vmul.f32 %v4251_v16, %v1154_v53  ;;  %v1159_v57 = vmax.f32 %v1157_v54, 0.0  ;;  %v3528_v53 = vld [vmem:[%s4611_s10 + $0x20] sm:$0xff] }
 0x5f1   :  { %v1158_v56 = vmax.f32 %v1156_v55, 0.0 }
 0x5f3   :  { %3833 = vmatprep.mubr.msk.f32.mxu1 %vm753_vm6, %v1158_v56 }
 0x5f4   :  { %3834 = vmatmul.mubr.msk.f32.vlgmr.msra.gmra.mxu1 %vm753_vm6, %v1159_v57 }
 0x5f5   :  { %3846 = vmatpush3.msra.mxu1 %v3510_v41  ;;  %3851 = vmatprep.mubr.msk.f32.mxu1 %vm67_vm0, %v4125_v2 }
 0x5f6   :  { %3847 = vmatprep.subr.mxu1 %v3509_v58 }
 0x5f7   :  { %3848 = vmatpush3.msra.mxu1 %v3509_v58  ;;  %v3525_v58 = vld [vmem:[%s4612_s8 + $0x2] ss:$0 sm:$0xff] }
 0x5f8   :  { %3849 = vmatprep.subr.mxu1 %v3508_v59 }
 0x5f9   :  { %3850 = vmatpush3.msra.mxu1 %v3508_v59 }
 0x5fa   :  { %3852 = vmatmul.mubr.msk.f32.vlgmr.msra.gmra.mxu1 %vm67_vm0, %v4141_v6  ;;  %3859 = vmatprep.subr.mxu1 %v4049_v11 }
 0x5fb   :  { %3861 = vmatprep.mubr.msk.f32.mxu1 %vm4050_vm1, %v4049_v11 }
 0x6b4   :  { %v3835_v60 = vpop.f32.mrf.mxu1 }
 0x6b5   :  { %v4335_v61 = vadd.f32 %v3835_v60, %v840_v33 }
 0x6b6   :  { %v1238_v62 = vpop.f32.mrf.mxu1 }
 0x6b7   :  { %v4337_v63 = vadd.f32 %v1238_v62, %v839_v37 }
 0x6ba   :  { %v3853_v4 = vpop.f32.mrf.mxu1 }
 0x6bb   :  { %v1420_v5 = vadd.f32 %v3853_v4, %v3512_v0 }
 0x6bc   :  { %v1414_v8 = vpop.f32.mrf.mxu1 }
 0x6bd   :  { %v1415_v9 = vadd.f32 %v3512_v0, %v1414_v8  ;;  %3860 = vmatpush3.xpose.msk.msra.mxu1 %vm319_vm2, %v1420_v5 }
 0x6be   :  { %3869 = vmatprep.subr.mxu1 %v4049_v11 }
 0x6bf   :  { %3855 = vmatpush3.xpose.msk.msra.mxu0 %vm319_vm2, %v1415_v9  ;;  %v3537_v9 = vld [vmem:[%s4610_s6 + $0x58] sm:$0xff] }
 0x6c0   :  { %3862 = vmatmul.mubr.msk.f32.vlgmr.msra.gmra.mxu1 %vm319_vm2, %v1333_v7  ;;  %3864 = vmatprep.subr.mxu0 %v4049_v11 }
 0x6c1   :  { %3870 = vmatpush3.msra.mxu1 %v4141_v6  ;;  %3871 = vmatprep.mubr.msk.f32.mxu1 %vm4050_vm1, %v4049_v11 }
 0x6c2   :  { %3857 = vmatmul.mubr.msk.f32.vlgmr.msra.gmra.mxu0 %vm319_vm2, %v1328_v14  ;;  %3883 = vmatprep.subr.msk.mxu1 %vm760_vm5, %v3529_v52  ;;  %v3535_v14 = vld [vmem:[%s4610_s6 + $0x48] sm:$0xff] }
 0x6c3   :  { %3865 = vmatpush3.msra.mxu0 %v4125_v2  ;;  %3866 = vmatprep.mubr.msk.f32.mxu0 %vm4050_vm1, %v4049_v11 }
 0x6c4   :  { %3874 = vmatprep.subr.mxu0 %v3523_v43 }
 0x780   :  { %v1571_v15 = vpop.f32.mrf.mxu1 }
 0x781   :  { %v1576_v16 = vmul.f32 0.35355338, %v1571_v15  ;;  %v3543_v15 = vld [vmem:[%s4613_s7 + $0x18] sm:$0xf] }
 0x782   :  { %v1495_v17 = vpop.f32.mrf.mxu0  ;;  %v3863_v18 = vpop.f32.mrf.mxu1 }
 0x783   :  { %v1575_v19 = vmul.f32 0.35355338, %v1495_v17  ;;  %v1578_v20 = vsel %vm475_vm4, -1e+09, %v1576_v16  ;;  %v3542_v16 = vld [vmem:[%s4613_s7 + $0x10] sm:$0xff] }
 0x784   :  { %v3858_v21 = vpop.f32.mrf.mxu0  ;;  %v1582_v22 = vsel %vm319_vm2, %v1578_v20, -inf }
 0x785   :  { %1583 = vmax.xlane.f32.xlu1 %v1582_v22  ;;  %v1577_v23 = vsel %vm474_vm3, -1e+09, %v1575_v19 }
 0x786   :  { %v1579_v25 = vsel %vm319_vm2, %v1577_v23, -inf }
 0x787   :  { %1580 = vmax.xlane.f32.xlu0 %v1579_v25 }
 0x80e   :  { %v1584_v26 = vpop.xlane.xlu1 %1583 }
 0x80f   :  { %v1586_v28 = vsub.f32 %v1578_v20, %v1584_v26 }
 0x810   :  { %v1581_v29 = vpop.xlane.xlu0 %1580 }
 0x811   :  { %v1589_v30 = vmul.f32 1.442695, %v1586_v28  ;;  %v1585_v31 = vsub.f32 %v1577_v23, %v1581_v29  ;;  %v3548_v29 = vld [vmem:[%s4611_s10 + $0x38] sm:$0xf] }
 0x813   :  { %4024 = vpow2.f32 %v1589_v30  ;;  %v1587_v32 = vmul.f32 1.442695, %v1585_v31  ;;  %v3554_v30 = vld [vmem:[%s4605_s2 + $0x40] sm:$0xff]  ;;  %v3553_v31 = vld [vmem:[%s4605_s2 + $0x38] sm:$0xff] }
 0x815   :  { %4026 = vpow2.f32 %v1587_v32  ;;  %v3552_v32 = vld [vmem:[%s4605_s2 + $0x30] sm:$0xff] }
 0x820   :  { %v4025_v33 = vpop.eup %4024 }
 0x821   :  { %v1594_v34 = vsel %vm319_vm2, %v4025_v33, 0.0 }
 0x822   :  { %v4027_v35 = vpop.eup %4026  ;;  %1595 = vadd.xlane.f32.xlu1 %v1594_v34  ;;  %v3539_v34 = vld [vmem:[%s4612_s8 + $0x3] ss:$0 sm:$0xff] }
 0x823   :  { %v1591_v36 = vsel %vm319_vm2, %v4027_v35, 0.0 }
 0x824   :  { %1592 = vadd.xlane.f32.xlu0 %v1591_v36 }
 0x8ab   :  { %v1596_v37 = vpop.xlane.xlu1 %1595 }
 0x8ac   :  { %4028 = vrcp.f32 %v1596_v37 }
 0x8ad   :  { %v1593_v38 = vpop.xlane.xlu0 %1592 }
 0x8ae   :  { %4030 = vrcp.f32 %v1593_v38 }
 0x8b9   :  { %v4029_v39 = vpop.eup %4028 }
 0x8ba   :  { %v4365_v40 = vmul.f32 %v4029_v39, %v4025_v33 }
 0x8bb   :  { %v4031_v12 = vpop.eup %4030 }
 0x8bc   :  { %3872 = vmatmul.mubr.msk.f32.vlgmr.msra.gmra.mxu1 %vm319_vm2, %v4365_v40  ;;  %v1604_v13 = vsel %vm319_vm2, %v4365_v40, 0.0  ;;  %v1599_v41 = vmul.f32 %v4031_v12, %v4027_v35 }
 0x8bd   :  { %1605 = vadd.xlane.f32.xlu1 %v1604_v13  ;;  %3884 = vmatpush3.msk.msra.mxu1 %vm760_vm5, %v3529_v52  ;;  %v3556_v52 = vld [vmem:[%s4608_s3 + $0x2] ss:$0 sm:$0xff] }
 0x8be   :  { %3867 = vmatmul.mubr.msk.f32.vlgmr.msra.gmra.mxu0 %vm319_vm2, %v1599_v41  ;;  %v1601_v42 = vsel %vm319_vm2, %v1599_v41, 0.0  ;;  %3885 = vmatprep.subr.mxu1 %v3528_v53 }
 0x8bf   :  { %1602 = vadd.xlane.f32.xlu0 %v1601_v42  ;;  %3875 = vmatpush3.msra.mxu0 %v3523_v43 }
 0x8c0   :  { %3876 = vmatprep.subr.mxu0 %v3522_v44  ;;  %3886 = vmatpush3.msra.mxu1 %v3528_v53 }
 0x8c1   :  { %3877 = vmatpush3.msra.mxu0 %v3522_v44  ;;  %3895 = vmatprep.subr.mxu1 %v4049_v11  ;;  %v3560_v44 = vld [vmem:[%s4606_s4 + $0x38] sm:$0xff] }
 0x8c2   :  { %3878 = vmatprep.subr.mxu0 %v3521_v45 }
 0x8c3   :  { %3879 = vmatpush3.msra.mxu0 %v3521_v45  ;;  %v3559_v45 = vld [vmem:[%s4606_s4 + $0x30] sm:$0xff] }
 0x8c4   :  { %3890 = vmatprep.subr.mxu0 %v4049_v11 }
 0x946   :  { %v1606_v54 = vpop.xlane.xlu1 %1605 }
 0x947   :  { %v1608_v56 = vadd.f32 1.0, %v1606_v54 }
 0x948   :  { %v1603_v55 = vpop.xlane.xlu0 %1602 }
 0x949   :  { %v1607_v57 = vadd.f32 1.0, %v1603_v55  ;;  %4032 = vrcp.f32 %v1608_v56 }
 0x94b   :  { %4034 = vrcp.f32 %v1607_v57 }
 0x956   :  { %v4401_v0 = vpop.eup %4032 }
 0x958   :  { %v4403_v3 = vpop.eup %4034 }
 0x97c   :  { %v1753_v46 = vpop.f32.mrf.mxu1 }
 0x97d   :  { %v1754_v50 = vadd.f32 %v1753_v46, %v4141_v6 }
 0x97e   :  { %v1680_v47 = vpop.f32.mrf.mxu0  ;;  %v3873_v48 = vpop.f32.mrf.mxu1 }
 0x97f   :  { %v1681_v49 = vadd.f32 %v1680_v47, %v4125_v2 }
 0x980   :  { %v3868_v51 = vpop.f32.mrf.mxu0 }
 0x981   :  { %3880 = vmatprep.mubr.msk.f32.mxu0 %vm67_vm0, %v1681_v49 }
 0x982   :  { %3881 = vmatmul.mubr.msk.f32.vlgmr.msra.gmra.mxu0 %vm67_vm0, %v1754_v50 }
 0x983   :  { %3892 = vmatprep.mubr.msk.f32.mxu0 %vm4050_vm1, %v4049_v11 }
 0xa42   :  { %v3882_v59 = vpop.f32.mrf.mxu0 }
 0xa43   :  { %v1847_v60 = vadd.f32 %v3882_v59, %v3525_v58 }
 0xa44   :  { %v1841_v62 = vpop.f32.mrf.mxu0 }
 0xa45   :  { %v1842_v1 = vadd.f32 %v3525_v58, %v1841_v62  ;;  %v1851_v4 = vmul.f32 %v4401_v0, %v1847_v60 }
 0xa47   :  { %v1850_v5 = vmul.f32 %v4403_v3, %v1842_v1  ;;  %v1853_v8 = vmax.f32 %v1851_v4, 0.0 }
 0xa49   :  { %v1852_v7 = vmax.f32 %v1850_v5, 0.0 }
 0xa4b   :  { %3887 = vmatprep.mubr.msk.f32.mxu1 %vm753_vm6, %v1852_v7  ;;  %3891 = vmatpush3.msra.mxu0 %v1852_v7 }
 0xa4c   :  { %3888 = vmatmul.mubr.msk.f32.vlgmr.msra.gmra.mxu1 %vm753_vm6, %v1853_v8  ;;  %3893 = vmatmul.mubr.msk.f32.vlgmr.msra.gmra.mxu0 %vm319_vm2, %v1599_v41 }
 0xa4d   :  { %3896 = vmatpush3.msra.mxu1 %v1853_v8  ;;  %3900 = vmatprep.subr.mxu0 %v3537_v9 }
 0xa4e   :  { %3901 = vmatpush3.msra.mxu0 %v3537_v9  ;;  %3906 = vmatprep.mubr.msk.f32.mxu0 %vm67_vm0, %v1681_v49 }
 0xa4f   :  { %3902 = vmatprep.subr.mxu0 %v3536_v10  ;;  %3897 = vmatprep.mubr.msk.f32.mxu1 %vm4050_vm1, %v4049_v11 }
 0xa50   :  { %3903 = vmatpush3.msra.mxu0 %v3536_v10  ;;  %3898 = vmatmul.mubr.msk.f32.vlgmr.msra.gmra.mxu1 %vm319_vm2, %v4365_v40 }
 0xa51   :  { %3904 = vmatprep.subr.mxu0 %v3535_v14  ;;  %3909 = vmatprep.subr.msk.mxu1 %vm760_vm5, %v3543_v15 }
 0xa52   :  { %3905 = vmatpush3.msra.mxu0 %v3535_v14  ;;  %3910 = vmatpush3.msk.msra.mxu1 %vm760_vm5, %v3543_v15 }
 0xa53   :  { %3907 = vmatmul.mubr.msk.f32.vlgmr.msra.gmra.mxu0 %vm67_vm0, %v1754_v50  ;;  %3911 = vmatprep.subr.mxu1 %v3542_v16  ;;  %v3563_v50 = vld [vmem:[%s4607_s5 + $0x2] ss:$0 sm:$0xff] }
 0xa54   :  { %3929 = vmatprep.mubr.msk.f32.mxu0 %vm67_vm0, %v4125_v2  ;;  %3912 = vmatpush3.msra.mxu1 %v3542_v16 }
 0xa55   :  { %3916 = vmatprep.subr.msk.mxu1 %vm760_vm5, %v3548_v29  ;;  %3923 = vmatprep.subr.mxu0 %v3554_v30 }
 0xa56   :  { %3924 = vmatpush3.msra.mxu0 %v3554_v30  ;;  %v3572_v30 = vld [vmem:[%s4610_s6 + $0x60] sm:$0xff] }
 0xa57   :  { %3925 = vmatprep.subr.mxu0 %v3553_v31 }
 0xa58   :  { %3926 = vmatpush3.msra.mxu0 %v3553_v31 }
 0xa59   :  { %3927 = vmatprep.subr.mxu0 %v3552_v32 }
 0xa5a   :  { %3928 = vmatpush3.msra.mxu0 %v3552_v32 }
 0xa5b   :  { %3930 = vmatmul.mubr.msk.f32.vlgmr.msra.gmra.mxu0 %vm67_vm0, %v4141_v6  ;;  %3941 = vmatprep.subr.mxu0 %v4049_v11 }
 0xa5c   :  { %3943 = vmatprep.mubr.msk.f32.mxu0 %vm4050_vm1, %v4049_v11 }
 0xb0c   :  { %v3889_v17 = vpop.f32.mrf.mxu1  ;;  %v2009_v18 = vpop.f32.mrf.mxu0 }
 0xb0d   :  { %v1942_v19 = vadd.f32 %v3889_v17, %v4335_v61  ;;  %v2010_v20 = vadd.f32 %v2009_v18, %v1852_v7  ;;  %v3547_v61 = vld [vmem:[%s4611_s10 + $0x30] sm:$0xff] }
 0xb0e   :  { %v1932_v21 = vpop.f32.mrf.mxu1  ;;  %v3894_v22 = vpop.f32.mrf.mxu0 }
 0xb0f   :  { %v1941_v23 = vadd.f32 %v1932_v21, %v4337_v63  ;;  %3913 = vmatprep.mubr.msk.f32.mxu1 %vm753_vm6, %v2010_v20  ;;  %v3561_v63 = vld [vmem:[%s4606_s4 + $0x40] sm:$0xff] }
 0xb10   :  { %v2079_v25 = vpop.f32.mrf.mxu1 }
 0xb11   :  { %v2080_v26 = vadd.f32 %v2079_v25, %v1853_v8 }
 0xb12   :  { %v3899_v28 = vpop.f32.mrf.mxu1 }
 0xb13   :  { %3914 = vmatmul.mubr.msk.f32.vlgmr.msra.gmra.mxu1 %vm753_vm6, %v2080_v26  ;;  %v3908_v33 = vpop.f32.mrf.mxu0 }
 0xb14   :  { %3917 = vmatpush3.msk.msra.mxu1 %vm760_vm5, %v3548_v29  ;;  %v2167_v36 = vadd.f32 %v3908_v33, %v3539_v34 }
 0xb15   :  { %3918 = vmatprep.subr.mxu1 %v3547_v61  ;;  %v2161_v35 = vpop.f32.mrf.mxu0 }
 0xb16   :  { %3919 = vmatpush3.msra.mxu1 %v3547_v61  ;;  %v2162_v38 = vadd.f32 %v3539_v34, %v2161_v35  ;;  %v3574_v61 = vld [vmem:[%s4610_s6 + $0x70] sm:$0xff]  ;;  %v4048_v34 = vld [vmem:[%s4604_s0] sm:$0xff] }
 0xb17   :  { %3932 = vmatprep.subr.mxu1 %v3561_v63 }
 0xb1b   :  { %v3931_v51 = vpop.f32.mrf.mxu0 }
 0xb1c   :  { %v2436_v55 = vadd.f32 %v3931_v51, %v3556_v52 }
 0xb1d   :  { %v2430_v58 = vpop.f32.mrf.mxu0 }
 0xb1e   :  { %v2431_v59 = vadd.f32 %v3556_v52, %v2430_v58 }
 0xbd3   :  { %v3915_v37 = vpop.f32.mrf.mxu1 }
 0xbd4   :  { %v2258_v39 = vadd.f32 %v3915_v37, %v2167_v36 }
 0xbd5   :  { %v2248_v40 = vpop.f32.mrf.mxu1 }
 0xbd6   :  { %v2257_v12 = vadd.f32 %v2248_v40, %v2162_v38  ;;  %v2260_v13 = vmul.f32 %v4401_v0, %v2258_v39  ;;  %v3580_v38 = vld [vmem:[%s4611_s10 + $0x48] sm:$0xf] }
 0xbd8   :  { %v2259_v41 = vmul.f32 %v4403_v3, %v2257_v12  ;;  %v2262_v43 = vmax.f32 %v2260_v13, 0.0 }
 0xbda   :  { %v2261_v42 = vmax.f32 %v2259_v41, 0.0  ;;  %v3576_v41 = vld [vmem:[%s4612_s8 + $0x4] ss:$0 sm:$0xff] }
 0xbdc   :  { %3920 = vmatprep.mubr.msk.f32.mxu1 %vm753_vm6, %v2261_v42 }
 0xbdd   :  { %3921 = vmatmul.mubr.msk.f32.vlgmr.msra.gmra.mxu1 %vm753_vm6, %v2262_v43 }
 0xbde   :  { %3933 = vmatpush3.msra.mxu1 %v3561_v63  ;;  %3938 = vmatprep.mubr.msk.f32.mxu1 %vm67_vm0, %v4125_v2  ;;  %v3573_v63 = vld [vmem:[%s4610_s6 + $0x68] sm:$0xff] }
 0xbdf   :  { %3934 = vmatprep.subr.mxu1 %v3560_v44 }
 0xbe0   :  { %3935 = vmatpush3.msra.mxu1 %v3560_v44 }
 0xbe1   :  { %3936 = vmatprep.subr.mxu1 %v3559_v45 }
 0xbe2   :  { %3937 = vmatpush3.msra.mxu1 %v3559_v45 }
 0xbe3   :  { %3939 = vmatmul.mubr.msk.f32.vlgmr.msra.gmra.mxu1 %vm67_vm0, %v4141_v6  ;;  %3946 = vmatprep.subr.mxu1 %v4049_v11 }
 0xbe4   :  { %3948 = vmatprep.mubr.msk.f32.mxu1 %vm4050_vm1, %v4049_v11 }
 0xc9d   :  { %v3922_v46 = vpop.f32.mrf.mxu1 }
 0xc9e   :  { %v4484_v47 = vadd.f32 %v3922_v46, %v1942_v19 }
 0xc9f   :  { %v2341_v48 = vpop.f32.mrf.mxu1 }
 0xca0   :  { %v4486_v49 = vadd.f32 %v2341_v48, %v1941_v23 }
 0xca3   :  { %v3940_v53 = vpop.f32.mrf.mxu1 }
 0xca4   :  { %v2523_v54 = vadd.f32 %v3940_v53, %v3563_v50 }
 0xca5   :  { %v2517_v56 = vpop.f32.mrf.mxu1 }
 0xca6   :  { %v2518_v57 = vadd.f32 %v3563_v50, %v2517_v56  ;;  %3947 = vmatpush3.xpose.msk.msra.mxu1 %vm319_vm2, %v2523_v54  ;;  %v3588_v54 = vld [vmem:[%s4610_s6 + $0x88] sm:$0xff]  ;;  %v3586_v56 = vld [vmem:[%s4610_s6 + $0x78] sm:$0xff] }
 0xca7   :  { %3956 = vmatprep.subr.mxu1 %v4049_v11 }
 0xca8   :  { %3942 = vmatpush3.xpose.msk.msra.mxu0 %vm319_vm2, %v2518_v57  ;;  %v3594_v57 = vld [vmem:[%s4613_s7 + $0x28] sm:$0xf] }
 0xca9   :  { %3949 = vmatmul.mubr.msk.f32.vlgmr.msra.gmra.mxu1 %vm319_vm2, %v2436_v55  ;;  %3951 = vmatprep.subr.mxu0 %v4049_v11  ;;  %v3587_v55 = vld [vmem:[%s4610_s6 + $0x80] sm:$0xff] }
 0xcaa   :  { %3957 = vmatpush3.msra.mxu1 %v4141_v6  ;;  %3958 = vmatprep.mubr.msk.f32.mxu1 %vm4050_vm1, %v4049_v11 }
 0xcab   :  { %3944 = vmatmul.mubr.msk.f32.vlgmr.msra.gmra.mxu0 %vm319_vm2, %v2431_v59  ;;  %3970 = vmatprep.subr.msk.mxu1 %vm760_vm5, %v3580_v38 }
 0xcac   :  { %3952 = vmatpush3.msra.mxu0 %v4125_v2  ;;  %3953 = vmatprep.mubr.msk.f32.mxu0 %vm4050_vm1, %v4049_v11 }
 0xcad   :  { %3961 = vmatprep.subr.mxu0 %v3574_v61 }
 0xd69   :  { %v2674_v60 = vpop.f32.mrf.mxu1 }
 0xd6a   :  { %v2679_v62 = vmul.f32 0.35355338, %v2674_v60 }
 0xd6b   :  { %v2598_v0 = vpop.f32.mrf.mxu0  ;;  %v3950_v1 = vpop.f32.mrf.mxu1 }
 0xd6c   :  { %v2678_v3 = vmul.f32 0.35355338, %v2598_v0  ;;  %v2681_v4 = vsel %vm475_vm4, -1e+09, %v2679_v62 }
 0xd6d   :  { %v3945_v5 = vpop.f32.mrf.mxu0  ;;  %v2685_v7 = vsel %vm319_vm2, %v2681_v4, -inf }
 0xd6e   :  { %2686 = vmax.xlane.f32.xlu1 %v2685_v7  ;;  %v2680_v8 = vsel %vm474_vm3, -1e+09, %v2678_v3 }
 0xd6f   :  { %v2682_v2 = vsel %vm319_vm2, %v2680_v8, -inf }
 0xd70   :  { %2683 = vmax.xlane.f32.xlu0 %v2682_v2  ;;  %v3590_v2 = vld [vmem:[%s4612_s8 + $0x5] ss:$0 sm:$0xff] }
 0xdf7   :  { %v2687_v9 = vpop.xlane.xlu1 %2686 }
 0xdf8   :  { %v2689_v10 = vsub.f32 %v2681_v4, %v2687_v9 }
 0xdf9   :  { %v2684_v14 = vpop.xlane.xlu0 %2683 }
 0xdfa   :  { %v2692_v15 = vmul.f32 1.442695, %v2689_v10  ;;  %v2688_v16 = vsub.f32 %v2680_v8, %v2684_v14  ;;  %v3599_v8 = vld [vmem:[%s4611_s10 + $0x58] sm:$0xf] }
 0xdfc   :  { %4036 = vpow2.f32 %v2692_v15  ;;  %v2690_v17 = vmul.f32 1.442695, %v2688_v16 }
 0xdfe   :  { %4038 = vpow2.f32 %v2690_v17 }
 0xe09   :  { %v4037_v27 = vpop.eup %4036 }
 0xe0a   :  { %v2697_v18 = vsel %vm319_vm2, %v4037_v27, 0.0 }
 0xe0b   :  { %v4039_v19 = vpop.eup %4038  ;;  %2698 = vadd.xlane.f32.xlu1 %v2697_v18 }
 0xe0c   :  { %v2694_v20 = vsel %vm319_vm2, %v4039_v19, 0.0 }
 0xe0d   :  { %2695 = vadd.xlane.f32.xlu0 %v2694_v20 }
 0xe94   :  { %v2699_v24 = vpop.xlane.xlu1 %2698 }
 0xe95   :  { %4040 = vrcp.f32 %v2699_v24 }
 0xe96   :  { %v2696_v21 = vpop.xlane.xlu0 %2695 }
 0xe97   :  { %4042 = vrcp.f32 %v2696_v21 }
 0xea2   :  { %v4041_v22 = vpop.eup %4040 }
 0xea3   :  { %v4514_v23 = vmul.f32 %v4041_v22, %v4037_v27 }
 0xea4   :  { %v4043_v25 = vpop.eup %4042 }
 0xea5   :  { %3959 = vmatmul.mubr.msk.f32.vlgmr.msra.gmra.mxu1 %vm319_vm2, %v4514_v23  ;;  %v2707_v26 = vsel %vm319_vm2, %v4514_v23, 0.0  ;;  %v2702_v28 = vmul.f32 %v4043_v25, %v4039_v19 }
 0xea6   :  { %2708 = vadd.xlane.f32.xlu1 %v2707_v26  ;;  %3971 = vmatpush3.msk.msra.mxu1 %vm760_vm5, %v3580_v38 }
 0xea7   :  { %3954 = vmatmul.mubr.msk.f32.vlgmr.msra.gmra.mxu0 %vm319_vm2, %v2702_v28  ;;  %v2704_v29 = vsel %vm319_vm2, %v2702_v28, 0.0 }
 0xea8   :  { %2705 = vadd.xlane.f32.xlu0 %v2704_v29  ;;  %3962 = vmatpush3.msra.mxu0 %v3574_v61 }
 0xea9   :  { %3963 = vmatprep.subr.mxu0 %v3573_v63 }
 0xeaa   :  { %3964 = vmatpush3.msra.mxu0 %v3573_v63 }
 0xeab   :  { %3965 = vmatprep.subr.mxu0 %v3572_v30 }
 0xeac   :  { %3966 = vmatpush3.msra.mxu0 %v3572_v30 }
 0xead   :  { %3977 = vmatprep.subr.mxu0 %v4049_v11 }
 0xf2f   :  { %v2709_v39 = vpop.xlane.xlu1 %2708 }
 0xf30   :  { %v2711_v12 = vadd.f32 1.0, %v2709_v39 }
 0xf31   :  { %v2706_v40 = vpop.xlane.xlu0 %2705 }
 0xf32   :  { %v2710_v13 = vadd.f32 1.0, %v2706_v40  ;;  %4044 = vrcp.f32 %v2711_v12 }
 0xf34   :  { %4046 = vrcp.f32 %v2710_v13 }
 0xf3f   :  { %v4045_v45 = vpop.eup %4044 }
 0xf41   :  { %v4047_v48 = vpop.eup %4046 }
 0xf65   :  { %v2856_v31 = vpop.f32.mrf.mxu1 }
 0xf66   :  { %v2857_v36 = vadd.f32 %v2856_v31, %v4141_v6  ;;  %v3579_v6 = vld [vmem:[%s4611_s10 + $0x40] sm:$0xff] }
 0xf67   :  { %v2783_v32 = vpop.f32.mrf.mxu0  ;;  %v3960_v33 = vpop.f32.mrf.mxu1  ;;  %3972 = vmatprep.subr.mxu1 %v3579_v6 }
 0xf68   :  { %v2784_v35 = vadd.f32 %v4048_v34, %v2783_v32  ;;  %3973 = vmatpush3.msra.mxu1 %v3579_v6 }
 0xf69   :  { %v3955_v37 = vpop.f32.mrf.mxu0  ;;  %3982 = vmatprep.subr.mxu1 %v4049_v11 }
 0xf6a   :  { %3967 = vmatprep.mubr.msk.f32.mxu0 %vm67_vm0, %v2784_v35 }
 0xf6b   :  { %3968 = vmatmul.mubr.msk.f32.vlgmr.msra.gmra.mxu0 %vm67_vm0, %v2857_v36 }
 0xf6c   :  { %3979 = vmatprep.mubr.msk.f32.mxu0 %vm4050_vm1, %v4049_v11 }
0x102b   :  { %v3969_v42 = vpop.f32.mrf.mxu0 }
0x102c   :  { %v2950_v43 = vadd.f32 %v3969_v42, %v3576_v41 }
0x102d   :  { %v2944_v44 = vpop.f32.mrf.mxu0 }
0x102e   :  { %v2945_v46 = vadd.f32 %v3576_v41, %v2944_v44  ;;  %v2954_v50 = vmul.f32 %v4045_v45, %v2950_v43 }
0x1030   :  { %v2953_v51 = vmul.f32 %v4047_v48, %v2945_v46  ;;  %v2956_v53 = vmax.f32 %v2954_v50, 0.0 }
0x1032   :  { %v2955_v52 = vmax.f32 %v2953_v51, 0.0 }
0x1034   :  { %3974 = vmatprep.mubr.msk.f32.mxu1 %vm753_vm6, %v2955_v52  ;;  %3978 = vmatpush3.msra.mxu0 %v2955_v52 }
0x1035   :  { %3975 = vmatmul.mubr.msk.f32.vlgmr.msra.gmra.mxu1 %vm753_vm6, %v2956_v53  ;;  %3980 = vmatmul.mubr.msk.f32.vlgmr.msra.gmra.mxu0 %vm319_vm2, %v2702_v28 }
0x1036   :  { %3983 = vmatpush3.msra.mxu1 %v2956_v53  ;;  %3987 = vmatprep.subr.mxu0 %v3588_v54 }
0x1037   :  { %3988 = vmatpush3.msra.mxu0 %v3588_v54  ;;  %3993 = vmatprep.mubr.msk.f32.mxu0 %vm67_vm0, %v2784_v35 }
0x1038   :  { %3989 = vmatprep.subr.mxu0 %v3587_v55  ;;  %3984 = vmatprep.mubr.msk.f32.mxu1 %vm4050_vm1, %v4049_v11  ;;  %v3593_v11 = vld [vmem:[%s4613_s7 + $0x20] sm:$0xff] }
0x1039   :  { %3990 = vmatpush3.msra.mxu0 %v3587_v55  ;;  %3985 = vmatmul.mubr.msk.f32.vlgmr.msra.gmra.mxu1 %vm319_vm2, %v4514_v23 }
0x103a   :  { %3991 = vmatprep.subr.mxu0 %v3586_v56  ;;  %3996 = vmatprep.subr.msk.mxu1 %vm760_vm5, %v3594_v57 }
0x103b   :  { %3992 = vmatpush3.msra.mxu0 %v3586_v56  ;;  %3997 = vmatpush3.msk.msra.mxu1 %vm760_vm5, %v3594_v57 }
0x103c   :  { %3994 = vmatmul.mubr.msk.f32.vlgmr.msra.gmra.mxu0 %vm67_vm0, %v2857_v36  ;;  %3998 = vmatprep.subr.mxu1 %v3593_v11 }
0x103d   :  { %3999 = vmatpush3.msra.mxu1 %v3593_v11 }
0x103e   :  { %4003 = vmatprep.subr.msk.mxu1 %vm760_vm5, %v3599_v8 }
0x10f5   :  { %v3976_v58 = vpop.f32.mrf.mxu1  ;;  %v3112_v59 = vpop.f32.mrf.mxu0 }
0x10f6   :  { %v3045_v60 = vadd.f32 %v3976_v58, %v4484_v47  ;;  %v3113_v62 = vadd.f32 %v3112_v59, %v2955_v52  ;;  %v3598_v47 = vld [vmem:[%s4611_s10 + $0x50] sm:$0xff] }
0x10f7   :  { %v3035_v0 = vpop.f32.mrf.mxu1  ;;  %v3981_v1 = vpop.f32.mrf.mxu0 }
0x10f8   :  { %v3044_v3 = vadd.f32 %v3035_v0, %v4486_v49  ;;  %4000 = vmatprep.mubr.msk.f32.mxu1 %vm753_vm6, %v3113_v62 }
0x10f9   :  { %v3182_v4 = vpop.f32.mrf.mxu1 }
0x10fa   :  { %v3183_v5 = vadd.f32 %v3182_v4, %v2956_v53 }
0x10fb   :  { %v3986_v7 = vpop.f32.mrf.mxu1 }
0x10fc   :  { %4001 = vmatmul.mubr.msk.f32.vlgmr.msra.gmra.mxu1 %vm753_vm6, %v3183_v5  ;;  %v3995_v49 = vpop.f32.mrf.mxu0 }
0x10fd   :  { %4004 = vmatpush3.msk.msra.mxu1 %vm760_vm5, %v3599_v8  ;;  %v3270_v10 = vadd.f32 %v3995_v49, %v3590_v2 }
0x10fe   :  { %4005 = vmatprep.subr.mxu1 %v3598_v47  ;;  %v3264_v9 = vpop.f32.mrf.mxu0 }
0x10ff   :  { %4006 = vmatpush3.msra.mxu1 %v3598_v47  ;;  %v3265_v15 = vadd.f32 %v3590_v2, %v3264_v9 }
0x11bc   :  { %v4002_v14 = vpop.f32.mrf.mxu1 }
0x11bd   :  { %v3361_v16 = vadd.f32 %v4002_v14, %v3270_v10 }
0x11be   :  { %v3351_v17 = vpop.f32.mrf.mxu1 }
0x11bf   :  { %v3360_v27 = vadd.f32 %v3351_v17, %v3265_v15  ;;  %v3363_v18 = vmul.f32 %v4045_v45, %v3361_v16 }
0x11c1   :  { %v3362_v19 = vmul.f32 %v4047_v48, %v3360_v27  ;;  %v3365_v24 = vmax.f32 %v3363_v18, 0.0 }
0x11c3   :  { %v3364_v20 = vmax.f32 %v3362_v19, 0.0 }
0x11c5   :  { %4007 = vmatprep.mubr.msk.f32.mxu1 %vm753_vm6, %v3364_v20 }
0x11c6   :  { %4008 = vmatmul.mubr.msk.f32.vlgmr.msra.gmra.mxu1 %vm753_vm6, %v3365_v24 }
0x1286   :  { %v4009_v21 = vpop.f32.mrf.mxu1 }
0x1287   :  { %v3454_v22 = vadd.f32 %v4009_v21, %v3045_v60 }
0x1288   :  { %v3444_v23 = vpop.f32.mrf.mxu1 }
0x1289   :  { %3456 = vst.msk [vmem:[%s4615_s12 + $0x8] sm:$0xff] %vm67_vm0, %v3454_v22  ;;  %v3453_v25 = vadd.f32 %v3444_v23, %v3044_v3 }
0x128b   :  { %3455 = vst.msk [vmem:[%s4615_s12] sm:$0xff] %vm67_vm0, %v3453_v25 }

// kernel: aggcn_forward.8
= control target key start
LH: loop header
LB: loop body
LE: loop exit
PB: predicated region body
PF: predicated region fallthrough
CT: control target
= control target key end

     0   :  { %vm67_vm0 = vcmask 195584   ;;  %v7661_v11 = vmov 0.0   ;;  %vm7662_vm1 = vmmov 0   ;;  %vm319_vm2 = vcmask 64512   ;;  %s8615_s9 = inlined_call_operand.vmem [shape: f32[24,24], index: 9, kind: input, shape index: {}]   ;;  %s8616_s0 = inlined_call_operand.vmem [shape: f32[2,8,24], index: 0, kind: input, shape index: {}]   ;;  %s8617_s2 = inlined_call_operand.vmem [shape: f32[3,24,8], index: 2, kind: input, shape index: {}]   ;;  %s8618_s4 = inlined_call_operand.vmem [shape: f32[3,24,8], index: 4, kind: input, shape index: {}]   ;;  %s8619_s5 = inlined_call_operand.vmem [shape: f32[3,1,8], index: 5, kind: input, shape index: {}]   ;;  %s8620_s3 = inlined_call_operand.vmem [shape: f32[3,1,8], index: 3, kind: input, shape index: {}]   ;;  %s8621_s1 = inlined_call_operand.vmem [shape: f32[2,1,8], index: 1, kind: input, shape index: {}]   ;;  %s8622_s6 = inlined_call_operand.vmem [shape: f32[12,24,6], index: 6, kind: input, shape index: {}]   ;;  %s8623_s10 = inlined_call_operand.vmem [shape: f32[12,6,24], index: 10, kind: input, shape index: {}]   ;;  %s8624_s8 = inlined_call_operand.vmem [shape: f32[12,1,6], index: 8, kind: input, shape index: {}]   ;;  %s8625_s7 = inlined_call_operand.vmem [shape: f32[18,6,6], index: 7, kind: input, shape index: {}]   ;;  %s8626_s11 = inlined_call_operand.vmem [shape: f32[1,24], index: 11, kind: input, shape index: {}]   ;;  %s8627_s12 = inlined_call_operand.vmem [shape: f32[2,8,24], index: 12, kind: output, shape index: {}]  }
   0x1   :  { %v59_v0 = vld [vmem:[%s8615_s9 + $0x10] sm:$0xff]  ;;  %v58_v1 = vld [vmem:[%s8615_s9 + $0x8] sm:$0xff]  ;;  %v7737_v2 = vld [vmem:[%s8616_s0] sm:$0xff]  ;;  %vm759_vm5 = vcmask 1045504   ;;  %vm752_vm6 = vcmask 48128  }
   0x2   :  { %7150 = vmatprep.subr.mxu0 %v59_v0  ;;  %v57_v3 = vld [vmem:[%s8615_s9] sm:$0xff]  ;;  %7156 = vmatprep.mubr.msk.f32.mxu0 %vm67_vm0, %v7737_v2  ;;  %v151_v4 = vld [vmem:[%s8617_s2 + $0x10] sm:$0xff]  ;;  %v150_v5 = vld [vmem:[%s8617_s2 + $0x8] sm:$0xff] }
   0x3   :  { %7151 = vmatpush3.msra.mxu0 %v59_v0  ;;  %7159 = vmatprep.subr.mxu1 %v151_v4  ;;  %v7753_v6 = vld [vmem:[%s8616_s0 + $0x8] sm:$0xff]  ;;  %v236_v7 = vld [vmem:[%s8618_s4 + $0x10] sm:$0xff]  ;;  %v149_v8 = vld [vmem:[%s8617_s2] sm:$0xff] }
   0x4   :  { %7152 = vmatprep.subr.mxu0 %v58_v1  ;;  %7160 = vmatpush3.msra.mxu1 %v151_v4  ;;  %v235_v9 = vld [vmem:[%s8618_s4 + $0x8] sm:$0xff]  ;;  %v234_v10 = vld [vmem:[%s8618_s4] sm:$0xff]  ;;  %v658_v54 = vld [vmem:[%s8622_s6 + $0x10] sm:$0xff] }
   0x5   :  { %7153 = vmatpush3.msra.mxu0 %v58_v1  ;;  %7161 = vmatprep.subr.mxu1 %v150_v5  ;;  %v6640_v16 = vld [vmem:[%s8619_s5] ss:$0 sm:$0xff]  ;;  %v7814_v27 = vld [vmem:[%s8621_s1 + $0x1] ss:$0 sm:$0xff]  ;;  %v657_v55 = vld [vmem:[%s8622_s6 + $0x8] sm:$0xff] }
   0x6   :  { %7154 = vmatprep.subr.mxu0 %v57_v3  ;;  %7162 = vmatpush3.msra.mxu1 %v150_v5  ;;  %v6637_v18 = vld [vmem:[%s8620_s3] ss:$0 sm:$0xff]  ;;  %vm475_vm4 = vcmp.eq.f32.partialorder %v7814_v27, 0.0 }
   0x7   :  { %7155 = vmatpush3.msra.mxu0 %v57_v3  ;;  %7163 = vmatprep.subr.mxu1 %v149_v8  ;;  %v7808_v24 = vld [vmem:[%s8621_s1] ss:$0 sm:$0xff] }
   0x8   :  { %7157 = vmatmul.mubr.msk.f32.vlgmr.msra.gmra.mxu0 %vm67_vm0, %v7753_v6  ;;  %7168 = vmatprep.subr.mxu0 %v236_v7  ;;  %vm474_vm3 = vcmp.eq.f32.partialorder %v7808_v24, 0.0  ;;  %v656_v56 = vld [vmem:[%s8622_s6] sm:$0xff] }
   0x9   :  { %7169 = vmatpush3.msra.mxu0 %v236_v7  ;;  %7174 = vmatprep.mubr.msk.f32.mxu0 %vm67_vm0, %v7737_v2  ;;  %v751_v63 = vld [vmem:[%s8623_s10] sm:$0x3f] }
   0xa   :  { %7170 = vmatprep.subr.mxu0 %v235_v9  ;;  %7164 = vmatpush3.msra.mxu1 %v149_v8  ;;  %v6649_v5 = vld [vmem:[%s8624_s8] ss:$0 sm:$0xff] }
   0xb   :  { %7171 = vmatpush3.msra.mxu0 %v235_v9  ;;  %7165 = vmatprep.mubr.msk.f32.mxu1 %vm67_vm0, %v7737_v2 }
   0xc   :  { %7172 = vmatprep.subr.mxu0 %v234_v10  ;;  %7166 = vmatmul.mubr.msk.f32.vlgmr.msra.gmra.mxu1 %vm67_vm0, %v7753_v6 }
   0xd   :  { %7173 = vmatpush3.msra.mxu0 %v234_v10  ;;  %7177 = vmatprep.subr.mxu1 %v7661_v11 }
   0xe   :  { %7175 = vmatmul.mubr.msk.f32.vlgmr.msra.gmra.mxu0 %vm67_vm0, %v7753_v6  ;;  %7187 = vmatprep.subr.mxu0 %v7661_v11 }
   0xf   :  { %7188 = vmatpush3.msra.mxu0 %v7737_v2  ;;  %7179 = vmatprep.mubr.msk.f32.mxu1 %vm7662_vm1, %v7661_v11 }
  0x10   :  { %7189 = vmatprep.mubr.msk.f32.mxu0 %vm7662_vm1, %v7661_v11  ;;  %7197 = vmatprep.subr.mxu0 %v658_v54 }
  0xc8   :  { %v7784_v12 = vpop.f32.mrf.mxu0 }
  0xca   :  { %v7786_v13 = vpop.f32.mrf.mxu0 }
  0xcc   :  { %v7167_v14 = vpop.f32.mrf.mxu1 }
  0xcd   :  { %v231_v23 = vadd.f32 %v7167_v14, %v6637_v18 }
  0xce   :  { %v7176_v15 = vpop.f32.mrf.mxu0  ;;  %v225_v20 = vpop.f32.mrf.mxu1 }
  0xcf   :  { %v226_v21 = vadd.f32 %v6637_v18, %v225_v20  ;;  %v316_v22 = vadd.f32 %v7176_v15, %v6640_v16  ;;  %v6659_v20 = vld [vmem:[%s8622_s6 + $0x28] sm:$0xff] }
  0xd0   :  { %v310_v17 = vpop.f32.mrf.mxu0 }
  0xd1   :  { %v311_v19 = vadd.f32 %v6640_v16, %v310_v17 }
  0xd3   :  { %7178 = vmatpush3.xpose.msk.msra.mxu1 %vm319_vm2, %v311_v19 }
  0xd4   :  { %7182 = vmatprep.subr.mxu1 %v7661_v11 }
  0xd6   :  { %7180 = vmatmul.mubr.msk.f32.vlgmr.msra.gmra.mxu1 %vm319_vm2, %v226_v21  ;;  %v6658_v21 = vld [vmem:[%s8622_s6 + $0x20] sm:$0xff] }
  0xd7   :  { %7183 = vmatpush3.xpose.msk.msra.mxu1 %vm319_vm2, %v316_v22  ;;  %7184 = vmatprep.mubr.msk.f32.mxu1 %vm7662_vm1, %v7661_v11  ;;  %v6657_v22 = vld [vmem:[%s8622_s6 + $0x18] sm:$0xff] }
  0xd8   :  { %7192 = vmatprep.subr.mxu1 %v7661_v11 }
  0xda   :  { %7185 = vmatmul.mubr.msk.f32.vlgmr.msra.gmra.mxu1 %vm319_vm2, %v231_v23  ;;  %v1067_v23 = vld [vmem:[%s8625_s7] sm:$0x3f] }
  0xdb   :  { %7193 = vmatpush3.msra.mxu1 %v7753_v6  ;;  %7194 = vmatprep.mubr.msk.f32.mxu1 %vm7662_vm1, %v7661_v11 }
  0xdc   :  { %7206 = vmatprep.subr.msk.mxu1 %vm759_vm5, %v751_v63 }
 0x196   :  { %v392_v25 = vpop.f32.mrf.mxu1 }
 0x197   :  { %v472_v26 = vmul.f32 0.35355338, %v392_v25  ;;  %v6634_v25 = vld [vmem:[%s8626_s11] ss:$0 sm:$0xff] }
 0x198   :  { %v7181_v28 = vpop.f32.mrf.mxu1 }
 0x199   :  { %v476_v29 = vsel %vm474_vm3, -1e+09, %v472_v26  ;;  %v146_v26 = vadd.f32 %v7784_v12, %v6634_v25  ;;  %v6667_v12 = vld [vmem:[%s8623_s10 + $0x8] sm:$0x3f] }
 0x19a   :  { %v468_v30 = vpop.f32.mrf.mxu1  ;;  %v478_v31 = vsel %vm319_vm2, %v476_v29, -inf }
 0x19b   :  { %v473_v32 = vmul.f32 0.35355338, %v468_v30  ;;  %479 = vmax.xlane.f32.xlu0 %v478_v31  ;;  %v141_v30 = vadd.f32 %v6634_v25, %v7786_v13 }
 0x19c   :  { %v7186_v33 = vpop.f32.mrf.mxu1 }
 0x19d   :  { %v477_v34 = vsel %vm475_vm4, -1e+09, %v473_v32 }
 0x19e   :  { %v481_v35 = vsel %vm319_vm2, %v477_v34, -inf }
 0x19f   :  { %482 = vmax.xlane.f32.xlu0 %v481_v35 }
 0x224   :  { %v480_v36 = vpop.xlane.xlu0 %479 }
 0x225   :  { %v484_v37 = vsub.f32 %v476_v29, %v480_v36 }
 0x227   :  { %v486_v38 = vmul.f32 1.442695, %v484_v37 }
 0x228   :  { %v483_v39 = vpop.xlane.xlu0 %482 }
 0x229   :  { %7623 = vpow2.f32 %v486_v38  ;;  %v485_v40 = vsub.f32 %v477_v34, %v483_v39  ;;  %v6661_v39 = vld [vmem:[%s8624_s8 + $0x1] ss:$0 sm:$0xff] }
 0x22b   :  { %v488_v41 = vmul.f32 1.442695, %v485_v40 }
 0x22d   :  { %7625 = vpow2.f32 %v488_v41 }
 0x236   :  { %v7624_v42 = vpop.eup %7623 }
 0x237   :  { %v490_v43 = vsel %vm319_vm2, %v7624_v42, 0.0 }
 0x238   :  { %491 = vadd.xlane.f32.xlu1 %v490_v43 }
 0x23a   :  { %v7626_v44 = vpop.eup %7625 }
 0x23b   :  { %v493_v45 = vsel %vm319_vm2, %v7626_v44, 0.0 }
 0x23c   :  { %494 = vadd.xlane.f32.xlu1 %v493_v45 }
 0x2c1   :  { %v492_v46 = vpop.xlane.xlu1 %491 }
 0x2c2   :  { %7627 = vrcp.f32 %v492_v46 }
 0x2c5   :  { %v495_v47 = vpop.xlane.xlu1 %494 }
 0x2c6   :  { %7629 = vrcp.f32 %v495_v47 }
 0x2cf   :  { %v7628_v48 = vpop.eup %7627 }
 0x2d0   :  { %v7825_v49 = vmul.f32 %v7628_v48, %v7624_v42 }
 0x2d2   :  { %7190 = vmatmul.mubr.msk.f32.vlgmr.msra.gmra.mxu0 %vm319_vm2, %v7825_v49  ;;  %v500_v50 = vsel %vm319_vm2, %v7825_v49, 0.0 }
 0x2d3   :  { %v7630_v51 = vpop.eup %7629  ;;  %501 = vadd.xlane.f32.xlu0 %v500_v50  ;;  %7198 = vmatpush3.msra.mxu0 %v658_v54  ;;  %v6674_v54 = vld [vmem:[%s8622_s6 + $0x38] sm:$0xff] }
 0x2d4   :  { %v7831_v52 = vmul.f32 %v7630_v51, %v7626_v44  ;;  %7199 = vmatprep.subr.mxu0 %v657_v55 }
 0x2d5   :  { %7200 = vmatpush3.msra.mxu0 %v657_v55  ;;  %v6673_v55 = vld [vmem:[%s8622_s6 + $0x30] sm:$0xff] }
 0x2d6   :  { %7195 = vmatmul.mubr.msk.f32.vlgmr.msra.gmra.mxu1 %vm319_vm2, %v7831_v52  ;;  %v503_v53 = vsel %vm319_vm2, %v7831_v52, 0.0  ;;  %7201 = vmatprep.subr.mxu0 %v656_v56 }
 0x2d7   :  { %504 = vadd.xlane.f32.xlu1 %v503_v53  ;;  %7202 = vmatpush3.msra.mxu0 %v656_v56  ;;  %v6675_v53 = vld [vmem:[%s8622_s6 + $0x40] sm:$0xff]  ;;  %v6680_v56 = vld [vmem:[%s8625_s7 + $0x8] sm:$0x3f] }
 0x2d8   :  { %7211 = vmatprep.subr.mxu0 %v7661_v11  ;;  %7207 = vmatpush3.msk.msra.mxu1 %vm759_vm5, %v751_v63 }
 0x2d9   :  { %7216 = vmatprep.subr.mxu1 %v7661_v11 }
 0x35c   :  { %v502_v1 = vpop.xlane.xlu0 %501 }
 0x35d   :  { %v506_v4 = vadd.f32 1.0, %v502_v1 }
 0x360   :  { %v505_v0 = vpop.xlane.xlu1 %504 }
 0x361   :  { %v507_v3 = vadd.f32 1.0, %v505_v0 }
 0x363   :  { %7631 = vrcp.f32 %v507_v3 }
 0x364   :  { %7633 = vrcp.f32 %v506_v4 }
 0x370   :  { %v7868_v10 = vpop.eup %7631 }
 0x371   :  { %v7870_v15 = vpop.eup %7633 }
 0x392   :  { %v579_v57 = vpop.f32.mrf.mxu0 }
 0x393   :  { %v7848_v58 = vadd.f32 %v579_v57, %v7737_v2  ;;  %v6684_v57 = vld [vmem:[%s8625_s7 + $0x10] sm:$0x3f] }
 0x394   :  { %v7191_v59 = vpop.f32.mrf.mxu0 }
 0x395   :  { %7203 = vmatprep.mubr.msk.f32.mxu0 %vm67_vm0, %v7848_v58 }
 0x396   :  { %v652_v60 = vpop.f32.mrf.mxu1 }
 0x397   :  { %v7853_v61 = vadd.f32 %v652_v60, %v7753_v6 }
 0x398   :  { %v7196_v62 = vpop.f32.mrf.mxu1 }
 0x399   :  { %7204 = vmatmul.mubr.msk.f32.vlgmr.msra.gmra.mxu0 %vm67_vm0, %v7853_v61 }
 0x39a   :  { %7213 = vmatprep.mubr.msk.f32.mxu0 %vm7662_vm1, %v7661_v11 }
 0x459   :  { %v7205_v7 = vpop.f32.mrf.mxu0 }
 0x45a   :  { %v744_v8 = vadd.f32 %v7205_v7, %v6649_v5 }
 0x45b   :  { %v738_v9 = vpop.f32.mrf.mxu0 }
 0x45c   :  { %v739_v14 = vadd.f32 %v6649_v5, %v738_v9  ;;  %v748_v16 = vmul.f32 %v7868_v10, %v744_v8  ;;  %v6688_v8 = vld [vmem:[%s8623_s10 + $0x10] sm:$0x3f] }
 0x45e   :  { %v747_v17 = vmul.f32 %v7870_v15, %v739_v14  ;;  %v750_v19 = vmax.f32 %v748_v16, 0.0  ;;  %v6677_v14 = vld [vmem:[%s8624_s8 + $0x2] ss:$0 sm:$0xff] }
 0x460   :  { %v749_v18 = vmax.f32 %v747_v17, 0.0 }
 0x462   :  { %7208 = vmatprep.mubr.msk.f32.mxu1 %vm752_vm6, %v749_v18  ;;  %7212 = vmatpush3.msra.mxu0 %v749_v18 }
 0x463   :  { %7209 = vmatmul.mubr.msk.f32.vlgmr.msra.gmra.mxu1 %vm752_vm6, %v750_v19  ;;  %7214 = vmatmul.mubr.msk.f32.vlgmr.msra.gmra.mxu0 %vm319_vm2, %v7825_v49 }
 0x464   :  { %7217 = vmatpush3.msra.mxu1 %v750_v19  ;;  %7221 = vmatprep.subr.mxu0 %v6659_v20 }
 0x465   :  { %7222 = vmatpush3.msra.mxu0 %v6659_v20  ;;  %7227 = vmatprep.mubr.msk.f32.mxu0 %vm67_vm0, %v7848_v58 }
 0x466   :  { %7223 = vmatprep.subr.mxu0 %v6658_v21  ;;  %7218 = vmatprep.mubr.msk.f32.mxu1 %vm7662_vm1, %v7661_v11 }
 0x467   :  { %7224 = vmatpush3.msra.mxu0 %v6658_v21  ;;  %7219 = vmatmul.mubr.msk.f32.vlgmr.msra.gmra.mxu1 %vm319_vm2, %v7831_v52 }
 0x468   :  { %7225 = vmatprep.subr.mxu0 %v6657_v22  ;;  %7230 = vmatprep.subr.msk.mxu1 %vm759_vm5, %v1067_v23 }
 0x469   :  { %7226 = vmatpush3.msra.mxu0 %v6657_v22  ;;  %7231 = vmatpush3.msk.msra.mxu1 %vm759_vm5, %v1067_v23 }
 0x46a   :  { %7228 = vmatmul.mubr.msk.f32.vlgmr.msra.gmra.mxu0 %vm67_vm0, %v7853_v61  ;;  %7240 = vmatprep.subr.mxu0 %v7661_v11 }
 0x46b   :  { %7242 = vmatprep.mubr.msk.f32.mxu0 %vm7662_vm1, %v7661_v11  ;;  %7235 = vmatprep.subr.msk.mxu1 %vm759_vm5, %v6667_v12 }
 0x523   :  { %v7210_v28 = vpop.f32.mrf.mxu1  ;;  %v906_v29 = vpop.f32.mrf.mxu0 }
 0x524   :  { %v839_v31 = vadd.f32 %v7210_v28, %v146_v26  ;;  %v7908_v32 = vadd.f32 %v906_v29, %v749_v18 }
 0x525   :  { %v829_v33 = vpop.f32.mrf.mxu1  ;;  %v7215_v34 = vpop.f32.mrf.mxu0 }
 0x526   :  { %v838_v35 = vadd.f32 %v829_v33, %v141_v30  ;;  %7232 = vmatprep.mubr.msk.f32.mxu1 %vm752_vm6, %v7908_v32  ;;  %v6696_v34 = vld [vmem:[%s8622_s6 + $0x58] sm:$0xff] }
 0x527   :  { %v976_v36 = vpop.f32.mrf.mxu1 }
 0x528   :  { %v7912_v37 = vadd.f32 %v976_v36, %v750_v19  ;;  %v6694_v36 = vld [vmem:[%s8622_s6 + $0x48] sm:$0xff] }
 0x529   :  { %v7220_v38 = vpop.f32.mrf.mxu1 }
 0x52a   :  { %7233 = vmatmul.mubr.msk.f32.vlgmr.msra.gmra.mxu1 %vm752_vm6, %v7912_v37  ;;  %v7229_v13 = vpop.f32.mrf.mxu0 }
 0x52b   :  { %7236 = vmatpush3.msk.msra.mxu1 %vm759_vm5, %v6667_v12  ;;  %v1064_v41 = vadd.f32 %v7229_v13, %v6661_v39 }
 0x52c   :  { %7245 = vmatprep.subr.mxu1 %v7661_v11  ;;  %v1058_v40 = vpop.f32.mrf.mxu0 }
 0x52d   :  { %v1059_v43 = vadd.f32 %v6661_v39, %v1058_v40 }
 0x5ea   :  { %v7234_v42 = vpop.f32.mrf.mxu1 }
 0x5eb   :  { %v1153_v44 = vadd.f32 %v7234_v42, %v1064_v41 }
 0x5ec   :  { %v1143_v45 = vpop.f32.mrf.mxu1 }
 0x5ed   :  { %v1152_v46 = vadd.f32 %v1143_v45, %v1059_v43  ;;  %v1155_v47 = vmul.f32 %v7868_v10, %v1153_v44  ;;  %v6713_v43 = vld [vmem:[%s8623_s10 + $0x18] sm:$0x3f]  ;;  %v6726_v44 = vld [vmem:[%s8618_s4 + $0x28] sm:$0xff] }
 0x5ee   :  { %v6719_v45 = vld [vmem:[%s8617_s2 + $0x28] sm:$0xff] }
 0x5ef   :  { %v1154_v48 = vmul.f32 %v7870_v15, %v1152_v46  ;;  %v1157_v51 = vmax.f32 %v1155_v47, 0.0  ;;  %v6718_v46 = vld [vmem:[%s8617_s2 + $0x20] sm:$0xff]  ;;  %v6717_v47 = vld [vmem:[%s8617_s2 + $0x18] sm:$0xff] }
 0x5f1   :  { %v1156_v50 = vmax.f32 %v1154_v48, 0.0 }
 0x5f3   :  { %7237 = vmatprep.mubr.msk.f32.mxu1 %vm752_vm6, %v1156_v50  ;;  %7241 = vmatpush3.msra.mxu0 %v1156_v50 }
 0x5f4   :  { %7238 = vmatmul.mubr.msk.f32.vlgmr.msra.gmra.mxu1 %vm752_vm6, %v1157_v51  ;;  %7243 = vmatmul.mubr.msk.f32.vlgmr.msra.gmra.mxu0 %vm319_vm2, %v7825_v49 }
 0x5f5   :  { %7246 = vmatpush3.msra.mxu1 %v1157_v51  ;;  %7250 = vmatprep.subr.mxu0 %v6675_v53 }
 0x5f6   :  { %7251 = vmatpush3.msra.mxu0 %v6675_v53  ;;  %7256 = vmatprep.mubr.msk.f32.mxu0 %vm67_vm0, %v7848_v58 }
 0x5f7   :  { %7252 = vmatprep.subr.mxu0 %v6674_v54  ;;  %7247 = vmatprep.mubr.msk.f32.mxu1 %vm7662_vm1, %v7661_v11 }
 0x5f8   :  { %7253 = vmatpush3.msra.mxu0 %v6674_v54  ;;  %7248 = vmatmul.mubr.msk.f32.vlgmr.msra.gmra.mxu1 %vm319_vm2, %v7831_v52 }
 0x5f9   :  { %7254 = vmatprep.subr.mxu0 %v6673_v55  ;;  %7261 = vmatprep.mubr.msk.f32.mxu1 %vm752_vm6, %v7908_v32 }
 0x5fa   :  { %7255 = vmatpush3.msra.mxu0 %v6673_v55  ;;  %7259 = vmatprep.subr.msk.mxu1 %vm759_vm5, %v6680_v56 }
 0x5fb   :  { %7257 = vmatmul.mubr.msk.f32.vlgmr.msra.gmra.mxu0 %vm67_vm0, %v7853_v61  ;;  %7260 = vmatpush3.msk.msra.mxu1 %vm759_vm5, %v6680_v56 }
 0x5fc   :  { %7262 = vmatmul.mubr.msk.f32.vlgmr.msra.gmra.mxu1 %vm752_vm6, %v7912_v37  ;;  %7264 = vmatprep.subr.msk.mxu0 %vm759_vm5, %v6684_v57 }
 0x5fd   :  { %7265 = vmatpush3.msk.msra.mxu0 %vm759_vm5, %v6684_v57  ;;  %7269 = vmatprep.subr.msk.mxu1 %vm759_vm5, %v6688_v8 }
 0x5fe   :  { %7274 = vmatprep.subr.mxu0 %v7661_v11  ;;  %7270 = vmatpush3.msk.msra.mxu1 %vm759_vm5, %v6688_v8 }
 0x5ff   :  { %7279 = vmatprep.subr.mxu1 %v7661_v11 }
 0x6b4   :  { %v7239_v59 = vpop.f32.mrf.mxu1  ;;  %v1312_v60 = vpop.f32.mrf.mxu0 }
 0x6b5   :  { %v7963_v62 = vadd.f32 %v7239_v59, %v839_v31  ;;  %v1313_v63 = vadd.f32 %v1312_v60, %v1156_v50 }
 0x6b6   :  { %v1235_v0 = vpop.f32.mrf.mxu1  ;;  %v7244_v1 = vpop.f32.mrf.mxu0 }
 0x6b7   :  { %v7965_v3 = vadd.f32 %v1235_v0, %v838_v35  ;;  %7266 = vmatprep.mubr.msk.f32.mxu0 %vm752_vm6, %v1313_v63  ;;  %v6695_v35 = vld [vmem:[%s8622_s6 + $0x50] sm:$0xff] }
 0x6b8   :  { %v1382_v4 = vpop.f32.mrf.mxu1 }
 0x6b9   :  { %v1383_v5 = vadd.f32 %v1382_v4, %v1157_v51  ;;  %v6698_v51 = vld [vmem:[%s8624_s8 + $0x3] ss:$0 sm:$0xff] }
 0x6ba   :  { %v7249_v7 = vpop.f32.mrf.mxu1 }
 0x6bb   :  { %7267 = vmatmul.mubr.msk.f32.vlgmr.msra.gmra.mxu0 %vm752_vm6, %v1383_v5  ;;  %v7258_v9 = vpop.f32.mrf.mxu0 }
 0x6bc   :  { %7276 = vmatprep.mubr.msk.f32.mxu0 %vm7662_vm1, %v7661_v11  ;;  %v7263_v17 = vpop.f32.mrf.mxu1  ;;  %v1470_v18 = vadd.f32 %v7258_v9, %v6677_v14 }
 0x6bd   :  { %v1464_v16 = vpop.f32.mrf.mxu0 }
 0x6be   :  { %v1465_v19 = vadd.f32 %v6677_v14, %v1464_v16  ;;  %v1544_v20 = vpop.f32.mrf.mxu1  ;;  %v1554_v21 = vadd.f32 %v7263_v17, %v1470_v18  ;;  %v6725_v16 = vld [vmem:[%s8618_s4 + $0x20] sm:$0xff]  ;;  %v6724_v17 = vld [vmem:[%s8618_s4 + $0x18] sm:$0xff] }
 0x6c0   :  { %v1553_v23 = vadd.f32 %v1544_v20, %v1465_v19  ;;  %v6728_v20 = vld [vmem:[%s8619_s5 + $0x1] ss:$0 sm:$0xff] }
 0x77b   :  { %v7268_v22 = vpop.f32.mrf.mxu0 }
 0x77c   :  { %v1642_v25 = vadd.f32 %v7268_v22, %v1554_v21  ;;  %v6721_v22 = vld [vmem:[%s8620_s3 + $0x1] ss:$0 sm:$0xff] }
 0x77d   :  { %v1632_v26 = vpop.f32.mrf.mxu0 }
 0x77e   :  { %v1641_v28 = vadd.f32 %v1632_v26, %v1553_v23  ;;  %v1644_v29 = vmul.f32 %v7868_v10, %v1642_v25 }
 0x780   :  { %v1643_v30 = vmul.f32 %v7870_v15, %v1641_v28  ;;  %v1646_v33 = vmax.f32 %v1644_v29, 0.0 }
 0x782   :  { %v1645_v31 = vmax.f32 %v1643_v30, 0.0 }
 0x784   :  { %7271 = vmatprep.mubr.msk.f32.mxu1 %vm752_vm6, %v1645_v31  ;;  %7275 = vmatpush3.msra.mxu0 %v1645_v31 }
 0x785   :  { %7272 = vmatmul.mubr.msk.f32.vlgmr.msra.gmra.mxu1 %vm752_vm6, %v1646_v33  ;;  %7277 = vmatmul.mubr.msk.f32.vlgmr.msra.gmra.mxu0 %vm319_vm2, %v7825_v49  ;;  %v6701_v49 = vld [vmem:[%s8625_s7 + $0x18] sm:$0x3f] }
 0x786   :  { %7280 = vmatpush3.msra.mxu1 %v1646_v33  ;;  %7284 = vmatprep.subr.mxu0 %v6696_v34 }
 0x787   :  { %7285 = vmatpush3.msra.mxu0 %v6696_v34  ;;  %7290 = vmatprep.mubr.msk.f32.mxu0 %vm67_vm0, %v7848_v58  ;;  %v6705_v58 = vld [vmem:[%s8625_s7 + $0x20] sm:$0x3f] }
 0x788   :  { %7286 = vmatprep.subr.mxu0 %v6695_v35  ;;  %7281 = vmatprep.mubr.msk.f32.mxu1 %vm7662_vm1, %v7661_v11 }
 0x789   :  { %7287 = vmatpush3.msra.mxu0 %v6695_v35  ;;  %7282 = vmatmul.mubr.msk.f32.vlgmr.msra.gmra.mxu1 %vm319_vm2, %v7831_v52  ;;  %v6709_v52 = vld [vmem:[%s8625_s7 + $0x28] sm:$0x3f] }
 0x78a   :  { %7288 = vmatprep.subr.mxu0 %v6694_v36  ;;  %7295 = vmatprep.mubr.msk.f32.mxu1 %vm752_vm6, %v7908_v32 }
 0x78b   :  { %7289 = vmatpush3.msra.mxu0 %v6694_v36  ;;  %7293 = vmatprep.subr.msk.mxu1 %vm759_vm5, %v6701_v49 }
 0x78c   :  { %7291 = vmatmul.mubr.msk.f32.vlgmr.msra.gmra.mxu0 %vm67_vm0, %v7853_v61  ;;  %7294 = vmatpush3.msk.msra.mxu1 %vm759_vm5, %v6701_v49 }
 0x78d   :  { %7296 = vmatmul.mubr.msk.f32.vlgmr.msra.gmra.mxu1 %vm752_vm6, %v7912_v37  ;;  %7298 = vmatprep.subr.msk.mxu1 %vm759_vm5, %v6705_v58 }
 0x78e   :  { %7300 = vmatprep.mubr.msk.f32.mxu1 %vm752_vm6, %v1313_v63  ;;  %7299 = vmatpush3.msk.msra.mxu1 %vm759_vm5, %v6705_v58 }
 0x78f   :  { %7303 = vmatprep.subr.msk.mxu0 %vm759_vm5, %v6709_v52  ;;  %7308 = vmatprep.subr.msk.mxu1 %vm759_vm5, %v6713_v43 }
 0x790   :  { %7304 = vmatpush3.msk.msra.mxu0 %vm759_vm5, %v6709_v52 }
 0x791   :  { %7301 = vmatmul.mubr.msk.f32.vlgmr.msra.gmra.mxu1 %vm752_vm6, %v1383_v5  ;;  %7313 = vmatprep.subr.mxu0 %v6719_v45 }
 0x792   :  { %7309 = vmatpush3.msk.msra.mxu1 %vm759_vm5, %v6713_v43 }
 0x793   :  { %7322 = vmatprep.subr.mxu1 %v6726_v44 }
 0x845   :  { %v7273_v61 = vpop.f32.mrf.mxu1  ;;  %v1801_v32 = vpop.f32.mrf.mxu0 }
 0x846   :  { %v8025_v37 = vadd.f32 %v7273_v61, %v7963_v62  ;;  %v1802_v38 = vadd.f32 %v1801_v32, %v1645_v31 }
 0x847   :  { %v1724_v12 = vpop.f32.mrf.mxu1  ;;  %v7278_v13 = vpop.f32.mrf.mxu0 }
 0x848   :  { %v1733_v39 = vadd.f32 %v1724_v12, %v7965_v3  ;;  %7305 = vmatprep.mubr.msk.f32.mxu0 %vm752_vm6, %v1802_v38 }
 0x849   :  { %v1871_v40 = vpop.f32.mrf.mxu1 }
 0x84a   :  { %v1872_v41 = vadd.f32 %v1871_v40, %v1646_v33 }
 0x84b   :  { %v7283_v42 = vpop.f32.mrf.mxu1 }
 0x84c   :  { %7306 = vmatmul.mubr.msk.f32.vlgmr.msra.gmra.mxu0 %vm752_vm6, %v1872_v41  ;;  %v7292_v50 = vpop.f32.mrf.mxu0 }
 0x84d   :  { %7319 = vmatprep.mubr.msk.f32.mxu0 %vm67_vm0, %v7737_v2  ;;  %7314 = vmatpush3.msra.mxu0 %v6719_v45  ;;  %v7297_v48 = vpop.f32.mrf.mxu1  ;;  %v1959_v55 = vadd.f32 %v7292_v50, %v6698_v51 }
 0x84e   :  { %7315 = vmatprep.subr.mxu0 %v6718_v46  ;;  %v1953_v54 = vpop.f32.mrf.mxu0 }
 0x84f   :  { %7316 = vmatpush3.msra.mxu0 %v6718_v46  ;;  %v2033_v53 = vpop.f32.mrf.mxu1  ;;  %v1954_v57 = vadd.f32 %v6698_v51, %v1953_v54  ;;  %v2043_v59 = vadd.f32 %v7297_v48, %v1959_v55 }
 0x850   :  { %7317 = vmatprep.subr.mxu0 %v6717_v47 }
 0x851   :  { %7318 = vmatpush3.msra.mxu0 %v6717_v47  ;;  %v7302_v56 = vpop.f32.mrf.mxu1  ;;  %v2042_v62 = vadd.f32 %v2033_v53, %v1954_v57  ;;  %v6738_v57 = vld [vmem:[%s8622_s6 + $0x68] sm:$0xff] }
 0x852   :  { %7320 = vmatmul.mubr.msk.f32.vlgmr.msra.gmra.mxu0 %vm67_vm0, %v7753_v6  ;;  %7331 = vmatprep.subr.mxu0 %v7661_v11  ;;  %v2125_v63 = vadd.f32 %v7302_v56, %v2043_v59  ;;  %v6739_v56 = vld [vmem:[%s8622_s6 + $0x70] sm:$0xff]  ;;  %v6737_v59 = vld [vmem:[%s8622_s6 + $0x60] sm:$0xff] }
 0x853   :  { %7333 = vmatprep.mubr.msk.f32.mxu0 %vm7662_vm1, %v7661_v11  ;;  %v2115_v60 = vpop.f32.mrf.mxu1 }
 0x854   :  { %v2124_v1 = vadd.f32 %v2115_v60, %v2042_v62 }
 0x90c   :  { %v7307_v0 = vpop.f32.mrf.mxu0 }
 0x90d   :  { %v2213_v3 = vadd.f32 %v7307_v0, %v2125_v63 }
 0x90e   :  { %v2203_v4 = vpop.f32.mrf.mxu0 }
 0x90f   :  { %v2212_v5 = vadd.f32 %v2203_v4, %v2124_v1  ;;  %v2215_v7 = vmul.f32 %v7868_v10, %v2213_v3  ;;  %v6744_v4 = vld [vmem:[%s8623_s10 + $0x20] sm:$0x3f] }
 0x911   :  { %v2214_v8 = vmul.f32 %v7870_v15, %v2212_v5  ;;  %v2217_v14 = vmax.f32 %v2215_v7, 0.0 }
 0x912   :  { %v7321_v21 = vpop.f32.mrf.mxu0 }
 0x913   :  { %v2216_v9 = vmax.f32 %v2214_v8, 0.0  ;;  %v2390_v26 = vadd.f32 %v7321_v21, %v6721_v22  ;;  %v6741_v8 = vld [vmem:[%s8624_s8 + $0x4] ss:$0 sm:$0xff] }
 0x914   :  { %v2384_v30 = vpop.f32.mrf.mxu0 }
 0x915   :  { %7310 = vmatprep.mubr.msk.f32.mxu1 %vm752_vm6, %v2216_v9  ;;  %v2385_v31 = vadd.f32 %v6721_v22, %v2384_v30 }
 0x916   :  { %7311 = vmatmul.mubr.msk.f32.vlgmr.msra.gmra.mxu1 %vm752_vm6, %v2217_v14 }
 0x917   :  { %7323 = vmatpush3.msra.mxu1 %v6726_v44  ;;  %7328 = vmatprep.mubr.msk.f32.mxu1 %vm67_vm0, %v7737_v2 }
 0x918   :  { %7324 = vmatprep.subr.mxu1 %v6725_v16 }
 0x919   :  { %7325 = vmatpush3.msra.mxu1 %v6725_v16 }
 0x91a   :  { %7326 = vmatprep.subr.mxu1 %v6724_v17 }
 0x91b   :  { %7327 = vmatpush3.msra.mxu1 %v6724_v17 }
 0x91c   :  { %7329 = vmatmul.mubr.msk.f32.vlgmr.msra.gmra.mxu1 %vm67_vm0, %v7753_v6  ;;  %7336 = vmatprep.subr.mxu1 %v7661_v11 }
 0x91d   :  { %7338 = vmatprep.mubr.msk.f32.mxu1 %vm7662_vm1, %v7661_v11 }
 0x9d6   :  { %v7312_v10 = vpop.f32.mrf.mxu1 }
 0x9d7   :  { %v8075_v15 = vadd.f32 %v7312_v10, %v8025_v37 }
 0x9d8   :  { %v2295_v18 = vpop.f32.mrf.mxu1 }
 0x9d9   :  { %v8077_v19 = vadd.f32 %v2295_v18, %v1733_v39 }
 0x9dc   :  { %v7330_v23 = vpop.f32.mrf.mxu1 }
 0x9dd   :  { %v2477_v25 = vadd.f32 %v7330_v23, %v6728_v20 }
 0x9de   :  { %v2471_v28 = vpop.f32.mrf.mxu1 }
 0x9df   :  { %v2472_v29 = vadd.f32 %v6728_v20, %v2471_v28  ;;  %7337 = vmatpush3.xpose.msk.msra.mxu1 %vm319_vm2, %v2477_v25  ;;  %v6752_v25 = vld [vmem:[%s8622_s6 + $0x88] sm:$0xff]  ;;  %v6750_v28 = vld [vmem:[%s8622_s6 + $0x78] sm:$0xff] }
 0x9e0   :  { %7346 = vmatprep.subr.mxu1 %v7661_v11 }
 0x9e1   :  { %7332 = vmatpush3.xpose.msk.msra.mxu0 %vm319_vm2, %v2472_v29  ;;  %v6757_v29 = vld [vmem:[%s8625_s7 + $0x30] sm:$0x3f] }
 0x9e2   :  { %7339 = vmatmul.mubr.msk.f32.vlgmr.msra.gmra.mxu1 %vm319_vm2, %v2390_v26  ;;  %7341 = vmatprep.subr.mxu0 %v7661_v11  ;;  %v6751_v26 = vld [vmem:[%s8622_s6 + $0x80] sm:$0xff] }
 0x9e3   :  { %7347 = vmatpush3.msra.mxu1 %v7753_v6  ;;  %7348 = vmatprep.mubr.msk.f32.mxu1 %vm7662_vm1, %v7661_v11 }
 0x9e4   :  { %7334 = vmatmul.mubr.msk.f32.vlgmr.msra.gmra.mxu0 %vm319_vm2, %v2385_v31  ;;  %7360 = vmatprep.subr.msk.mxu1 %vm759_vm5, %v6744_v4 }
 0x9e5   :  { %7342 = vmatpush3.msra.mxu0 %v7737_v2  ;;  %7343 = vmatprep.mubr.msk.f32.mxu0 %vm7662_vm1, %v7661_v11 }
 0x9e6   :  { %7351 = vmatprep.subr.mxu0 %v6739_v56 }
 0xaa2   :  { %v2628_v33 = vpop.f32.mrf.mxu1 }
 0xaa3   :  { %v2633_v34 = vmul.f32 0.35355338, %v2628_v33 }
 0xaa4   :  { %v2552_v35 = vpop.f32.mrf.mxu0  ;;  %v7340_v36 = vpop.f32.mrf.mxu1 }
 0xaa5   :  { %v2632_v49 = vmul.f32 0.35355338, %v2552_v35  ;;  %v2635_v58 = vsel %vm475_vm4, -1e+09, %v2633_v34 }
 0xaa6   :  { %v7335_v52 = vpop.f32.mrf.mxu0  ;;  %v2639_v61 = vsel %vm319_vm2, %v2635_v58, -inf }
 0xaa7   :  { %2640 = vmax.xlane.f32.xlu1 %v2639_v61  ;;  %v2634_v32 = vsel %vm474_vm3, -1e+09, %v2632_v49 }
 0xaa8   :  { %v2636_v37 = vsel %vm319_vm2, %v2634_v32, -inf }
 0xaa9   :  { %2637 = vmax.xlane.f32.xlu0 %v2636_v37 }
 0xb30   :  { %v2641_v38 = vpop.xlane.xlu1 %2640 }
 0xb31   :  { %v2643_v12 = vsub.f32 %v2635_v58, %v2641_v38 }
 0xb32   :  { %v2638_v13 = vpop.xlane.xlu0 %2637 }
 0xb33   :  { %v2646_v39 = vmul.f32 1.442695, %v2643_v12  ;;  %v2642_v40 = vsub.f32 %v2634_v32, %v2638_v13  ;;  %v6754_v32 = vld [vmem:[%s8624_s8 + $0x5] ss:$0 sm:$0xff] }
 0xb35   :  { %7635 = vpow2.f32 %v2646_v39  ;;  %v2644_v41 = vmul.f32 1.442695, %v2642_v40 }
 0xb37   :  { %7637 = vpow2.f32 %v2644_v41 }
 0xb42   :  { %v7636_v42 = vpop.eup %7635 }
 0xb43   :  { %v2651_v43 = vsel %vm319_vm2, %v7636_v42, 0.0 }
 0xb44   :  { %v7638_v44 = vpop.eup %7637  ;;  %2652 = vadd.xlane.f32.xlu1 %v2651_v43 }
 0xb45   :  { %v2648_v45 = vsel %vm319_vm2, %v7638_v44, 0.0 }
 0xb46   :  { %2649 = vadd.xlane.f32.xlu0 %v2648_v45 }
 0xbcd   :  { %v2653_v46 = vpop.xlane.xlu1 %2652 }
 0xbce   :  { %7639 = vrcp.f32 %v2653_v46  ;;  %v6769_v46 = vld [vmem:[%s8622_s6 + $0xa0] sm:$0xff] }
 0xbcf   :  { %v2650_v47 = vpop.xlane.xlu0 %2649 }
 0xbd0   :  { %7641 = vrcp.f32 %v2650_v47  ;;  %v6768_v47 = vld [vmem:[%s8622_s6 + $0x98] sm:$0xff] }
 0xbdb   :  { %v7640_v48 = vpop.eup %7639 }
 0xbdc   :  { %v8105_v50 = vmul.f32 %v7640_v48, %v7636_v42  ;;  %v6767_v48 = vld [vmem:[%s8622_s6 + $0x90] sm:$0xff] }
 0xbdd   :  { %v7642_v51 = vpop.eup %7641 }
 0xbde   :  { %7349 = vmatmul.mubr.msk.f32.vlgmr.msra.gmra.mxu1 %vm319_vm2, %v8105_v50  ;;  %v2661_v53 = vsel %vm319_vm2, %v8105_v50, 0.0  ;;  %v8111_v54 = vmul.f32 %v7642_v51, %v7638_v44  ;;  %v6774_v51 = vld [vmem:[%s8625_s7 + $0x38] sm:$0x3f] }
 0xbdf   :  { %2662 = vadd.xlane.f32.xlu1 %v2661_v53  ;;  %7361 = vmatpush3.msk.msra.mxu1 %vm759_vm5, %v6744_v4  ;;  %v6778_v53 = vld [vmem:[%s8625_s7 + $0x40] sm:$0x3f] }
 0xbe0   :  { %7344 = vmatmul.mubr.msk.f32.vlgmr.msra.gmra.mxu0 %vm319_vm2, %v8111_v54  ;;  %v2658_v55 = vsel %vm319_vm2, %v8111_v54, 0.0  ;;  %7370 = vmatprep.subr.mxu1 %v7661_v11 }
 0xbe1   :  { %2659 = vadd.xlane.f32.xlu0 %v2658_v55  ;;  %7352 = vmatpush3.msra.mxu0 %v6739_v56 }
 0xbe2   :  { %7353 = vmatprep.subr.mxu0 %v6738_v57 }
 0xbe3   :  { %7354 = vmatpush3.msra.mxu0 %v6738_v57 }
 0xbe4   :  { %7355 = vmatprep.subr.mxu0 %v6737_v59 }
 0xbe5   :  { %7356 = vmatpush3.msra.mxu0 %v6737_v59 }
 0xbe6   :  { %7365 = vmatprep.subr.mxu0 %v7661_v11 }
 0xc9e   :  { %v2810_v60 = vpop.f32.mrf.mxu1 }
 0xc9f   :  { %v8131_v1 = vadd.f32 %v2810_v60, %v7753_v6  ;;  %v2660_v6 = vpop.xlane.xlu0 %2659 }
 0xca0   :  { %v2737_v62 = vpop.f32.mrf.mxu0  ;;  %v7350_v63 = vpop.f32.mrf.mxu1  ;;  %v2664_v7 = vadd.f32 1.0, %v2660_v6  ;;  %v6782_v6 = vld [vmem:[%s8623_s10 + $0x30] sm:$0x3f] }
 0xca1   :  { %v8128_v0 = vadd.f32 %v2737_v62, %v7737_v2  ;;  %v2663_v2 = vpop.xlane.xlu1 %2662 }
 0xca2   :  { %v7345_v3 = vpop.f32.mrf.mxu0  ;;  %v2665_v5 = vadd.f32 1.0, %v2663_v2 }
 0xca3   :  { %7357 = vmatprep.mubr.msk.f32.mxu0 %vm67_vm0, %v8128_v0 }
 0xca4   :  { %7358 = vmatmul.mubr.msk.f32.vlgmr.msra.gmra.mxu0 %vm67_vm0, %v8131_v1  ;;  %7643 = vrcp.f32 %v2665_v5 }
 0xca5   :  { %7367 = vmatprep.mubr.msk.f32.mxu0 %vm7662_vm1, %v7661_v11  ;;  %7645 = vrcp.f32 %v2664_v7  ;;  %v6771_v7 = vld [vmem:[%s8624_s8 + $0x6] ss:$0 sm:$0xff] }
 0xcb1   :  { %v8148_v17 = vpop.eup %7643 }
 0xcb2   :  { %v8150_v18 = vpop.eup %7645 }
 0xd64   :  { %v7359_v9 = vpop.f32.mrf.mxu0 }
 0xd65   :  { %v2904_v14 = vadd.f32 %v7359_v9, %v6741_v8 }
 0xd66   :  { %v2898_v16 = vpop.f32.mrf.mxu0 }
 0xd67   :  { %v2899_v10 = vadd.f32 %v6741_v8, %v2898_v16  ;;  %v2908_v20 = vmul.f32 %v8148_v17, %v2904_v14 }
 0xd69   :  { %v2907_v21 = vmul.f32 %v8150_v18, %v2899_v10  ;;  %v2910_v23 = vmax.f32 %v2908_v20, 0.0 }
 0xd6b   :  { %v2909_v22 = vmax.f32 %v2907_v21, 0.0 }
 0xd6d   :  { %7362 = vmatprep.mubr.msk.f32.mxu1 %vm752_vm6, %v2909_v22  ;;  %7366 = vmatpush3.msra.mxu0 %v2909_v22 }
 0xd6e   :  { %7363 = vmatmul.mubr.msk.f32.vlgmr.msra.gmra.mxu1 %vm752_vm6, %v2910_v23  ;;  %7368 = vmatmul.mubr.msk.f32.vlgmr.msra.gmra.mxu0 %vm319_vm2, %v8111_v54 }
 0xd6f   :  { %7371 = vmatpush3.msra.mxu1 %v2910_v23  ;;  %7375 = vmatprep.subr.mxu0 %v6752_v25 }
 0xd70   :  { %7376 = vmatpush3.msra.mxu0 %v6752_v25  ;;  %7381 = vmatprep.mubr.msk.f32.mxu0 %vm67_vm0, %v8128_v0 }
 0xd71   :  { %7377 = vmatprep.subr.mxu0 %v6751_v26  ;;  %7372 = vmatprep.mubr.msk.f32.mxu1 %vm7662_vm1, %v7661_v11 }
 0xd72   :  { %7378 = vmatpush3.msra.mxu0 %v6751_v26  ;;  %7373 = vmatmul.mubr.msk.f32.vlgmr.msra.gmra.mxu1 %vm319_vm2, %v8105_v50 }
 0xd73   :  { %7379 = vmatprep.subr.mxu0 %v6750_v28  ;;  %7384 = vmatprep.subr.msk.mxu1 %vm759_vm5, %v6757_v29 }
 0xd74   :  { %7380 = vmatpush3.msra.mxu0 %v6750_v28  ;;  %7385 = vmatpush3.msk.msra.mxu1 %vm759_vm5, %v6757_v29 }
 0xd75   :  { %7382 = vmatmul.mubr.msk.f32.vlgmr.msra.gmra.mxu0 %vm67_vm0, %v8131_v1  ;;  %7394 = vmatprep.subr.mxu0 %v7661_v11 }
 0xd76   :  { %7396 = vmatprep.mubr.msk.f32.mxu0 %vm7662_vm1, %v7661_v11 }
 0xe2e   :  { %v7364_v30 = vpop.f32.mrf.mxu1  ;;  %v3065_v31 = vpop.f32.mrf.mxu0 }
 0xe2f   :  { %v2998_v33 = vadd.f32 %v7364_v30, %v8075_v15  ;;  %v8184_v34 = vadd.f32 %v3065_v31, %v2909_v22  ;;  %v6761_v15 = vld [vmem:[%s8623_s10 + $0x28] sm:$0x3f] }
 0xe30   :  { %v2988_v35 = vpop.f32.mrf.mxu1  ;;  %v7369_v36 = vpop.f32.mrf.mxu0  ;;  %7389 = vmatprep.subr.msk.mxu1 %vm759_vm5, %v6761_v15 }
 0xe31   :  { %v2997_v49 = vadd.f32 %v2988_v35, %v8077_v19  ;;  %7386 = vmatprep.mubr.msk.f32.mxu1 %vm752_vm6, %v8184_v34  ;;  %v6789_v35 = vld [vmem:[%s8622_s6 + $0xb0] sm:$0xff]  ;;  %v6788_v36 = vld [vmem:[%s8622_s6 + $0xa8] sm:$0xff] }
 0xe32   :  { %v3135_v58 = vpop.f32.mrf.mxu1 }
 0xe33   :  { %v8189_v52 = vadd.f32 %v3135_v58, %v2910_v23 }
 0xe34   :  { %v7374_v61 = vpop.f32.mrf.mxu1 }
 0xe35   :  { %7387 = vmatmul.mubr.msk.f32.vlgmr.msra.gmra.mxu1 %vm752_vm6, %v8189_v52  ;;  %v7383_v19 = vpop.f32.mrf.mxu0 }
 0xe36   :  { %7390 = vmatpush3.msk.msra.mxu1 %vm759_vm5, %v6761_v15  ;;  %v3223_v38 = vadd.f32 %v7383_v19, %v6754_v32 }
 0xe37   :  { %7399 = vmatprep.subr.mxu1 %v7661_v11  ;;  %v3217_v37 = vpop.f32.mrf.mxu0 }
 0xe38   :  { %v3218_v13 = vadd.f32 %v6754_v32, %v3217_v37 }
 0xef5   :  { %v7388_v12 = vpop.f32.mrf.mxu1 }
 0xef6   :  { %v3313_v39 = vadd.f32 %v7388_v12, %v3223_v38  ;;  %v8312_v38 = vld [vmem:[%s8616_s0] sm:$0xff]  ;;  %v6807_v12 = vld [vmem:[%s8623_s10 + $0x38] sm:$0x3f] }
 0xef7   :  { %v3303_v40 = vpop.f32.mrf.mxu1 }
 0xef8   :  { %v3312_v41 = vadd.f32 %v3303_v40, %v3218_v13  ;;  %v3315_v42 = vmul.f32 %v8148_v17, %v3313_v39  ;;  %v6820_v13 = vld [vmem:[%s8618_s4 + $0x40] sm:$0xff]  ;;  %v6812_v40 = vld [vmem:[%s8617_s2 + $0x38] sm:$0xff] }
 0xef9   :  { %v6813_v39 = vld [vmem:[%s8617_s2 + $0x40] sm:$0xff] }
 0xefa   :  { %v3314_v43 = vmul.f32 %v8150_v18, %v3312_v41  ;;  %v3317_v45 = vmax.f32 %v3315_v42, 0.0  ;;  %v6811_v41 = vld [vmem:[%s8617_s2 + $0x30] sm:$0xff]  ;;  %v8336_v42 = vld [vmem:[%s8616_s0 + $0x8] sm:$0xff] }
 0xefc   :  { %v3316_v44 = vmax.f32 %v3314_v43, 0.0 }
 0xefe   :  { %7391 = vmatprep.mubr.msk.f32.mxu1 %vm752_vm6, %v3316_v44  ;;  %7395 = vmatpush3.msra.mxu0 %v3316_v44 }
 0xeff   :  { %7392 = vmatmul.mubr.msk.f32.vlgmr.msra.gmra.mxu1 %vm752_vm6, %v3317_v45  ;;  %7397 = vmatmul.mubr.msk.f32.vlgmr.msra.gmra.mxu0 %vm319_vm2, %v8111_v54 }
 0xf00   :  { %7400 = vmatpush3.msra.mxu1 %v3317_v45  ;;  %7404 = vmatprep.subr.mxu0 %v6769_v46 }
 0xf01   :  { %7405 = vmatpush3.msra.mxu0 %v6769_v46  ;;  %7410 = vmatprep.mubr.msk.f32.mxu0 %vm67_vm0, %v8128_v0 }
 0xf02   :  { %7406 = vmatprep.subr.mxu0 %v6768_v47  ;;  %7401 = vmatprep.mubr.msk.f32.mxu1 %vm7662_vm1, %v7661_v11 }
 0xf03   :  { %7407 = vmatpush3.msra.mxu0 %v6768_v47  ;;  %7402 = vmatmul.mubr.msk.f32.vlgmr.msra.gmra.mxu1 %vm319_vm2, %v8105_v50 }
 0xf04   :  { %7408 = vmatprep.subr.mxu0 %v6767_v48  ;;  %7415 = vmatprep.mubr.msk.f32.mxu1 %vm752_vm6, %v8184_v34 }
 0xf05   :  { %7409 = vmatpush3.msra.mxu0 %v6767_v48  ;;  %7413 = vmatprep.subr.msk.mxu1 %vm759_vm5, %v6774_v51 }
 0xf06   :  { %7411 = vmatmul.mubr.msk.f32.vlgmr.msra.gmra.mxu0 %vm67_vm0, %v8131_v1  ;;  %7414 = vmatpush3.msk.msra.mxu1 %vm759_vm5, %v6774_v51 }
 0xf07   :  { %7416 = vmatmul.mubr.msk.f32.vlgmr.msra.gmra.mxu1 %vm752_vm6, %v8189_v52  ;;  %7418 = vmatprep.subr.msk.mxu0 %vm759_vm5, %v6778_v53 }
 0xf08   :  { %7419 = vmatpush3.msk.msra.mxu0 %vm759_vm5, %v6778_v53  ;;  %7423 = vmatprep.subr.msk.mxu1 %vm759_vm5, %v6782_v6 }
 0xf09   :  { %7428 = vmatprep.subr.mxu0 %v7661_v11  ;;  %7424 = vmatpush3.msk.msra.mxu1 %vm759_vm5, %v6782_v6 }
 0xf0a   :  { %7433 = vmatprep.subr.mxu1 %v7661_v11 }
 0xfbf   :  { %v7393_v55 = vpop.f32.mrf.mxu1  ;;  %v3472_v56 = vpop.f32.mrf.mxu0 }
 0xfc0   :  { %v8240_v57 = vadd.f32 %v7393_v55, %v2998_v33  ;;  %v3473_v59 = vadd.f32 %v3472_v56, %v3316_v44  ;;  %v6790_v33 = vld [vmem:[%s8622_s6 + $0xb8] sm:$0xff] }
 0xfc1   :  { %v3395_v60 = vpop.f32.mrf.mxu1  ;;  %v7398_v62 = vpop.f32.mrf.mxu0 }
 0xfc2   :  { %v8242_v63 = vadd.f32 %v3395_v60, %v2997_v49  ;;  %7420 = vmatprep.mubr.msk.f32.mxu0 %vm752_vm6, %v3473_v59 }
 0xfc3   :  { %v3542_v3 = vpop.f32.mrf.mxu1 }
 0xfc4   :  { %v3543_v4 = vadd.f32 %v3542_v3, %v3317_v45  ;;  %v6792_v45 = vld [vmem:[%s8624_s8 + $0x7] ss:$0 sm:$0xff] }
 0xfc5   :  { %v7403_v2 = vpop.f32.mrf.mxu1 }
 0xfc6   :  { %7421 = vmatmul.mubr.msk.f32.vlgmr.msra.gmra.mxu0 %vm752_vm6, %v3543_v4  ;;  %v7412_v5 = vpop.f32.mrf.mxu0 }
 0xfc7   :  { %7430 = vmatprep.mubr.msk.f32.mxu0 %vm7662_vm1, %v7661_v11  ;;  %v7417_v9 = vpop.f32.mrf.mxu1  ;;  %v3630_v14 = vadd.f32 %v7412_v5, %v6771_v7 }
 0xfc8   :  { %v3624_v8 = vpop.f32.mrf.mxu0 }
 0xfc9   :  { %v3625_v16 = vadd.f32 %v6771_v7, %v3624_v8  ;;  %v3704_v10 = vpop.f32.mrf.mxu1  ;;  %v3714_v20 = vadd.f32 %v7417_v9, %v3630_v14  ;;  %v6819_v8 = vld [vmem:[%s8618_s4 + $0x38] sm:$0xff]  ;;  %v6818_v9 = vld [vmem:[%s8618_s4 + $0x30] sm:$0xff] }
 0xfcb   :  { %v3713_v22 = vadd.f32 %v3704_v10, %v3625_v16  ;;  %v6822_v10 = vld [vmem:[%s8619_s5 + $0x2] ss:$0 sm:$0xff] }
0x1086   :  { %v7422_v21 = vpop.f32.mrf.mxu0 }
0x1087   :  { %v3802_v23 = vadd.f32 %v7422_v21, %v3714_v20  ;;  %v6815_v21 = vld [vmem:[%s8620_s3 + $0x2] ss:$0 sm:$0xff] }
0x1088   :  { %v3792_v25 = vpop.f32.mrf.mxu0 }
0x1089   :  { %v3801_v26 = vadd.f32 %v3792_v25, %v3713_v22  ;;  %v3804_v28 = vmul.f32 %v8148_v17, %v3802_v23 }
0x108b   :  { %v3803_v29 = vmul.f32 %v8150_v18, %v3801_v26  ;;  %v3806_v31 = vmax.f32 %v3804_v28, 0.0 }
0x108d   :  { %v3805_v30 = vmax.f32 %v3803_v29, 0.0 }
0x108f   :  { %7425 = vmatprep.mubr.msk.f32.mxu1 %vm752_vm6, %v3805_v30  ;;  %7429 = vmatpush3.msra.mxu0 %v3805_v30 }
0x1090   :  { %7426 = vmatmul.mubr.msk.f32.vlgmr.msra.gmra.mxu1 %vm752_vm6, %v3806_v31  ;;  %7431 = vmatmul.mubr.msk.f32.vlgmr.msra.gmra.mxu0 %vm319_vm2, %v8111_v54  ;;  %v6795_v54 = vld [vmem:[%s8625_s7 + $0x48] sm:$0x3f] }
0x1091   :  { %7434 = vmatpush3.msra.mxu1 %v3806_v31  ;;  %7438 = vmatprep.subr.mxu0 %v6790_v33 }
0x1092   :  { %7439 = vmatpush3.msra.mxu0 %v6790_v33  ;;  %7444 = vmatprep.mubr.msk.f32.mxu0 %vm67_vm0, %v8128_v0  ;;  %v6799_v0 = vld [vmem:[%s8625_s7 + $0x50] sm:$0x3f] }
0x1093   :  { %7440 = vmatprep.subr.mxu0 %v6789_v35  ;;  %7435 = vmatprep.mubr.msk.f32.mxu1 %vm7662_vm1, %v7661_v11 }
0x1094   :  { %7441 = vmatpush3.msra.mxu0 %v6789_v35  ;;  %7436 = vmatmul.mubr.msk.f32.vlgmr.msra.gmra.mxu1 %vm319_vm2, %v8105_v50  ;;  %v6803_v50 = vld [vmem:[%s8625_s7 + $0x58] sm:$0x3f] }
0x1095   :  { %7442 = vmatprep.subr.mxu0 %v6788_v36  ;;  %7449 = vmatprep.mubr.msk.f32.mxu1 %vm752_vm6, %v8184_v34 }
0x1096   :  { %7443 = vmatpush3.msra.mxu0 %v6788_v36  ;;  %7447 = vmatprep.subr.msk.mxu1 %vm759_vm5, %v6795_v54 }
0x1097   :  { %7445 = vmatmul.mubr.msk.f32.vlgmr.msra.gmra.mxu0 %vm67_vm0, %v8131_v1  ;;  %7448 = vmatpush3.msk.msra.mxu1 %vm759_vm5, %v6795_v54 }
0x1098   :  { %7450 = vmatmul.mubr.msk.f32.vlgmr.msra.gmra.mxu1 %vm752_vm6, %v8189_v52  ;;  %7452 = vmatprep.subr.msk.mxu1 %vm759_vm5, %v6799_v0 }
0x1099   :  { %7454 = vmatprep.mubr.msk.f32.mxu1 %vm752_vm6, %v3473_v59  ;;  %7453 = vmatpush3.msk.msra.mxu1 %vm759_vm5, %v6799_v0 }
0x109a   :  { %7457 = vmatprep.subr.msk.mxu0 %vm759_vm5, %v6803_v50  ;;  %7462 = vmatprep.subr.msk.mxu1 %vm759_vm5, %v6807_v12 }
0x109b   :  { %7458 = vmatpush3.msk.msra.mxu0 %vm759_vm5, %v6803_v50 }
0x109c   :  { %7455 = vmatmul.mubr.msk.f32.vlgmr.msra.gmra.mxu1 %vm752_vm6, %v3543_v4  ;;  %7467 = vmatprep.subr.mxu0 %v6813_v39 }
0x109d   :  { %7463 = vmatpush3.msk.msra.mxu1 %vm759_vm5, %v6807_v12 }
0x109e   :  { %7476 = vmatprep.subr.mxu1 %v6820_v13 }
0x1150   :  { %v7427_v1 = vpop.f32.mrf.mxu1  ;;  %v3961_v34 = vpop.f32.mrf.mxu0 }
0x1151   :  { %v8302_v49 = vadd.f32 %v7427_v1, %v8240_v57  ;;  %v3962_v58 = vadd.f32 %v3961_v34, %v3805_v30 }
0x1152   :  { %v3884_v52 = vpop.f32.mrf.mxu1  ;;  %v7432_v61 = vpop.f32.mrf.mxu0 }
0x1153   :  { %v8305_v15 = vadd.f32 %v3884_v52, %v8242_v63  ;;  %7459 = vmatprep.mubr.msk.f32.mxu0 %vm752_vm6, %v3962_v58 }
0x1154   :  { %v4031_v19 = vpop.f32.mrf.mxu1 }
0x1155   :  { %v4032_v32 = vadd.f32 %v4031_v19, %v3806_v31 }
0x1156   :  { %v7437_v37 = vpop.f32.mrf.mxu1 }
0x1157   :  { %7460 = vmatmul.mubr.msk.f32.vlgmr.msra.gmra.mxu0 %vm752_vm6, %v4032_v32  ;;  %v7446_v44 = vpop.f32.mrf.mxu0 }
0x1158   :  { %7473 = vmatprep.mubr.msk.f32.mxu0 %vm67_vm0, %v8312_v38  ;;  %7468 = vmatpush3.msra.mxu0 %v6813_v39  ;;  %v7451_v43 = vpop.f32.mrf.mxu1  ;;  %v4119_v48 = vadd.f32 %v7446_v44, %v6792_v45 }
0x1159   :  { %7469 = vmatprep.subr.mxu0 %v6812_v40  ;;  %v4113_v47 = vpop.f32.mrf.mxu0 }
0x115a   :  { %7470 = vmatpush3.msra.mxu0 %v6812_v40  ;;  %v4193_v46 = vpop.f32.mrf.mxu1  ;;  %v4114_v53 = vadd.f32 %v6792_v45, %v4113_v47  ;;  %v4203_v55 = vadd.f32 %v7451_v43, %v4119_v48  ;;  %v6833_v47 = vld [vmem:[%s8622_s6 + $0xd0] sm:$0xff]  ;;  %v6832_v48 = vld [vmem:[%s8622_s6 + $0xc8] sm:$0xff] }
0x115b   :  { %7471 = vmatprep.subr.mxu0 %v6811_v41 }
0x115c   :  { %7472 = vmatpush3.msra.mxu0 %v6811_v41  ;;  %v7456_v51 = vpop.f32.mrf.mxu1  ;;  %v4202_v57 = vadd.f32 %v4193_v46, %v4114_v53 }
0x115d   :  { %7474 = vmatmul.mubr.msk.f32.vlgmr.msra.gmra.mxu0 %vm67_vm0, %v8336_v42  ;;  %7485 = vmatprep.subr.mxu0 %v7661_v11  ;;  %v4285_v59 = vadd.f32 %v7456_v51, %v4203_v55  ;;  %v6831_v51 = vld [vmem:[%s8622_s6 + $0xc0] sm:$0xff] }
0x115e   :  { %7487 = vmatprep.mubr.msk.f32.mxu0 %vm7662_vm1, %v7661_v11  ;;  %v4275_v56 = vpop.f32.mrf.mxu1 }
0x115f   :  { %v4284_v62 = vadd.f32 %v4275_v56, %v4202_v57 }
0x1217   :  { %v7461_v60 = vpop.f32.mrf.mxu0 }
0x1218   :  { %v4373_v63 = vadd.f32 %v7461_v60, %v4285_v59 }
0x1219   :  { %v4363_v3 = vpop.f32.mrf.mxu0 }
0x121a   :  { %v4372_v4 = vadd.f32 %v4363_v3, %v4284_v62  ;;  %v4375_v2 = vmul.f32 %v8148_v17, %v4373_v63  ;;  %v6838_v62 = vld [vmem:[%s8623_s10 + $0x40] sm:$0x3f] }
0x121c   :  { %v4374_v6 = vmul.f32 %v8150_v18, %v4372_v4  ;;  %v4377_v7 = vmax.f32 %v4375_v2, 0.0  ;;  %v6835_v4 = vld [vmem:[%s8624_s8 + $0x8] ss:$0 sm:$0xff] }
0x121d   :  { %v7475_v20 = vpop.f32.mrf.mxu0 }
0x121e   :  { %v4376_v5 = vmax.f32 %v4374_v6, 0.0  ;;  %v4550_v25 = vadd.f32 %v7475_v20, %v6815_v21 }
0x121f   :  { %v4544_v29 = vpop.f32.mrf.mxu0 }
0x1220   :  { %7464 = vmatprep.mubr.msk.f32.mxu1 %vm752_vm6, %v4376_v5  ;;  %v4545_v30 = vadd.f32 %v6815_v21, %v4544_v29  ;;  %v6846_v21 = vld [vmem:[%s8622_s6 + $0xe8] sm:$0xff] }
0x1221   :  { %7465 = vmatmul.mubr.msk.f32.vlgmr.msra.gmra.mxu1 %vm752_vm6, %v4377_v7 }
0x1222   :  { %7477 = vmatpush3.msra.mxu1 %v6820_v13  ;;  %7482 = vmatprep.mubr.msk.f32.mxu1 %vm67_vm0, %v8312_v38 }
0x1223   :  { %7478 = vmatprep.subr.mxu1 %v6819_v8 }
0x1224   :  { %7479 = vmatpush3.msra.mxu1 %v6819_v8 }
0x1225   :  { %7480 = vmatprep.subr.mxu1 %v6818_v9 }
0x1226   :  { %7481 = vmatpush3.msra.mxu1 %v6818_v9 }
0x1227   :  { %7483 = vmatmul.mubr.msk.f32.vlgmr.msra.gmra.mxu1 %vm67_vm0, %v8336_v42  ;;  %7490 = vmatprep.subr.mxu1 %v7661_v11 }
0x1228   :  { %7492 = vmatprep.mubr.msk.f32.mxu1 %vm7662_vm1, %v7661_v11 }
0x12e1   :  { %v7466_v17 = vpop.f32.mrf.mxu1 }
0x12e2   :  { %v8364_v18 = vadd.f32 %v7466_v17, %v8302_v49 }
0x12e3   :  { %v4455_v14 = vpop.f32.mrf.mxu1 }
0x12e4   :  { %v8367_v16 = vadd.f32 %v4455_v14, %v8305_v15 }
0x12e7   :  { %v7484_v22 = vpop.f32.mrf.mxu1 }
0x12e8   :  { %v4637_v23 = vadd.f32 %v7484_v22, %v6822_v10  ;;  %v6845_v22 = vld [vmem:[%s8622_s6 + $0xe0] sm:$0xff] }
0x12e9   :  { %v4631_v26 = vpop.f32.mrf.mxu1 }
0x12ea   :  { %v4632_v28 = vadd.f32 %v6822_v10, %v4631_v26  ;;  %7491 = vmatpush3.xpose.msk.msra.mxu1 %vm319_vm2, %v4637_v23  ;;  %v6844_v23 = vld [vmem:[%s8622_s6 + $0xd8] sm:$0xff] }
0x12eb   :  { %7500 = vmatprep.subr.mxu1 %v7661_v11 }
0x12ec   :  { %7486 = vmatpush3.xpose.msk.msra.mxu0 %vm319_vm2, %v4632_v28 }
0x12ed   :  { %7493 = vmatmul.mubr.msk.f32.vlgmr.msra.gmra.mxu1 %vm319_vm2, %v4550_v25  ;;  %7495 = vmatprep.subr.mxu0 %v7661_v11  ;;  %v6851_v25 = vld [vmem:[%s8625_s7 + $0x60] sm:$0x3f] }
0x12ee   :  { %7501 = vmatpush3.msra.mxu1 %v8336_v42  ;;  %7502 = vmatprep.mubr.msk.f32.mxu1 %vm7662_vm1, %v7661_v11 }
0x12ef   :  { %7488 = vmatmul.mubr.msk.f32.vlgmr.msra.gmra.mxu0 %vm319_vm2, %v4545_v30  ;;  %7514 = vmatprep.subr.msk.mxu1 %vm759_vm5, %v6838_v62 }
0x12f0   :  { %7496 = vmatpush3.msra.mxu0 %v8312_v38  ;;  %7497 = vmatprep.mubr.msk.f32.mxu0 %vm7662_vm1, %v7661_v11 }
0x12f1   :  { %7505 = vmatprep.subr.mxu0 %v6833_v47 }
0x13ad   :  { %v4788_v31 = vpop.f32.mrf.mxu1 }
0x13ae   :  { %v4793_v33 = vmul.f32 0.35355338, %v4788_v31 }
0x13af   :  { %v4712_v35 = vpop.f32.mrf.mxu0  ;;  %v7494_v36 = vpop.f32.mrf.mxu1 }
0x13b0   :  { %v4792_v54 = vmul.f32 0.35355338, %v4712_v35  ;;  %v4795_v0 = vsel %vm475_vm4, -1e+09, %v4793_v33 }
0x13b1   :  { %v7489_v50 = vpop.f32.mrf.mxu0  ;;  %v4799_v1 = vsel %vm319_vm2, %v4795_v0, -inf }
0x13b2   :  { %4800 = vmax.xlane.f32.xlu1 %v4799_v1  ;;  %v4794_v34 = vsel %vm474_vm3, -1e+09, %v4792_v54  ;;  %v6848_v50 = vld [vmem:[%s8624_s8 + $0x9] ss:$0 sm:$0xff] }
0x13b3   :  { %v4796_v49 = vsel %vm319_vm2, %v4794_v34, -inf }
0x13b4   :  { %4797 = vmax.xlane.f32.xlu0 %v4796_v49 }
0x143b   :  { %v4801_v58 = vpop.xlane.xlu1 %4800 }
0x143c   :  { %v4803_v52 = vsub.f32 %v4795_v0, %v4801_v58 }
0x143d   :  { %v4798_v61 = vpop.xlane.xlu0 %4797 }
0x143e   :  { %v4806_v15 = vmul.f32 1.442695, %v4803_v52  ;;  %v4802_v19 = vsub.f32 %v4794_v34, %v4798_v61 }
0x1440   :  { %7647 = vpow2.f32 %v4806_v15  ;;  %v4804_v32 = vmul.f32 1.442695, %v4802_v19 }
0x1442   :  { %7649 = vpow2.f32 %v4804_v32 }
0x144d   :  { %v7648_v27 = vpop.eup %7647 }
0x144e   :  { %v4811_v37 = vsel %vm319_vm2, %v7648_v27, 0.0 }
0x144f   :  { %v7650_v12 = vpop.eup %7649  ;;  %4812 = vadd.xlane.f32.xlu1 %v4811_v37 }
0x1450   :  { %v4808_v13 = vsel %vm319_vm2, %v7650_v12, 0.0 }
0x1451   :  { %4809 = vadd.xlane.f32.xlu0 %v4808_v13  ;;  %v6862_v13 = vld [vmem:[%s8622_s6 + $0xf8] sm:$0xff] }
0x14d8   :  { %v4813_v24 = vpop.xlane.xlu1 %4812 }
0x14d9   :  { %7651 = vrcp.f32 %v4813_v24  ;;  %v6861_v24 = vld [vmem:[%s8622_s6 + $0xf0] sm:$0xff] }
0x14da   :  { %v4810_v39 = vpop.xlane.xlu0 %4809 }
0x14db   :  { %7653 = vrcp.f32 %v4810_v39  ;;  %v6868_v39 = vld [vmem:[%s8625_s7 + $0x68] sm:$0x3f] }
0x14e6   :  { %v7652_v40 = vpop.eup %7651 }
0x14e7   :  { %v8395_v41 = vmul.f32 %v7652_v40, %v7648_v27  ;;  %v6872_v40 = vld [vmem:[%s8625_s7 + $0x70] sm:$0x3f] }
0x14e8   :  { %v7654_v43 = vpop.eup %7653 }
0x14e9   :  { %7503 = vmatmul.mubr.msk.f32.vlgmr.msra.gmra.mxu1 %vm319_vm2, %v8395_v41  ;;  %v4821_v44 = vsel %vm319_vm2, %v8395_v41, 0.0  ;;  %v8401_v45 = vmul.f32 %v7654_v43, %v7650_v12  ;;  %v6863_v12 = vld [vmem:[%s8622_s6 + $0x100] sm:$0xff] }
0x14ea   :  { %4822 = vadd.xlane.f32.xlu1 %v4821_v44  ;;  %7515 = vmatpush3.msk.msra.mxu1 %vm759_vm5, %v6838_v62  ;;  %v6876_v62 = vld [vmem:[%s8623_s10 + $0x50] sm:$0x3f] }
0x14eb   :  { %7498 = vmatmul.mubr.msk.f32.vlgmr.msra.gmra.mxu0 %vm319_vm2, %v8401_v45  ;;  %v4818_v46 = vsel %vm319_vm2, %v8401_v45, 0.0  ;;  %7524 = vmatprep.subr.mxu1 %v7661_v11 }
0x14ec   :  { %4819 = vadd.xlane.f32.xlu0 %v4818_v46  ;;  %7506 = vmatpush3.msra.mxu0 %v6833_v47 }
0x14ed   :  { %7507 = vmatprep.subr.mxu0 %v6832_v48 }
0x14ee   :  { %7508 = vmatpush3.msra.mxu0 %v6832_v48 }
0x14ef   :  { %7509 = vmatprep.subr.mxu0 %v6831_v51 }
0x14f0   :  { %7510 = vmatpush3.msra.mxu0 %v6831_v51 }
0x14f1   :  { %7519 = vmatprep.subr.mxu0 %v7661_v11 }
0x15a9   :  { %v4970_v53 = vpop.f32.mrf.mxu1 }
0x15aa   :  { %v8421_v59 = vadd.f32 %v8336_v42, %v4970_v53  ;;  %v4820_v42 = vpop.xlane.xlu0 %4819 }
0x15ab   :  { %v4897_v55 = vpop.f32.mrf.mxu0  ;;  %v7504_v56 = vpop.f32.mrf.mxu1  ;;  %v4824_v3 = vadd.f32 1.0, %v4820_v42  ;;  %v6865_v42 = vld [vmem:[%s8624_s8 + $0xa] ss:$0 sm:$0xff] }
0x15ac   :  { %v8418_v57 = vadd.f32 %v8312_v38, %v4897_v55  ;;  %v4823_v38 = vpop.xlane.xlu1 %4822 }
0x15ad   :  { %v7499_v60 = vpop.f32.mrf.mxu0  ;;  %v4825_v63 = vadd.f32 1.0, %v4823_v38 }
0x15ae   :  { %7511 = vmatprep.mubr.msk.f32.mxu0 %vm67_vm0, %v8418_v57 }
0x15af   :  { %7512 = vmatmul.mubr.msk.f32.vlgmr.msra.gmra.mxu0 %vm67_vm0, %v8421_v59  ;;  %7655 = vrcp.f32 %v4825_v63 }
0x15b0   :  { %7521 = vmatprep.mubr.msk.f32.mxu0 %vm7662_vm1, %v7661_v11  ;;  %7657 = vrcp.f32 %v4824_v3 }
0x15bc   :  { %v8438_v7 = vpop.eup %7655 }
0x15bd   :  { %v8440_v9 = vpop.eup %7657 }
0x166f   :  { %v7513_v2 = vpop.f32.mrf.mxu0 }
0x1670   :  { %v5064_v6 = vadd.f32 %v7513_v2, %v6835_v4 }
0x1671   :  { %v5058_v5 = vpop.f32.mrf.mxu0 }
0x1672   :  { %v5059_v8 = vadd.f32 %v6835_v4, %v5058_v5  ;;  %v5068_v17 = vmul.f32 %v8438_v7, %v5064_v6 }
0x1674   :  { %v5067_v14 = vmul.f32 %v8440_v9, %v5059_v8  ;;  %v5070_v20 = vmax.f32 %v5068_v17, 0.0 }
0x1676   :  { %v5069_v10 = vmax.f32 %v5067_v14, 0.0 }
0x1678   :  { %7516 = vmatprep.mubr.msk.f32.mxu1 %vm752_vm6, %v5069_v10  ;;  %7520 = vmatpush3.msra.mxu0 %v5069_v10 }
0x1679   :  { %7517 = vmatmul.mubr.msk.f32.vlgmr.msra.gmra.mxu1 %vm752_vm6, %v5070_v20  ;;  %7522 = vmatmul.mubr.msk.f32.vlgmr.msra.gmra.mxu0 %vm319_vm2, %v8401_v45 }
0x167a   :  { %7525 = vmatpush3.msra.mxu1 %v5070_v20  ;;  %7529 = vmatprep.subr.mxu0 %v6846_v21 }
0x167b   :  { %7530 = vmatpush3.msra.mxu0 %v6846_v21  ;;  %7535 = vmatprep.mubr.msk.f32.mxu0 %vm67_vm0, %v8418_v57 }
0x167c   :  { %7531 = vmatprep.subr.mxu0 %v6845_v22  ;;  %7526 = vmatprep.mubr.msk.f32.mxu1 %vm7662_vm1, %v7661_v11 }
0x167d   :  { %7532 = vmatpush3.msra.mxu0 %v6845_v22  ;;  %7527 = vmatmul.mubr.msk.f32.vlgmr.msra.gmra.mxu1 %vm319_vm2, %v8395_v41 }
0x167e   :  { %7533 = vmatprep.subr.mxu0 %v6844_v23  ;;  %7538 = vmatprep.subr.msk.mxu1 %vm759_vm5, %v6851_v25 }
0x167f   :  { %7534 = vmatpush3.msra.mxu0 %v6844_v23  ;;  %7539 = vmatpush3.msk.msra.mxu1 %vm759_vm5, %v6851_v25 }
0x1680   :  { %7536 = vmatmul.mubr.msk.f32.vlgmr.msra.gmra.mxu0 %vm67_vm0, %v8421_v59  ;;  %7548 = vmatprep.subr.mxu0 %v7661_v11 }
0x1681   :  { %7550 = vmatprep.mubr.msk.f32.mxu0 %vm7662_vm1, %v7661_v11 }
0x1739   :  { %v7518_v26 = vpop.f32.mrf.mxu1  ;;  %v5225_v28 = vpop.f32.mrf.mxu0 }
0x173a   :  { %v5158_v29 = vadd.f32 %v7518_v26, %v8364_v18  ;;  %v8474_v30 = vadd.f32 %v5225_v28, %v5069_v10  ;;  %v6855_v18 = vld [vmem:[%s8623_s10 + $0x48] sm:$0x3f]  ;;  %v6884_v26 = vld [vmem:[%s8622_s6 + $0x118] sm:$0xff]  ;;  %v6883_v28 = vld [vmem:[%s8622_s6 + $0x110] sm:$0xff] }
0x173b   :  { %v5148_v31 = vpop.f32.mrf.mxu1  ;;  %v7523_v33 = vpop.f32.mrf.mxu0  ;;  %7543 = vmatprep.subr.msk.mxu1 %vm759_vm5, %v6855_v18 }
0x173c   :  { %v5157_v35 = vadd.f32 %v5148_v31, %v8367_v16  ;;  %7540 = vmatprep.mubr.msk.f32.mxu1 %vm752_vm6, %v8474_v30 }
0x173d   :  { %v5295_v36 = vpop.f32.mrf.mxu1 }
0x173e   :  { %v8479_v54 = vadd.f32 %v5295_v36, %v5070_v20 }
0x173f   :  { %v7528_v0 = vpop.f32.mrf.mxu1 }
0x1740   :  { %7541 = vmatmul.mubr.msk.f32.vlgmr.msra.gmra.mxu1 %vm752_vm6, %v8479_v54  ;;  %v7537_v16 = vpop.f32.mrf.mxu0 }
0x1741   :  { %7544 = vmatpush3.msk.msra.mxu1 %vm759_vm5, %v6855_v18  ;;  %v5383_v34 = vadd.f32 %v7537_v16, %v6848_v50  ;;  %v6901_v16 = vld [vmem:[%s8623_s10 + $0x58] sm:$0x3f] }
0x1742   :  { %7553 = vmatprep.subr.mxu1 %v7661_v11  ;;  %v5377_v1 = vpop.f32.mrf.mxu0 }
0x1743   :  { %v5378_v58 = vadd.f32 %v6848_v50, %v5377_v1 }
0x1800   :  { %v7542_v49 = vpop.f32.mrf.mxu1 }
0x1801   :  { %v5473_v52 = vadd.f32 %v7542_v49, %v5383_v34  ;;  %v6886_v34 = vld [vmem:[%s8624_s8 + $0xb] ss:$0 sm:$0xff] }
0x1802   :  { %v5463_v61 = vpop.f32.mrf.mxu1 }
0x1803   :  { %v5472_v15 = vadd.f32 %v5463_v61, %v5378_v58  ;;  %v5475_v19 = vmul.f32 %v8438_v7, %v5473_v52 }
0x1805   :  { %v5474_v32 = vmul.f32 %v8440_v9, %v5472_v15  ;;  %v5477_v37 = vmax.f32 %v5475_v19, 0.0 }
0x1807   :  { %v5476_v27 = vmax.f32 %v5474_v32, 0.0 }
0x1809   :  { %7545 = vmatprep.mubr.msk.f32.mxu1 %vm752_vm6, %v5476_v27  ;;  %7549 = vmatpush3.msra.mxu0 %v5476_v27 }
0x180a   :  { %7546 = vmatmul.mubr.msk.f32.vlgmr.msra.gmra.mxu1 %vm752_vm6, %v5477_v37  ;;  %7551 = vmatmul.mubr.msk.f32.vlgmr.msra.gmra.mxu0 %vm319_vm2, %v8401_v45 }
0x180b   :  { %7554 = vmatpush3.msra.mxu1 %v5477_v37  ;;  %7558 = vmatprep.subr.mxu0 %v6863_v12 }
0x180c   :  { %7559 = vmatpush3.msra.mxu0 %v6863_v12  ;;  %7564 = vmatprep.mubr.msk.f32.mxu0 %vm67_vm0, %v8418_v57 }
0x180d   :  { %7560 = vmatprep.subr.mxu0 %v6862_v13  ;;  %7555 = vmatprep.mubr.msk.f32.mxu1 %vm7662_vm1, %v7661_v11 }
0x180e   :  { %7561 = vmatpush3.msra.mxu0 %v6862_v13  ;;  %7556 = vmatmul.mubr.msk.f32.vlgmr.msra.gmra.mxu1 %vm319_vm2, %v8395_v41 }
0x180f   :  { %7562 = vmatprep.subr.mxu0 %v6861_v24  ;;  %7569 = vmatprep.mubr.msk.f32.mxu1 %vm752_vm6, %v8474_v30 }
0x1810   :  { %7563 = vmatpush3.msra.mxu0 %v6861_v24  ;;  %7567 = vmatprep.subr.msk.mxu1 %vm759_vm5, %v6868_v39 }
0x1811   :  { %7565 = vmatmul.mubr.msk.f32.vlgmr.msra.gmra.mxu0 %vm67_vm0, %v8421_v59  ;;  %7568 = vmatpush3.msk.msra.mxu1 %vm759_vm5, %v6868_v39 }
0x1812   :  { %7570 = vmatmul.mubr.msk.f32.vlgmr.msra.gmra.mxu1 %vm752_vm6, %v8479_v54  ;;  %7572 = vmatprep.subr.msk.mxu0 %vm759_vm5, %v6872_v40 }
0x1813   :  { %7573 = vmatpush3.msk.msra.mxu0 %vm759_vm5, %v6872_v40  ;;  %7577 = vmatprep.subr.msk.mxu1 %vm759_vm5, %v6876_v62 }
0x1814   :  { %7582 = vmatprep.subr.mxu0 %v7661_v11  ;;  %7578 = vmatpush3.msk.msra.mxu1 %vm759_vm5, %v6876_v62 }
0x1815   :  { %7587 = vmatprep.subr.mxu1 %v7661_v11 }
0x18ca   :  { %v7547_v43 = vpop.f32.mrf.mxu1  ;;  %v5632_v44 = vpop.f32.mrf.mxu0 }
0x18cb   :  { %v8530_v46 = vadd.f32 %v7547_v43, %v5158_v29  ;;  %v5633_v47 = vadd.f32 %v5632_v44, %v5476_v27  ;;  %v6882_v29 = vld [vmem:[%s8622_s6 + $0x108] sm:$0xff] }
0x18cc   :  { %v5555_v48 = vpop.f32.mrf.mxu1  ;;  %v7552_v51 = vpop.f32.mrf.mxu0 }
0x18cd   :  { %v8532_v53 = vadd.f32 %v5555_v48, %v5157_v35  ;;  %7574 = vmatprep.mubr.msk.f32.mxu0 %vm752_vm6, %v5633_v47 }
0x18ce   :  { %v5702_v55 = vpop.f32.mrf.mxu1 }
0x18cf   :  { %v5703_v56 = vadd.f32 %v5702_v55, %v5477_v37 }
0x18d0   :  { %v7557_v60 = vpop.f32.mrf.mxu1 }
0x18d1   :  { %7575 = vmatmul.mubr.msk.f32.vlgmr.msra.gmra.mxu0 %vm752_vm6, %v5703_v56  ;;  %v7566_v38 = vpop.f32.mrf.mxu0 }
0x18d2   :  { %7584 = vmatprep.mubr.msk.f32.mxu0 %vm7662_vm1, %v7661_v11  ;;  %v7571_v3 = vpop.f32.mrf.mxu1  ;;  %v5790_v4 = vadd.f32 %v7566_v38, %v6865_v42 }
0x18d3   :  { %v5784_v63 = vpop.f32.mrf.mxu0 }
0x18d4   :  { %v5785_v2 = vadd.f32 %v6865_v42, %v5784_v63  ;;  %v5864_v6 = vpop.f32.mrf.mxu1  ;;  %v5874_v5 = vadd.f32 %v7571_v3, %v5790_v4 }
0x18d6   :  { %v5873_v17 = vadd.f32 %v5864_v6, %v5785_v2 }
0x1991   :  { %v7576_v8 = vpop.f32.mrf.mxu0 }
0x1992   :  { %v5962_v14 = vadd.f32 %v7576_v8, %v5874_v5 }
0x1993   :  { %v5952_v10 = vpop.f32.mrf.mxu0 }
0x1994   :  { %v5961_v20 = vadd.f32 %v5952_v10, %v5873_v17  ;;  %v5964_v21 = vmul.f32 %v8438_v7, %v5962_v14 }
0x1996   :  { %v5963_v22 = vmul.f32 %v8440_v9, %v5961_v20  ;;  %v5966_v25 = vmax.f32 %v5964_v21, 0.0 }
0x1998   :  { %v5965_v23 = vmax.f32 %v5963_v22, 0.0 }
0x199a   :  { %7579 = vmatprep.mubr.msk.f32.mxu1 %vm752_vm6, %v5965_v23  ;;  %7583 = vmatpush3.msra.mxu0 %v5965_v23 }
0x199b   :  { %7580 = vmatmul.mubr.msk.f32.vlgmr.msra.gmra.mxu1 %vm752_vm6, %v5966_v25  ;;  %7585 = vmatmul.mubr.msk.f32.vlgmr.msra.gmra.mxu0 %vm319_vm2, %v8401_v45  ;;  %v6889_v45 = vld [vmem:[%s8625_s7 + $0x78] sm:$0x3f] }
0x199c   :  { %7588 = vmatpush3.msra.mxu1 %v5966_v25  ;;  %7592 = vmatprep.subr.mxu0 %v6884_v26 }
0x199d   :  { %7593 = vmatpush3.msra.mxu0 %v6884_v26  ;;  %7598 = vmatprep.mubr.msk.f32.mxu0 %vm67_vm0, %v8418_v57  ;;  %v6893_v57 = vld [vmem:[%s8625_s7 + $0x80] sm:$0x3f] }
0x199e   :  { %7594 = vmatprep.subr.mxu0 %v6883_v28  ;;  %7589 = vmatprep.mubr.msk.f32.mxu1 %vm7662_vm1, %v7661_v11  ;;  %v6897_v11 = vld [vmem:[%s8625_s7 + $0x88] sm:$0x3f] }
0x199f   :  { %7595 = vmatpush3.msra.mxu0 %v6883_v28  ;;  %7590 = vmatmul.mubr.msk.f32.vlgmr.msra.gmra.mxu1 %vm319_vm2, %v8395_v41 }
0x19a0   :  { %7596 = vmatprep.subr.mxu0 %v6882_v29  ;;  %7603 = vmatprep.mubr.msk.f32.mxu1 %vm752_vm6, %v8474_v30 }
0x19a1   :  { %7597 = vmatpush3.msra.mxu0 %v6882_v29  ;;  %7601 = vmatprep.subr.msk.mxu1 %vm759_vm5, %v6889_v45 }
0x19a2   :  { %7599 = vmatmul.mubr.msk.f32.vlgmr.msra.gmra.mxu0 %vm67_vm0, %v8421_v59  ;;  %7602 = vmatpush3.msk.msra.mxu1 %vm759_vm5, %v6889_v45 }
0x19a3   :  { %7604 = vmatmul.mubr.msk.f32.vlgmr.msra.gmra.mxu1 %vm752_vm6, %v8479_v54  ;;  %7606 = vmatprep.subr.msk.mxu1 %vm759_vm5, %v6893_v57 }
0x19a4   :  { %7608 = vmatprep.mubr.msk.f32.mxu1 %vm752_vm6, %v5633_v47  ;;  %7607 = vmatpush3.msk.msra.mxu1 %vm759_vm5, %v6893_v57 }
0x19a5   :  { %7611 = vmatprep.subr.msk.mxu0 %vm759_vm5, %v6897_v11  ;;  %7616 = vmatprep.subr.msk.mxu1 %vm759_vm5, %v6901_v16 }
0x19a6   :  { %7612 = vmatpush3.msk.msra.mxu0 %vm759_vm5, %v6897_v11 }
0x19a7   :  { %7609 = vmatmul.mubr.msk.f32.vlgmr.msra.gmra.mxu1 %vm752_vm6, %v5703_v56 }
0x19a8   :  { %7617 = vmatpush3.msk.msra.mxu1 %vm759_vm5, %v6901_v16 }
0x1a5b   :  { %v7581_v41 = vpop.f32.mrf.mxu1  ;;  %v6121_v59 = vpop.f32.mrf.mxu0 }
0x1a5c   :  { %v6054_v30 = vadd.f32 %v7581_v41, %v8530_v46  ;;  %v6122_v31 = vadd.f32 %v6121_v59, %v5965_v23 }
0x1a5d   :  { %v6044_v33 = vpop.f32.mrf.mxu1  ;;  %v7586_v35 = vpop.f32.mrf.mxu0 }
0x1a5e   :  { %v6053_v36 = vadd.f32 %v6044_v33, %v8532_v53  ;;  %7613 = vmatprep.mubr.msk.f32.mxu0 %vm752_vm6, %v6122_v31 }
0x1a5f   :  { %v6191_v54 = vpop.f32.mrf.mxu1 }
0x1a60   :  { %v6192_v0 = vadd.f32 %v6191_v54, %v5966_v25 }
0x1a61   :  { %v7591_v18 = vpop.f32.mrf.mxu1 }
0x1a62   :  { %7614 = vmatmul.mubr.msk.f32.vlgmr.msra.gmra.mxu0 %vm752_vm6, %v6192_v0  ;;  %v7600_v1 = vpop.f32.mrf.mxu0 }
0x1a63   :  { %v7605_v50 = vpop.f32.mrf.mxu1  ;;  %v6279_v52 = vadd.f32 %v7600_v1, %v6886_v34 }
0x1a64   :  { %v6273_v58 = vpop.f32.mrf.mxu0 }
0x1a65   :  { %v6353_v49 = vpop.f32.mrf.mxu1  ;;  %v6274_v15 = vadd.f32 %v6886_v34, %v6273_v58  ;;  %v6363_v19 = vadd.f32 %v7605_v50, %v6279_v52 }
0x1a67   :  { %v7610_v61 = vpop.f32.mrf.mxu1  ;;  %v6362_v27 = vadd.f32 %v6353_v49, %v6274_v15 }
0x1a68   :  { %v6445_v37 = vadd.f32 %v7610_v61, %v6363_v19 }
0x1a69   :  { %v6435_v32 = vpop.f32.mrf.mxu1 }
0x1a6a   :  { %v6444_v13 = vadd.f32 %v6435_v32, %v6362_v27 }
0x1b22   :  { %v7615_v12 = vpop.f32.mrf.mxu0 }
0x1b23   :  { %v6533_v24 = vadd.f32 %v7615_v12, %v6445_v37 }
0x1b24   :  { %v6523_v39 = vpop.f32.mrf.mxu0 }
0x1b25   :  { %v6532_v40 = vadd.f32 %v6523_v39, %v6444_v13  ;;  %v6535_v43 = vmul.f32 %v8438_v7, %v6533_v24 }
0x1b27   :  { %v6534_v44 = vmul.f32 %v8440_v9, %v6532_v40  ;;  %v6537_v47 = vmax.f32 %v6535_v43, 0.0 }
0x1b29   :  { %v6536_v46 = vmax.f32 %v6534_v44, 0.0 }
0x1b2b   :  { %7618 = vmatprep.mubr.msk.f32.mxu1 %vm752_vm6, %v6536_v46 }
0x1b2c   :  { %7619 = vmatmul.mubr.msk.f32.vlgmr.msra.gmra.mxu1 %vm752_vm6, %v6537_v47 }
0x1bec   :  { %v7620_v48 = vpop.f32.mrf.mxu1 }
0x1bed   :  { %v6625_v51 = vadd.f32 %v7620_v48, %v6054_v30 }
0x1bee   :  { %v6615_v53 = vpop.f32.mrf.mxu1 }
0x1bef   :  { %6627 = vst.msk [vmem:[%s8627_s12 + $0x8] sm:$0xff] %vm67_vm0, %v6625_v51  ;;  %v6624_v55 = vadd.f32 %v6615_v53, %v6053_v36 }
0x1bf1   :  { %6626 = vst.msk [vmem:[%s8627_s12] sm:$0xff] %vm67_vm0, %v6624_v55 }

</bundles_post_ra>
